<compile_context>
chip_gen: v6e
topology: v6e:2x2x1
jax: 0.10.0
libtpu: 0.0.40
codegen_flags: <defaults>
</compile_context>

<pallas_src>
import functools
import math

import jax
import jax.numpy as jnp
from jax import lax
from jax.experimental import pallas as pl
from jax.experimental.pallas import tpu as pltpu

LN_EPS = 1e-5          # torch.nn.LayerNorm default eps
LOG10 = math.log(10.0)


# --------------------------------------------------------------------------
# helpers
# --------------------------------------------------------------------------
def _round_up(x, m):
    return ((x + m - 1) // m) * m


def _row_tiling(R):
    """Pick a lane/sublane friendly row tile: full R when small, 512 otherwise."""
    if R <= 512:
        tile = _round_up(max(R, 8), 8)
        return tile, tile
    tile = 512
    return tile, _round_up(R, tile)


def _pad_rows(x, R_pad):
    R = x.shape[0]
    if R == R_pad:
        return x
    return jnp.pad(x, ((0, R_pad - R), (0, 0)))


def _ln_relu(y, gamma, beta):
    mu = jnp.mean(y, axis=-1, keepdims=True)
    var = jnp.mean((y - mu) ** 2, axis=-1, keepdims=True)
    yn = (y - mu) * lax.rsqrt(var + LN_EPS)
    return jnp.maximum(yn * gamma + beta, 0.0)


# --------------------------------------------------------------------------
# Kernel A: fused pitch/loudness/amplitude MLP chains + GRU input projection
# --------------------------------------------------------------------------
def _latent_gi_kernel(nb_rest, x3_ref, w1_ref, b1_ref, g1_ref, be1_ref,
                      wr_ref, br_ref, gr_ref, ber_ref, wih_ref, bih_ref,
                      lat_ref, gi_ref):
    x3 = x3_ref[...]                                   # (rows, 3)
    parts = []
    for m in range(3):                                 # pitch, loudness, amplitude
        # first block has in_features == 1  ->  broadcast multiply
        y = x3[:, m:m + 1] * w1_ref[m:m + 1, :] + b1_ref[m:m + 1, :]
        y = _ln_relu(y, g1_ref[m:m + 1, :], be1_ref[m:m + 1, :])
        for j in range(nb_rest):
            y = jnp.dot(y, wr_ref[m, j],
                        preferred_element_type=jnp.float32) + br_ref[m, j]
            y = _ln_relu(y, gr_ref[m, j], ber_ref[m, j])
        parts.append(y)
    lat = jnp.concatenate(parts, axis=-1)              # (rows, 3H)
    lat_ref[...] = lat
    # hoisted GRU input projection (both directions, all gates, one matmul)
    gi_ref[...] = (jnp.dot(lat, wih_ref[...], preferred_element_type=jnp.float32)
                   + bih_ref[...])


def fused_input_mlps(x3, p, *, row_tile, R_pad):
    H = p["in_b1"].shape[1]
    G6 = p["wih_cat"].shape[1]
    nb_rest = p["in_wr"].shape[1]
    x3 = _pad_rows(x3, R_pad)

    c2 = lambda i: (0, 0)
    c3 = lambda i: (0, 0, 0)
    c4 = lambda i: (0, 0, 0, 0)

    lat, gi = pl.pallas_call(
        functools.partial(_latent_gi_kernel, nb_rest),
        out_shape=(jax.ShapeDtypeStruct((R_pad, 3 * H), jnp.float32),
                   jax.ShapeDtypeStruct((R_pad, G6), jnp.float32)),
        grid=(R_pad // row_tile,),
        in_specs=[
            pl.BlockSpec((row_tile, 3), lambda i: (i, 0)),
            pl.BlockSpec(p["in_w1"].shape, c2),
            pl.BlockSpec(p["in_b1"].shape, c2),
            pl.BlockSpec(p["in_g1"].shape, c2),
            pl.BlockSpec(p["in_be1"].shape, c2),
            pl.BlockSpec(p["in_wr"].shape, c4),
            pl.BlockSpec(p["in_br"].shape, c3),
            pl.BlockSpec(p["in_gr"].shape, c3),
            pl.BlockSpec(p["in_ber"].shape, c3),
            pl.BlockSpec(p["wih_cat"].shape, c2),
            pl.BlockSpec(p["bih_cat"].shape, c2),
        ],
        out_specs=(pl.BlockSpec((row_tile, 3 * H), lambda i: (i, 0)),
                   pl.BlockSpec((row_tile, G6), lambda i: (i, 0))),
        compiler_params=pltpu.CompilerParams(dimension_semantics=("parallel",)),
    )(x3, p["in_w1"], p["in_b1"], p["in_g1"], p["in_be1"],
      p["in_wr"], p["in_br"], p["in_gr"], p["in_ber"],
      p["wih_cat"], p["bih_cat"])
    return lat, gi


# --------------------------------------------------------------------------
# Kernel B: bidirectional GRU recurrence (one grid step per direction)
# --------------------------------------------------------------------------
def _bigru_kernel(gi_ref, whh_ref, bhh_ref, out_ref):
    # gi_ref:  (Fr, 3*N, G)   gate-major rows [r|z|n], input proj + b_ih folded in
    # whh_ref: (3, G, G)      gates on the leading dim (no lane slicing in the loop)
    # bhh_ref: (3, G)
    # out_ref: (Fr, N, G)
    Fr = gi_ref.shape[0]
    NG3 = gi_ref.shape[1]
    G = gi_ref.shape[2]
    N = NG3 // 3

    whh_r = whh_ref[0]
    whh_z = whh_ref[1]
    whh_n = whh_ref[2]
    bhh_r = bhh_ref[0]
    bhh_z = bhh_ref[1]
    bhh_n = bhh_ref[2]

    def step(t, h):
        gi_t = gi_ref[t]                               # (3N, G)
        gi_r = gi_t[0:N]
        gi_z = gi_t[N:2 * N]
        gi_n = gi_t[2 * N:3 * N]
        gh_r = jnp.dot(h, whh_r, preferred_element_type=jnp.float32) + bhh_r
        gh_z = jnp.dot(h, whh_z, preferred_element_type=jnp.float32) + bhh_z
        gh_n = jnp.dot(h, whh_n, preferred_element_type=jnp.float32) + bhh_n
        r = jax.nn.sigmoid(gi_r + gh_r)
        z = jax.nn.sigmoid(gi_z + gh_z)
        n = jnp.tanh(gi_n + r * gh_n)                  # b_hh_n inside r*(...) -> matches nn.GRU
        h_new = (1.0 - z) * n + z * h
        out_ref[t] = h_new
        return h_new

    h0 = jnp.zeros((N, G), jnp.float32)
    lax.fori_loop(0, Fr, step, h0)


def bigru(gi_stacked, whh_stacked, bhh_stacked):
    """gi_stacked: (2, Fr, 3N, G) with the backward direction already time-reversed."""
    _, Fr, NG3, G = gi_stacked.shape
    N = NG3 // 3
    return pl.pallas_call(
        _bigru_kernel,
        out_shape=jax.ShapeDtypeStruct((2, Fr, N, G), jnp.float32),
        grid=(2,),
        in_specs=[
            pl.BlockSpec((None, Fr, NG3, G), lambda d: (d, 0, 0, 0)),
            pl.BlockSpec((None, 3, G, G), lambda d: (d, 0, 0, 0)),
            pl.BlockSpec((None, 3, G), lambda d: (d, 0, 0)),
        ],
        out_specs=pl.BlockSpec((None, Fr, N, G), lambda d: (d, 0, 0, 0)),
        # the two directions are independent -> parallel (2 TCs on v7x)
        compiler_params=pltpu.CompilerParams(dimension_semantics=("parallel",)),
    )(gi_stacked, whh_stacked, bhh_stacked)


# --------------------------------------------------------------------------
# Kernel C: fused out_mlp chain + harmonic / noise heads
# --------------------------------------------------------------------------
def _out_head_kernel(nb_rest, NH, lat_ref, gru_ref, w1a_ref, w1b_ref,
                     b1_ref, g1_ref, be1_ref, wr_ref, br_ref, gr_ref, ber_ref,
                     wcat_ref, bcat_ref, out_ref):
    # first out_mlp block: concat(latent, gru_out) @ W1  ==  lat@W1a + gru@W1b
    y = (jnp.dot(lat_ref[...], w1a_ref[...], preferred_element_type=jnp.float32)
         + jnp.dot(gru_ref[...], w1b_ref[...], preferred_element_type=jnp.float32)
         + b1_ref[...])
    y = _ln_relu(y, g1_ref[...], be1_ref[...])
    for j in range(nb_rest):
        y = jnp.dot(y, wr_ref[j], preferred_element_type=jnp.float32) + br_ref[j]
        y = _ln_relu(y, gr_ref[j], ber_ref[j])

    # fused harmonic + noise heads: one matmul, one lane-dense output slab
    h = jnp.dot(y, wcat_ref[...], preferred_element_type=jnp.float32) + bcat_ref[...]
    amp_resid = h[:, 0:1]
    logits = h[:, 1:1 + NH]
    noise = h[:, 1 + NH:]
    m = jnp.max(logits, axis=-1, keepdims=True)
    e = jnp.exp(logits - m)
    sm = e / jnp.sum(e, axis=-1, keepdims=True)
    # modified_sigmoid (DDSP): 2 * sigmoid(x)**log(10) + 1e-7
    amp = 2.0 * jnp.power(jax.nn.sigmoid(amp_resid), LOG10) + 1e-7
    out_ref[...] = jnp.concatenate([amp, sm, noise], axis=-1)


def fused_out_head(lat_pad, gru_pad, p, *, row_tile):
    R_pad, H3 = lat_pad.shape
    G2 = gru_pad.shape[1]
    nb_rest = p["out_wr"].shape[0]
    NH = p["harmonic_n_controls"]
    W = p["head_wcat"].shape[1]

    c2 = lambda i: (0, 0)
    c3 = lambda i: (0, 0, 0)

    return pl.pallas_call(
        functools.partial(_out_head_kernel, nb_rest, NH),
        out_shape=jax.ShapeDtypeStruct((R_pad, W), jnp.float32),
        grid=(R_pad // row_tile,),
        in_specs=[
            pl.BlockSpec((row_tile, H3), lambda i: (i, 0)),
            pl.BlockSpec((row_tile, G2), lambda i: (i, 0)),
            pl.BlockSpec(p["out_w1a"].shape, c2),
            pl.BlockSpec(p["out_w1b"].shape, c2),
            pl.BlockSpec(p["out_b1"].shape, c2),
            pl.BlockSpec(p["out_g1"].shape, c2),
            pl.BlockSpec(p["out_be1"].shape, c2),
            pl.BlockSpec(p["out_wr"].shape, c3),
            pl.BlockSpec(p["out_br"].shape, c2),
            pl.BlockSpec(p["out_gr"].shape, c2),
            pl.BlockSpec(p["out_ber"].shape, c2),
            pl.BlockSpec(p["head_wcat"].shape, c2),
            pl.BlockSpec(p["head_bcat"].shape, c2),
        ],
        out_specs=pl.BlockSpec((row_tile, W), lambda i: (i, 0)),
        compiler_params=pltpu.CompilerParams(dimension_semantics=("parallel",)),
    )(lat_pad, gru_pad, p["out_w1a"], p["out_w1b"], p["out_b1"], p["out_g1"],
      p["out_be1"], p["out_wr"], p["out_br"], p["out_gr"], p["out_ber"],
      p["head_wcat"], p["head_bcat"])


# --------------------------------------------------------------------------
# Parameter construction (deterministic, PyTorch-default-style uniform init),
# pre-packed in the layouts the fused kernels expect.
# --------------------------------------------------------------------------
def make_gtt_decoder_params(key, *, hidden=32, mlp_blocks=3, gru_features=16,
                            harmonic_n_controls=8, noise_filters=9):
    assert mlp_blocks >= 2, "fused kernel packing assumes >= 2 MLP blocks"
    H, G = hidden, gru_features
    NH, NF = harmonic_n_controls, noise_filters
    nb_rest = mlp_blocks - 1
    gru_in = 3 * H                      # pitch + loudness + amplitude latents
    out_in = gru_in + 2 * G             # + bidirectional GRU output

    kit = iter(jax.random.split(key, 256))
    u = lambda shape, bound: jax.random.uniform(next(kit), shape, jnp.float32,
                                                -bound, bound)
    bH = 1.0 / math.sqrt(H)
    bG = 1.0 / math.sqrt(G)
    bO = 1.0 / math.sqrt(out_in)

    # three input MLPs stacked on a leading dim: [pitch, loudness, amplitude]
    in_w1 = jnp.stack([u((H,), 1.0) for _ in range(3)])                  # fan_in = 1
    in_b1 = jnp.stack([u((H,), 1.0) for _ in range(3)])
    in_g1 = jnp.ones((3, H), jnp.float32)
    in_be1 = jnp.zeros((3, H), jnp.float32)
    in_wr = jnp.stack([jnp.stack([u((H, H), bH) for _ in range(nb_rest)])
                       for _ in range(3)])
    in_br = jnp.stack([jnp.stack([u((H,), bH) for _ in range(nb_rest)])
                       for _ in range(3)])
    in_gr = jnp.ones((3, nb_rest, H), jnp.float32)
    in_ber = jnp.zeros((3, nb_rest, H), jnp.float32)

    # bidirectional GRU, gate order (r, z, n) like nn.GRU
    wih_f = u((gru_in, 3 * G), bG); whh_f = u((G, 3 * G), bG)
    bih_f = u((3 * G,), bG);        bhh_f = u((3 * G,), bG)
    wih_b = u((gru_in, 3 * G), bG); whh_b = u((G, 3 * G), bG)
    bih_b = u((3 * G,), bG);        bhh_b = u((3 * G,), bG)
    wih_cat = jnp.concatenate([wih_f, wih_b], axis=1)                    # (3H, 6G)
    bih_cat = jnp.concatenate([bih_f, bih_b]).reshape(1, 6 * G)
    gate_stack = lambda w: jnp.transpose(w.reshape(G, 3, G), (1, 0, 2))  # (3,G,G)
    whh = jnp.stack([gate_stack(whh_f), gate_stack(whh_b)])              # (2,3,G,G)
    bhh = jnp.stack([bhh_f.reshape(3, G), bhh_b.reshape(3, G)])          # (2,3,G)

    # out_mlp (first block weight split into latent / gru halves)
    w1 = u((out_in, H), bO)
    out_w1a, out_w1b = w1[:gru_in], w1[gru_in:]
    out_b1 = u((1, H), bO)
    out_g1 = jnp.ones((1, H), jnp.float32)
    out_be1 = jnp.zeros((1, H), jnp.float32)
    out_wr = jnp.stack([u((H, H), bH) for _ in range(nb_rest)])
    out_br = jnp.stack([u((H,), bH) for _ in range(nb_rest)])
    out_gr = jnp.ones((nb_rest, H), jnp.float32)
    out_ber = jnp.zeros((nb_rest, H), jnp.float32)

    # heads fused into one matrix: [amp_resid | harmonic logits | noise]
    wh = u((H, NH + 1), bH); bhd = u((NH + 1,), bH)
    wn = u((H, NF), bH);     bn = u((NF,), bH)
    head_wcat = jnp.concatenate([wh, wn], axis=1)                        # (H, 1+NH+NF)
    head_bcat = jnp.concatenate([bhd, bn]).reshape(1, 1 + NH + NF)

    return dict(
        hidden=H, gru_features=G,
        harmonic_n_controls=NH, noise_filters=NF,
        in_w1=in_w1, in_b1=in_b1, in_g1=in_g1, in_be1=in_be1,
        in_wr=in_wr, in_br=in_br, in_gr=in_gr, in_ber=in_ber,
        wih_cat=wih_cat, bih_cat=bih_cat, whh=whh, bhh=bhh,
        out_w1a=out_w1a, out_w1b=out_w1b, out_b1=out_b1,
        out_g1=out_g1, out_be1=out_be1,
        out_wr=out_wr, out_br=out_br, out_gr=out_gr, out_ber=out_ber,
        head_wcat=head_wcat, head_bcat=head_bcat,
    )


# --------------------------------------------------------------------------
# Full forward pass
# --------------------------------------------------------------------------
def gtt_decoder_forward(x, params):
    pitch = x["pitch"].astype(jnp.float32)        # (B, V, F)
    amplitude = x["amplitude"].astype(jnp.float32)  # (B, V, F)
    loudness = x["loudness"].astype(jnp.float32)    # (B, 1, F)
    B, V, Fr = pitch.shape
    N = B * V
    R = N * Fr
    H = params["hidden"]
    G = params["gru_features"]
    NH = params["harmonic_n_controls"]
    NF = params["noise_filters"]

    # TODO(synk): log_pitch / use_timbre_encoder (F.interpolate) / mult_noise
    # branches are disabled by default in the reference module and not ported.

    loud_b = jnp.broadcast_to(loudness, (B, V, Fr))
    x3 = jnp.stack([pitch.reshape(R), loud_b.reshape(R), amplitude.reshape(R)],
                   axis=-1)                                             # (R, 3)

    row_tile, R_pad = _row_tiling(R)

    # Kernel A: latent slab + hoisted GRU input projection
    lat_pad, gi_pad = fused_input_mlps(x3, params, row_tile=row_tile, R_pad=R_pad)

    # repack gi for the recurrence: (2 dirs, Fr, 3 gates * N, G), bwd dir time-reversed
    gi = gi_pad[:R].reshape(N, Fr, 2, 3, G)
    gi = jnp.transpose(gi, (2, 1, 3, 0, 4))                             # (2, Fr, 3, N, G)
    gi = jnp.stack([gi[0], gi[1, ::-1]], axis=0)
    gi = gi.reshape(2, Fr, 3 * N, G)

    # Kernel B: recurrence only
    out = bigru(gi, params["whh"], params["bhh"])                       # (2, Fr, N, G)
    gru_f = out[0]
    gru_b = out[1, ::-1]                                                # back to natural time order
    gru_rows = jnp.concatenate([gru_f, gru_b], axis=-1)                 # (Fr, N, 2G)
    gru_rows = jnp.transpose(gru_rows, (1, 0, 2)).reshape(R, 2 * G)
    gru_pad = _pad_rows(gru_rows, R_pad)

    # Kernel C: out_mlp + heads, single lane-dense output slab
    head_pad = fused_out_head(lat_pad, gru_pad, params, row_tile=row_tile)
    head = head_pad[:R]                                                 # (R, 1+NH+NF)

    out_dict = dict(x)
    out_dict["amplitude"] = head[:, 0].reshape(B, V, Fr)
    out_dict["harmonics"] = jnp.transpose(
        head[:, 1:1 + NH].reshape(B, V, Fr, NH), (0, 1, 3, 2))
    out_dict["noise"] = jnp.transpose(
        head[:, 1 + NH:].reshape(B, V, Fr, NF), (0, 1, 3, 2))
    return out_dict


# --------------------------------------------------------------------------
# Pure-JAX reference (same packed params) for correctness checking
# --------------------------------------------------------------------------
def _reference_forward(x, p):
    hp = functools.partial(jnp.dot, precision=jax.lax.Precision.HIGHEST)
    pitch = x["pitch"].astype(jnp.float32)
    amplitude = x["amplitude"].astype(jnp.float32)
    loudness = x["loudness"].astype(jnp.float32)
    B, V, Fr = pitch.shape
    N, R = B * V, B * V * Fr
    H, G = p["hidden"], p["gru_features"]
    NH, NF = p["harmonic_n_controls"], p["noise_filters"]

    def ln_relu(y, g, b):
        mu = jnp.mean(y, -1, keepdims=True)
        var = jnp.mean((y - mu) ** 2, -1, keepdims=True)
        return jnp.maximum((y - mu) / jnp.sqrt(var + LN_EPS) * g + b, 0.0)

    cols = [pitch.reshape(R, 1),
            jnp.broadcast_to(loudness, (B, V, Fr)).reshape(R, 1),
            amplitude.reshape(R, 1)]
    parts = []
    for m in range(3):
        y = cols[m] * p["in_w1"][m][None, :] + p["in_b1"][m][None, :]
        y = ln_relu(y, p["in_g1"][m], p["in_be1"][m])
        for j in range(p["in_wr"].shape[1]):
            y = ln_relu(hp(y, p["in_wr"][m, j]) + p["in_br"][m, j],
                        p["in_gr"][m, j], p["in_ber"][m, j])
        parts.append(y)
    lat = jnp.concatenate(parts, -1)                                    # (R, 3H)

    x_seq = lat.reshape(N, Fr, 3 * H).transpose(1, 0, 2)                # (Fr, N, 3H)
    wih_f, wih_b = p["wih_cat"][:, :3 * G], p["wih_cat"][:, 3 * G:]
    bih_f, bih_b = p["bih_cat"][0, :3 * G], p["bih_cat"][0, 3 * G:]

    def gru_dir(seq, wih, bih, whh3, bhh3):
        h = jnp.zeros((N, G), jnp.float32)
        outs = []
        for t in range(seq.shape[0]):
            gi = hp(seq[t], wih) + bih
            gh_r = hp(h, whh3[0]) + bhh3[0]
            gh_z = hp(h, whh3[1]) + bhh3[1]
            gh_n = hp(h, whh3[2]) + bhh3[2]
            r = jax.nn.sigmoid(gi[:, :G] + gh_r)
            z = jax.nn.sigmoid(gi[:, G:2 * G] + gh_z)
            n = jnp.tanh(gi[:, 2 * G:] + r * gh_n)
            h = (1.0 - z) * n + z * h
            outs.append(h)
        return jnp.stack(outs)

    out_f = gru_dir(x_seq, wih_f, bih_f, p["whh"][0], p["bhh"][0])
    out_b = gru_dir(x_seq[::-1], wih_b, bih_b, p["whh"][1], p["bhh"][1])[::-1]
    gru_rows = jnp.concatenate([out_f, out_b], -1).transpose(1, 0, 2).reshape(R, 2 * G)

    y = hp(lat, p["out_w1a"]) + hp(gru_rows, p["out_w1b"]) + p["out_b1"]
    y = ln_relu(y, p["out_g1"], p["out_be1"])
    for j in range(p["out_wr"].shape[0]):
        y = ln_relu(hp(y, p["out_wr"][j]) + p["out_br"][j],
                    p["out_gr"][j], p["out_ber"][j])
    h = hp(y, p["head_wcat"]) + p["head_bcat"]
    amp = 2.0 * jnp.power(jax.nn.sigmoid(h[:, 0:1]), LOG10) + 1e-7
    sm = jax.nn.softmax(h[:, 1:1 + NH], axis=-1)
    noise = h[:, 1 + NH:]

    out = dict(x)
    out["amplitude"] = amp.reshape(B, V, Fr)
    out["harmonics"] = sm.reshape(B, V, Fr, NH).transpose(0, 1, 3, 2)
    out["noise"] = noise.reshape(B, V, Fr, NF).transpose(0, 1, 3, 2)
    return out


# --------------------------------------------------------------------------
if __name__ == "__main__":
    B, V, Fr = 2, 2, 16
    key = jax.random.PRNGKey(0)
    k_p, k_a, k_l, k_w = jax.random.split(key, 4)

    inputs = {
        "pitch": jax.random.uniform(k_p, (B, V, Fr), jnp.float32, 50.0, 500.0),
        "amplitude": jax.random.uniform(k_a, (B, V, Fr), jnp.float32, 0.0, 1.0),
        "loudness": jax.random.uniform(k_l, (B, 1, Fr), jnp.float32, -60.0, 0.0),
    }

    params = make_gtt_decoder_params(
        k_w, hidden=32, mlp_blocks=3, gru_features=16,
        harmonic_n_controls=8, noise_filters=9)

    out = gtt_decoder_forward(inputs, params)
    jax.block_until_ready(out)

    assert out["harmonics"].shape == (B, V, 8, Fr)
    assert out["amplitude"].shape == (B, V, Fr)
    assert out["noise"].shape == (B, V, 9, Fr)

    ref = _reference_forward(inputs, params)
    for name in ("harmonics", "amplitude", "noise"):
        err = float(jnp.max(jnp.abs(out[name] - ref[name])))
        assert err < 3e-2, (name, err)

    print("KERNEL_OK")
</pallas_src>

<mosaic_0001>
module attributes {stable_mosaic.version = 11 : i64} {
  func.func @_latent_gi_kernel(%arg0: i32, %arg1: memref<64x3xf32, #tpu.memory_space<vmem>>, %arg2: memref<3x32xf32, #tpu.memory_space<vmem>>, %arg3: memref<3x32xf32, #tpu.memory_space<vmem>>, %arg4: memref<3x32xf32, #tpu.memory_space<vmem>>, %arg5: memref<3x32xf32, #tpu.memory_space<vmem>>, %arg6: memref<3x2x32x32xf32, #tpu.memory_space<vmem>>, %arg7: memref<3x2x32xf32, #tpu.memory_space<vmem>>, %arg8: memref<3x2x32xf32, #tpu.memory_space<vmem>>, %arg9: memref<3x2x32xf32, #tpu.memory_space<vmem>>, %arg10: memref<96x96xf32, #tpu.memory_space<vmem>>, %arg11: memref<1x96xf32, #tpu.memory_space<vmem>>, %arg12: memref<64x96xf32, #tpu.memory_space<vmem>>, %arg13: memref<64x96xf32, #tpu.memory_space<vmem>>) attributes {dimension_semantics = [#tpu.dimension_semantics<parallel>], iteration_bounds = array<i64: 1>, scalar_prefetch = 0 : i64, scratch_operands = 0 : i64, tpu.core_type = #tpu.core_type<tc>, window_params = [{transform_indices = @transform_0, window_bounds = array<i64: 64, 3>}, {pipeline_mode = #tpu.pipeline_mode<synchronous>, transform_indices = @transform_1, window_bounds = array<i64: 3, 32>}, {pipeline_mode = #tpu.pipeline_mode<synchronous>, transform_indices = @transform_2, window_bounds = array<i64: 3, 32>}, {pipeline_mode = #tpu.pipeline_mode<synchronous>, transform_indices = @transform_3, window_bounds = array<i64: 3, 32>}, {pipeline_mode = #tpu.pipeline_mode<synchronous>, transform_indices = @transform_4, window_bounds = array<i64: 3, 32>}, {pipeline_mode = #tpu.pipeline_mode<synchronous>, transform_indices = @transform_5, window_bounds = array<i64: 3, 2, 32, 32>}, {pipeline_mode = #tpu.pipeline_mode<synchronous>, transform_indices = @transform_6, window_bounds = array<i64: 3, 2, 32>}, {pipeline_mode = #tpu.pipeline_mode<synchronous>, transform_indices = @transform_7, window_bounds = array<i64: 3, 2, 32>}, {pipeline_mode = #tpu.pipeline_mode<synchronous>, transform_indices = @transform_8, window_bounds = array<i64: 3, 2, 32>}, {pipeline_mode = #tpu.pipeline_mode<synchronous>, transform_indices = @transform_9, window_bounds = array<i64: 96, 96>}, {pipeline_mode = #tpu.pipeline_mode<synchronous>, transform_indices = @transform_10, window_bounds = array<i64: 1, 96>}, {transform_indices = @transform_11, window_bounds = array<i64: 64, 96>}, {transform_indices = @transform_12, window_bounds = array<i64: 64, 96>}]} {
    %c0 = arith.constant 0 : index
    %c0_0 = arith.constant 0 : index
    %0 = vector.load %arg1[%c0, %c0_0] : memref<64x3xf32, #tpu.memory_space<vmem>>, vector<64x3xf32>
    %1 = vector.extract_strided_slice %0 {offsets = [0, 0], sizes = [64, 1], strides = [1, 1]} : vector<64x3xf32> to vector<64x1xf32>
    %c0_1 = arith.constant 0 : index
    %c0_2 = arith.constant 0 : index
    %2 = vector.load %arg2[%c0_1, %c0_2] : memref<3x32xf32, #tpu.memory_space<vmem>>, vector<1x32xf32>
    %3 = vector.broadcast %1 : vector<64x1xf32> to vector<64x32xf32>
    %4 = vector.broadcast %2 : vector<1x32xf32> to vector<64x32xf32>
    %5 = arith.mulf %3, %4 : vector<64x32xf32>
    %c0_3 = arith.constant 0 : index
    %c0_4 = arith.constant 0 : index
    %6 = vector.load %arg3[%c0_3, %c0_4] : memref<3x32xf32, #tpu.memory_space<vmem>>, vector<1x32xf32>
    %7 = vector.broadcast %6 : vector<1x32xf32> to vector<64x32xf32>
    %8 = arith.addf %5, %7 : vector<64x32xf32>
    %c0_5 = arith.constant 0 : index
    %c0_6 = arith.constant 0 : index
    %9 = vector.load %arg4[%c0_5, %c0_6] : memref<3x32xf32, #tpu.memory_space<vmem>>, vector<1x32xf32>
    %c0_7 = arith.constant 0 : index
    %c0_8 = arith.constant 0 : index
    %10 = vector.load %arg5[%c0_7, %c0_8] : memref<3x32xf32, #tpu.memory_space<vmem>>, vector<1x32xf32>
    %cst = arith.constant dense<0.000000e+00> : vector<64xf32>
    %11 = vector.multi_reduction <add>, %8, %cst [1] : vector<64x32xf32> to vector<64xf32>
    %12 = vector.shape_cast %11 : vector<64xf32> to vector<64x1xf32>
    %cst_9 = arith.constant 3.200000e+01 : f32
    %13 = vector.broadcast %cst_9 : f32 to vector<64x1xf32>
    %14 = arith.divf %12, %13 : vector<64x1xf32>
    %15 = vector.broadcast %14 : vector<64x1xf32> to vector<64x32xf32>
    %16 = arith.subf %8, %15 : vector<64x32xf32>
    %17 = arith.mulf %16, %16 : vector<64x32xf32>
    %cst_10 = arith.constant dense<0.000000e+00> : vector<64xf32>
    %18 = vector.multi_reduction <add>, %17, %cst_10 [1] : vector<64x32xf32> to vector<64xf32>
    %19 = vector.shape_cast %18 : vector<64xf32> to vector<64x1xf32>
    %cst_11 = arith.constant 3.200000e+01 : f32
    %20 = vector.broadcast %cst_11 : f32 to vector<64x1xf32>
    %21 = arith.divf %19, %20 : vector<64x1xf32>
    %22 = vector.broadcast %14 : vector<64x1xf32> to vector<64x32xf32>
    %23 = arith.subf %8, %22 : vector<64x32xf32>
    %cst_12 = arith.constant 9.99999974E-6 : f32
    %24 = vector.broadcast %cst_12 : f32 to vector<64x1xf32>
    %25 = arith.addf %21, %24 : vector<64x1xf32>
    %26 = math.rsqrt %25 : vector<64x1xf32>
    %27 = vector.broadcast %26 : vector<64x1xf32> to vector<64x32xf32>
    %28 = arith.mulf %23, %27 : vector<64x32xf32>
    %29 = vector.broadcast %9 : vector<1x32xf32> to vector<64x32xf32>
    %30 = arith.mulf %28, %29 : vector<64x32xf32>
    %31 = vector.broadcast %10 : vector<1x32xf32> to vector<64x32xf32>
    %32 = arith.addf %30, %31 : vector<64x32xf32>
    %cst_13 = arith.constant 0.000000e+00 : f32
    %33 = vector.broadcast %cst_13 : f32 to vector<64x32xf32>
    %34 = arith.maximumf %32, %33 : vector<64x32xf32>
    %c0_14 = arith.constant 0 : index
    %c0_15 = arith.constant 0 : index
    %c0_16 = arith.constant 0 : index
    %c0_17 = arith.constant 0 : index
    %35 = vector.load %arg6[%c0_14, %c0_15, %c0_16, %c0_17] : memref<3x2x32x32xf32, #tpu.memory_space<vmem>>, vector<1x1x32x32xf32>
    %36 = vector.shape_cast %35 : vector<1x1x32x32xf32> to vector<32x32xf32>
    %cst_18 = arith.constant dense<0.000000e+00> : vector<64x32xf32>
    %37 = tpu.matmul %34, %36, %cst_18 {dimension_numbers = #tpu.dot_dimension_numbers<[1], [0], [0], [1], [0, 0, 1, 1], [], []>} : vector<64x32xf32>, vector<32x32xf32>, vector<64x32xf32> -> vector<64x32xf32>
    %c0_19 = arith.constant 0 : index
    %c0_20 = arith.constant 0 : index
    %c0_21 = arith.constant 0 : index
    %38 = vector.load %arg7[%c0_19, %c0_20, %c0_21] : memref<3x2x32xf32, #tpu.memory_space<vmem>>, vector<1x1x32xf32>
    %39 = vector.shape_cast %38 : vector<1x1x32xf32> to vector<32xf32>
    %40 = vector.shape_cast %39 : vector<32xf32> to vector<1x32xf32>
    %41 = vector.broadcast %40 : vector<1x32xf32> to vector<64x32xf32>
    %42 = arith.addf %37, %41 : vector<64x32xf32>
    %c0_22 = arith.constant 0 : index
    %c0_23 = arith.constant 0 : index
    %c0_24 = arith.constant 0 : index
    %43 = vector.load %arg8[%c0_22, %c0_23, %c0_24] : memref<3x2x32xf32, #tpu.memory_space<vmem>>, vector<1x1x32xf32>
    %44 = vector.shape_cast %43 : vector<1x1x32xf32> to vector<32xf32>
    %c0_25 = arith.constant 0 : index
    %c0_26 = arith.constant 0 : index
    %c0_27 = arith.constant 0 : index
    %45 = vector.load %arg9[%c0_25, %c0_26, %c0_27] : memref<3x2x32xf32, #tpu.memory_space<vmem>>, vector<1x1x32xf32>
    %46 = vector.shape_cast %45 : vector<1x1x32xf32> to vector<32xf32>
    %cst_28 = arith.constant dense<0.000000e+00> : vector<64xf32>
    %47 = vector.multi_reduction <add>, %42, %cst_28 [1] : vector<64x32xf32> to vector<64xf32>
    %48 = vector.shape_cast %47 : vector<64xf32> to vector<64x1xf32>
    %cst_29 = arith.constant 3.200000e+01 : f32
    %49 = vector.broadcast %cst_29 : f32 to vector<64x1xf32>
    %50 = arith.divf %48, %49 : vector<64x1xf32>
    %51 = vector.broadcast %50 : vector<64x1xf32> to vector<64x32xf32>
    %52 = arith.subf %42, %51 : vector<64x32xf32>
    %53 = arith.mulf %52, %52 : vector<64x32xf32>
    %cst_30 = arith.constant dense<0.000000e+00> : vector<64xf32>
    %54 = vector.multi_reduction <add>, %53, %cst_30 [1] : vector<64x32xf32> to vector<64xf32>
    %55 = vector.shape_cast %54 : vector<64xf32> to vector<64x1xf32>
    %cst_31 = arith.constant 3.200000e+01 : f32
    %56 = vector.broadcast %cst_31 : f32 to vector<64x1xf32>
    %57 = arith.divf %55, %56 : vector<64x1xf32>
    %58 = vector.broadcast %50 : vector<64x1xf32> to vector<64x32xf32>
    %59 = arith.subf %42, %58 : vector<64x32xf32>
    %cst_32 = arith.constant 9.99999974E-6 : f32
    %60 = vector.broadcast %cst_32 : f32 to vector<64x1xf32>
    %61 = arith.addf %57, %60 : vector<64x1xf32>
    %62 = math.rsqrt %61 : vector<64x1xf32>
    %63 = vector.broadcast %62 : vector<64x1xf32> to vector<64x32xf32>
    %64 = arith.mulf %59, %63 : vector<64x32xf32>
    %65 = vector.shape_cast %44 : vector<32xf32> to vector<1x32xf32>
    %66 = vector.broadcast %65 : vector<1x32xf32> to vector<64x32xf32>
    %67 = arith.mulf %64, %66 : vector<64x32xf32>
    %68 = vector.shape_cast %46 : vector<32xf32> to vector<1x32xf32>
    %69 = vector.broadcast %68 : vector<1x32xf32> to vector<64x32xf32>
    %70 = arith.addf %67, %69 : vector<64x32xf32>
    %cst_33 = arith.constant 0.000000e+00 : f32
    %71 = vector.broadcast %cst_33 : f32 to vector<64x32xf32>
    %72 = arith.maximumf %70, %71 : vector<64x32xf32>
    %c0_34 = arith.constant 0 : index
    %c1 = arith.constant 1 : index
    %c0_35 = arith.constant 0 : index
    %c0_36 = arith.constant 0 : index
    %73 = vector.load %arg6[%c0_34, %c1, %c0_35, %c0_36] : memref<3x2x32x32xf32, #tpu.memory_space<vmem>>, vector<1x1x32x32xf32>
    %74 = vector.shape_cast %73 : vector<1x1x32x32xf32> to vector<32x32xf32>
    %cst_37 = arith.constant dense<0.000000e+00> : vector<64x32xf32>
    %75 = tpu.matmul %72, %74, %cst_37 {dimension_numbers = #tpu.dot_dimension_numbers<[1], [0], [0], [1], [0, 0, 1, 1], [], []>} : vector<64x32xf32>, vector<32x32xf32>, vector<64x32xf32> -> vector<64x32xf32>
    %c0_38 = arith.constant 0 : index
    %c1_39 = arith.constant 1 : index
    %c0_40 = arith.constant 0 : index
    %76 = vector.load %arg7[%c0_38, %c1_39, %c0_40] : memref<3x2x32xf32, #tpu.memory_space<vmem>>, vector<1x1x32xf32>
    %77 = vector.shape_cast %76 : vector<1x1x32xf32> to vector<32xf32>
    %78 = vector.shape_cast %77 : vector<32xf32> to vector<1x32xf32>
    %79 = vector.broadcast %78 : vector<1x32xf32> to vector<64x32xf32>
    %80 = arith.addf %75, %79 : vector<64x32xf32>
    %c0_41 = arith.constant 0 : index
    %c1_42 = arith.constant 1 : index
    %c0_43 = arith.constant 0 : index
    %81 = vector.load %arg8[%c0_41, %c1_42, %c0_43] : memref<3x2x32xf32, #tpu.memory_space<vmem>>, vector<1x1x32xf32>
    %82 = vector.shape_cast %81 : vector<1x1x32xf32> to vector<32xf32>
    %c0_44 = arith.constant 0 : index
    %c1_45 = arith.constant 1 : index
    %c0_46 = arith.constant 0 : index
    %83 = vector.load %arg9[%c0_44, %c1_45, %c0_46] : memref<3x2x32xf32, #tpu.memory_space<vmem>>, vector<1x1x32xf32>
    %84 = vector.shape_cast %83 : vector<1x1x32xf32> to vector<32xf32>
    %cst_47 = arith.constant dense<0.000000e+00> : vector<64xf32>
    %85 = vector.multi_reduction <add>, %80, %cst_47 [1] : vector<64x32xf32> to vector<64xf32>
    %86 = vector.shape_cast %85 : vector<64xf32> to vector<64x1xf32>
    %cst_48 = arith.constant 3.200000e+01 : f32
    %87 = vector.broadcast %cst_48 : f32 to vector<64x1xf32>
    %88 = arith.divf %86, %87 : vector<64x1xf32>
    %89 = vector.broadcast %88 : vector<64x1xf32> to vector<64x32xf32>
    %90 = arith.subf %80, %89 : vector<64x32xf32>
    %91 = arith.mulf %90, %90 : vector<64x32xf32>
    %cst_49 = arith.constant dense<0.000000e+00> : vector<64xf32>
    %92 = vector.multi_reduction <add>, %91, %cst_49 [1] : vector<64x32xf32> to vector<64xf32>
    %93 = vector.shape_cast %92 : vector<64xf32> to vector<64x1xf32>
    %cst_50 = arith.constant 3.200000e+01 : f32
    %94 = vector.broadcast %cst_50 : f32 to vector<64x1xf32>
    %95 = arith.divf %93, %94 : vector<64x1xf32>
    %96 = vector.broadcast %88 : vector<64x1xf32> to vector<64x32xf32>
    %97 = arith.subf %80, %96 : vector<64x32xf32>
    %cst_51 = arith.constant 9.99999974E-6 : f32
    %98 = vector.broadcast %cst_51 : f32 to vector<64x1xf32>
    %99 = arith.addf %95, %98 : vector<64x1xf32>
    %100 = math.rsqrt %99 : vector<64x1xf32>
    %101 = vector.broadcast %100 : vector<64x1xf32> to vector<64x32xf32>
    %102 = arith.mulf %97, %101 : vector<64x32xf32>
    %103 = vector.shape_cast %82 : vector<32xf32> to vector<1x32xf32>
    %104 = vector.broadcast %103 : vector<1x32xf32> to vector<64x32xf32>
    %105 = arith.mulf %102, %104 : vector<64x32xf32>
    %106 = vector.shape_cast %84 : vector<32xf32> to vector<1x32xf32>
    %107 = vector.broadcast %106 : vector<1x32xf32> to vector<64x32xf32>
    %108 = arith.addf %105, %107 : vector<64x32xf32>
    %cst_52 = arith.constant 0.000000e+00 : f32
    %109 = vector.broadcast %cst_52 : f32 to vector<64x32xf32>
    %110 = arith.maximumf %108, %109 : vector<64x32xf32>
    %111 = vector.extract_strided_slice %0 {offsets = [0, 1], sizes = [64, 1], strides = [1, 1]} : vector<64x3xf32> to vector<64x1xf32>
    %c1_53 = arith.constant 1 : index
    %c0_54 = arith.constant 0 : index
    %112 = vector.load %arg2[%c1_53, %c0_54] : memref<3x32xf32, #tpu.memory_space<vmem>>, vector<1x32xf32>
    %113 = vector.broadcast %111 : vector<64x1xf32> to vector<64x32xf32>
    %114 = vector.broadcast %112 : vector<1x32xf32> to vector<64x32xf32>
    %115 = arith.mulf %113, %114 : vector<64x32xf32>
    %c1_55 = arith.constant 1 : index
    %c0_56 = arith.constant 0 : index
    %116 = vector.load %arg3[%c1_55, %c0_56] : memref<3x32xf32, #tpu.memory_space<vmem>>, vector<1x32xf32>
    %117 = vector.broadcast %116 : vector<1x32xf32> to vector<64x32xf32>
    %118 = arith.addf %115, %117 : vector<64x32xf32>
    %c1_57 = arith.constant 1 : index
    %c0_58 = arith.constant 0 : index
    %119 = vector.load %arg4[%c1_57, %c0_58] : memref<3x32xf32, #tpu.memory_space<vmem>>, vector<1x32xf32>
    %c1_59 = arith.constant 1 : index
    %c0_60 = arith.constant 0 : index
    %120 = vector.load %arg5[%c1_59, %c0_60] : memref<3x32xf32, #tpu.memory_space<vmem>>, vector<1x32xf32>
    %cst_61 = arith.constant dense<0.000000e+00> : vector<64xf32>
    %121 = vector.multi_reduction <add>, %118, %cst_61 [1] : vector<64x32xf32> to vector<64xf32>
    %122 = vector.shape_cast %121 : vector<64xf32> to vector<64x1xf32>
    %cst_62 = arith.constant 3.200000e+01 : f32
    %123 = vector.broadcast %cst_62 : f32 to vector<64x1xf32>
    %124 = arith.divf %122, %123 : vector<64x1xf32>
    %125 = vector.broadcast %124 : vector<64x1xf32> to vector<64x32xf32>
    %126 = arith.subf %118, %125 : vector<64x32xf32>
    %127 = arith.mulf %126, %126 : vector<64x32xf32>
    %cst_63 = arith.constant dense<0.000000e+00> : vector<64xf32>
    %128 = vector.multi_reduction <add>, %127, %cst_63 [1] : vector<64x32xf32> to vector<64xf32>
    %129 = vector.shape_cast %128 : vector<64xf32> to vector<64x1xf32>
    %cst_64 = arith.constant 3.200000e+01 : f32
    %130 = vector.broadcast %cst_64 : f32 to vector<64x1xf32>
    %131 = arith.divf %129, %130 : vector<64x1xf32>
    %132 = vector.broadcast %124 : vector<64x1xf32> to vector<64x32xf32>
    %133 = arith.subf %118, %132 : vector<64x32xf32>
    %cst_65 = arith.constant 9.99999974E-6 : f32
    %134 = vector.broadcast %cst_65 : f32 to vector<64x1xf32>
    %135 = arith.addf %131, %134 : vector<64x1xf32>
    %136 = math.rsqrt %135 : vector<64x1xf32>
    %137 = vector.broadcast %136 : vector<64x1xf32> to vector<64x32xf32>
    %138 = arith.mulf %133, %137 : vector<64x32xf32>
    %139 = vector.broadcast %119 : vector<1x32xf32> to vector<64x32xf32>
    %140 = arith.mulf %138, %139 : vector<64x32xf32>
    %141 = vector.broadcast %120 : vector<1x32xf32> to vector<64x32xf32>
    %142 = arith.addf %140, %141 : vector<64x32xf32>
    %cst_66 = arith.constant 0.000000e+00 : f32
    %143 = vector.broadcast %cst_66 : f32 to vector<64x32xf32>
    %144 = arith.maximumf %142, %143 : vector<64x32xf32>
    %c1_67 = arith.constant 1 : index
    %c0_68 = arith.constant 0 : index
    %c0_69 = arith.constant 0 : index
    %c0_70 = arith.constant 0 : index
    %145 = vector.load %arg6[%c1_67, %c0_68, %c0_69, %c0_70] : memref<3x2x32x32xf32, #tpu.memory_space<vmem>>, vector<1x1x32x32xf32>
    %146 = vector.shape_cast %145 : vector<1x1x32x32xf32> to vector<32x32xf32>
    %cst_71 = arith.constant dense<0.000000e+00> : vector<64x32xf32>
    %147 = tpu.matmul %144, %146, %cst_71 {dimension_numbers = #tpu.dot_dimension_numbers<[1], [0], [0], [1], [0, 0, 1, 1], [], []>} : vector<64x32xf32>, vector<32x32xf32>, vector<64x32xf32> -> vector<64x32xf32>
    %c1_72 = arith.constant 1 : index
    %c0_73 = arith.constant 0 : index
    %c0_74 = arith.constant 0 : index
    %148 = vector.load %arg7[%c1_72, %c0_73, %c0_74] : memref<3x2x32xf32, #tpu.memory_space<vmem>>, vector<1x1x32xf32>
    %149 = vector.shape_cast %148 : vector<1x1x32xf32> to vector<32xf32>
    %150 = vector.shape_cast %149 : vector<32xf32> to vector<1x32xf32>
    %151 = vector.broadcast %150 : vector<1x32xf32> to vector<64x32xf32>
    %152 = arith.addf %147, %151 : vector<64x32xf32>
    %c1_75 = arith.constant 1 : index
    %c0_76 = arith.constant 0 : index
    %c0_77 = arith.constant 0 : index
    %153 = vector.load %arg8[%c1_75, %c0_76, %c0_77] : memref<3x2x32xf32, #tpu.memory_space<vmem>>, vector<1x1x32xf32>
    %154 = vector.shape_cast %153 : vector<1x1x32xf32> to vector<32xf32>
    %c1_78 = arith.constant 1 : index
    %c0_79 = arith.constant 0 : index
    %c0_80 = arith.constant 0 : index
    %155 = vector.load %arg9[%c1_78, %c0_79, %c0_80] : memref<3x2x32xf32, #tpu.memory_space<vmem>>, vector<1x1x32xf32>
    %156 = vector.shape_cast %155 : vector<1x1x32xf32> to vector<32xf32>
    %cst_81 = arith.constant dense<0.000000e+00> : vector<64xf32>
    %157 = vector.multi_reduction <add>, %152, %cst_81 [1] : vector<64x32xf32> to vector<64xf32>
    %158 = vector.shape_cast %157 : vector<64xf32> to vector<64x1xf32>
    %cst_82 = arith.constant 3.200000e+01 : f32
    %159 = vector.broadcast %cst_82 : f32 to vector<64x1xf32>
    %160 = arith.divf %158, %159 : vector<64x1xf32>
    %161 = vector.broadcast %160 : vector<64x1xf32> to vector<64x32xf32>
    %162 = arith.subf %152, %161 : vector<64x32xf32>
    %163 = arith.mulf %162, %162 : vector<64x32xf32>
    %cst_83 = arith.constant dense<0.000000e+00> : vector<64xf32>
    %164 = vector.multi_reduction <add>, %163, %cst_83 [1] : vector<64x32xf32> to vector<64xf32>
    %165 = vector.shape_cast %164 : vector<64xf32> to vector<64x1xf32>
    %cst_84 = arith.constant 3.200000e+01 : f32
    %166 = vector.broadcast %cst_84 : f32 to vector<64x1xf32>
    %167 = arith.divf %165, %166 : vector<64x1xf32>
    %168 = vector.broadcast %160 : vector<64x1xf32> to vector<64x32xf32>
    %169 = arith.subf %152, %168 : vector<64x32xf32>
    %cst_85 = arith.constant 9.99999974E-6 : f32
    %170 = vector.broadcast %cst_85 : f32 to vector<64x1xf32>
    %171 = arith.addf %167, %170 : vector<64x1xf32>
    %172 = math.rsqrt %171 : vector<64x1xf32>
    %173 = vector.broadcast %172 : vector<64x1xf32> to vector<64x32xf32>
    %174 = arith.mulf %169, %173 : vector<64x32xf32>
    %175 = vector.shape_cast %154 : vector<32xf32> to vector<1x32xf32>
    %176 = vector.broadcast %175 : vector<1x32xf32> to vector<64x32xf32>
    %177 = arith.mulf %174, %176 : vector<64x32xf32>
    %178 = vector.shape_cast %156 : vector<32xf32> to vector<1x32xf32>
    %179 = vector.broadcast %178 : vector<1x32xf32> to vector<64x32xf32>
    %180 = arith.addf %177, %179 : vector<64x32xf32>
    %cst_86 = arith.constant 0.000000e+00 : f32
    %181 = vector.broadcast %cst_86 : f32 to vector<64x32xf32>
    %182 = arith.maximumf %180, %181 : vector<64x32xf32>
    %c1_87 = arith.constant 1 : index
    %c1_88 = arith.constant 1 : index
    %c0_89 = arith.constant 0 : index
    %c0_90 = arith.constant 0 : index
    %183 = vector.load %arg6[%c1_87, %c1_88, %c0_89, %c0_90] : memref<3x2x32x32xf32, #tpu.memory_space<vmem>>, vector<1x1x32x32xf32>
    %184 = vector.shape_cast %183 : vector<1x1x32x32xf32> to vector<32x32xf32>
    %cst_91 = arith.constant dense<0.000000e+00> : vector<64x32xf32>
    %185 = tpu.matmul %182, %184, %cst_91 {dimension_numbers = #tpu.dot_dimension_numbers<[1], [0], [0], [1], [0, 0, 1, 1], [], []>} : vector<64x32xf32>, vector<32x32xf32>, vector<64x32xf32> -> vector<64x32xf32>
    %c1_92 = arith.constant 1 : index
    %c1_93 = arith.constant 1 : index
    %c0_94 = arith.constant 0 : index
    %186 = vector.load %arg7[%c1_92, %c1_93, %c0_94] : memref<3x2x32xf32, #tpu.memory_space<vmem>>, vector<1x1x32xf32>
    %187 = vector.shape_cast %186 : vector<1x1x32xf32> to vector<32xf32>
    %188 = vector.shape_cast %187 : vector<32xf32> to vector<1x32xf32>
    %189 = vector.broadcast %188 : vector<1x32xf32> to vector<64x32xf32>
    %190 = arith.addf %185, %189 : vector<64x32xf32>
    %c1_95 = arith.constant 1 : index
    %c1_96 = arith.constant 1 : index
    %c0_97 = arith.constant 0 : index
    %191 = vector.load %arg8[%c1_95, %c1_96, %c0_97] : memref<3x2x32xf32, #tpu.memory_space<vmem>>, vector<1x1x32xf32>
    %192 = vector.shape_cast %191 : vector<1x1x32xf32> to vector<32xf32>
    %c1_98 = arith.constant 1 : index
    %c1_99 = arith.constant 1 : index
    %c0_100 = arith.constant 0 : index
    %193 = vector.load %arg9[%c1_98, %c1_99, %c0_100] : memref<3x2x32xf32, #tpu.memory_space<vmem>>, vector<1x1x32xf32>
    %194 = vector.shape_cast %193 : vector<1x1x32xf32> to vector<32xf32>
    %cst_101 = arith.constant dense<0.000000e+00> : vector<64xf32>
    %195 = vector.multi_reduction <add>, %190, %cst_101 [1] : vector<64x32xf32> to vector<64xf32>
    %196 = vector.shape_cast %195 : vector<64xf32> to vector<64x1xf32>
    %cst_102 = arith.constant 3.200000e+01 : f32
    %197 = vector.broadcast %cst_102 : f32 to vector<64x1xf32>
    %198 = arith.divf %196, %197 : vector<64x1xf32>
    %199 = vector.broadcast %198 : vector<64x1xf32> to vector<64x32xf32>
    %200 = arith.subf %190, %199 : vector<64x32xf32>
    %201 = arith.mulf %200, %200 : vector<64x32xf32>
    %cst_103 = arith.constant dense<0.000000e+00> : vector<64xf32>
    %202 = vector.multi_reduction <add>, %201, %cst_103 [1] : vector<64x32xf32> to vector<64xf32>
    %203 = vector.shape_cast %202 : vector<64xf32> to vector<64x1xf32>
    %cst_104 = arith.constant 3.200000e+01 : f32
    %204 = vector.broadcast %cst_104 : f32 to vector<64x1xf32>
    %205 = arith.divf %203, %204 : vector<64x1xf32>
    %206 = vector.broadcast %198 : vector<64x1xf32> to vector<64x32xf32>
    %207 = arith.subf %190, %206 : vector<64x32xf32>
    %cst_105 = arith.constant 9.99999974E-6 : f32
    %208 = vector.broadcast %cst_105 : f32 to vector<64x1xf32>
    %209 = arith.addf %205, %208 : vector<64x1xf32>
    %210 = math.rsqrt %209 : vector<64x1xf32>
    %211 = vector.broadcast %210 : vector<64x1xf32> to vector<64x32xf32>
    %212 = arith.mulf %207, %211 : vector<64x32xf32>
    %213 = vector.shape_cast %192 : vector<32xf32> to vector<1x32xf32>
    %214 = vector.broadcast %213 : vector<1x32xf32> to vector<64x32xf32>
    %215 = arith.mulf %212, %214 : vector<64x32xf32>
    %216 = vector.shape_cast %194 : vector<32xf32> to vector<1x32xf32>
    %217 = vector.broadcast %216 : vector<1x32xf32> to vector<64x32xf32>
    %218 = arith.addf %215, %217 : vector<64x32xf32>
    %cst_106 = arith.constant 0.000000e+00 : f32
    %219 = vector.broadcast %cst_106 : f32 to vector<64x32xf32>
    %220 = arith.maximumf %218, %219 : vector<64x32xf32>
    %221 = vector.extract_strided_slice %0 {offsets = [0, 2], sizes = [64, 1], strides = [1, 1]} : vector<64x3xf32> to vector<64x1xf32>
    %c2 = arith.constant 2 : index
    %c0_107 = arith.constant 0 : index
    %222 = vector.load %arg2[%c2, %c0_107] : memref<3x32xf32, #tpu.memory_space<vmem>>, vector<1x32xf32>
    %223 = vector.broadcast %221 : vector<64x1xf32> to vector<64x32xf32>
    %224 = vector.broadcast %222 : vector<1x32xf32> to vector<64x32xf32>
    %225 = arith.mulf %223, %224 : vector<64x32xf32>
    %c2_108 = arith.constant 2 : index
    %c0_109 = arith.constant 0 : index
    %226 = vector.load %arg3[%c2_108, %c0_109] : memref<3x32xf32, #tpu.memory_space<vmem>>, vector<1x32xf32>
    %227 = vector.broadcast %226 : vector<1x32xf32> to vector<64x32xf32>
    %228 = arith.addf %225, %227 : vector<64x32xf32>
    %c2_110 = arith.constant 2 : index
    %c0_111 = arith.constant 0 : index
    %229 = vector.load %arg4[%c2_110, %c0_111] : memref<3x32xf32, #tpu.memory_space<vmem>>, vector<1x32xf32>
    %c2_112 = arith.constant 2 : index
    %c0_113 = arith.constant 0 : index
    %230 = vector.load %arg5[%c2_112, %c0_113] : memref<3x32xf32, #tpu.memory_space<vmem>>, vector<1x32xf32>
    %cst_114 = arith.constant dense<0.000000e+00> : vector<64xf32>
    %231 = vector.multi_reduction <add>, %228, %cst_114 [1] : vector<64x32xf32> to vector<64xf32>
    %232 = vector.shape_cast %231 : vector<64xf32> to vector<64x1xf32>
    %cst_115 = arith.constant 3.200000e+01 : f32
    %233 = vector.broadcast %cst_115 : f32 to vector<64x1xf32>
    %234 = arith.divf %232, %233 : vector<64x1xf32>
    %235 = vector.broadcast %234 : vector<64x1xf32> to vector<64x32xf32>
    %236 = arith.subf %228, %235 : vector<64x32xf32>
    %237 = arith.mulf %236, %236 : vector<64x32xf32>
    %cst_116 = arith.constant dense<0.000000e+00> : vector<64xf32>
    %238 = vector.multi_reduction <add>, %237, %cst_116 [1] : vector<64x32xf32> to vector<64xf32>
    %239 = vector.shape_cast %238 : vector<64xf32> to vector<64x1xf32>
    %cst_117 = arith.constant 3.200000e+01 : f32
    %240 = vector.broadcast %cst_117 : f32 to vector<64x1xf32>
    %241 = arith.divf %239, %240 : vector<64x1xf32>
    %242 = vector.broadcast %234 : vector<64x1xf32> to vector<64x32xf32>
    %243 = arith.subf %228, %242 : vector<64x32xf32>
    %cst_118 = arith.constant 9.99999974E-6 : f32
    %244 = vector.broadcast %cst_118 : f32 to vector<64x1xf32>
    %245 = arith.addf %241, %244 : vector<64x1xf32>
    %246 = math.rsqrt %245 : vector<64x1xf32>
    %247 = vector.broadcast %246 : vector<64x1xf32> to vector<64x32xf32>
    %248 = arith.mulf %243, %247 : vector<64x32xf32>
    %249 = vector.broadcast %229 : vector<1x32xf32> to vector<64x32xf32>
    %250 = arith.mulf %248, %249 : vector<64x32xf32>
    %251 = vector.broadcast %230 : vector<1x32xf32> to vector<64x32xf32>
    %252 = arith.addf %250, %251 : vector<64x32xf32>
    %cst_119 = arith.constant 0.000000e+00 : f32
    %253 = vector.broadcast %cst_119 : f32 to vector<64x32xf32>
    %254 = arith.maximumf %252, %253 : vector<64x32xf32>
    %c2_120 = arith.constant 2 : index
    %c0_121 = arith.constant 0 : index
    %c0_122 = arith.constant 0 : index
    %c0_123 = arith.constant 0 : index
    %255 = vector.load %arg6[%c2_120, %c0_121, %c0_122, %c0_123] : memref<3x2x32x32xf32, #tpu.memory_space<vmem>>, vector<1x1x32x32xf32>
    %256 = vector.shape_cast %255 : vector<1x1x32x32xf32> to vector<32x32xf32>
    %cst_124 = arith.constant dense<0.000000e+00> : vector<64x32xf32>
    %257 = tpu.matmul %254, %256, %cst_124 {dimension_numbers = #tpu.dot_dimension_numbers<[1], [0], [0], [1], [0, 0, 1, 1], [], []>} : vector<64x32xf32>, vector<32x32xf32>, vector<64x32xf32> -> vector<64x32xf32>
    %c2_125 = arith.constant 2 : index
    %c0_126 = arith.constant 0 : index
    %c0_127 = arith.constant 0 : index
    %258 = vector.load %arg7[%c2_125, %c0_126, %c0_127] : memref<3x2x32xf32, #tpu.memory_space<vmem>>, vector<1x1x32xf32>
    %259 = vector.shape_cast %258 : vector<1x1x32xf32> to vector<32xf32>
    %260 = vector.shape_cast %259 : vector<32xf32> to vector<1x32xf32>
    %261 = vector.broadcast %260 : vector<1x32xf32> to vector<64x32xf32>
    %262 = arith.addf %257, %261 : vector<64x32xf32>
    %c2_128 = arith.constant 2 : index
    %c0_129 = arith.constant 0 : index
    %c0_130 = arith.constant 0 : index
    %263 = vector.load %arg8[%c2_128, %c0_129, %c0_130] : memref<3x2x32xf32, #tpu.memory_space<vmem>>, vector<1x1x32xf32>
    %264 = vector.shape_cast %263 : vector<1x1x32xf32> to vector<32xf32>
    %c2_131 = arith.constant 2 : index
    %c0_132 = arith.constant 0 : index
    %c0_133 = arith.constant 0 : index
    %265 = vector.load %arg9[%c2_131, %c0_132, %c0_133] : memref<3x2x32xf32, #tpu.memory_space<vmem>>, vector<1x1x32xf32>
    %266 = vector.shape_cast %265 : vector<1x1x32xf32> to vector<32xf32>
    %cst_134 = arith.constant dense<0.000000e+00> : vector<64xf32>
    %267 = vector.multi_reduction <add>, %262, %cst_134 [1] : vector<64x32xf32> to vector<64xf32>
    %268 = vector.shape_cast %267 : vector<64xf32> to vector<64x1xf32>
    %cst_135 = arith.constant 3.200000e+01 : f32
    %269 = vector.broadcast %cst_135 : f32 to vector<64x1xf32>
    %270 = arith.divf %268, %269 : vector<64x1xf32>
    %271 = vector.broadcast %270 : vector<64x1xf32> to vector<64x32xf32>
    %272 = arith.subf %262, %271 : vector<64x32xf32>
    %273 = arith.mulf %272, %272 : vector<64x32xf32>
    %cst_136 = arith.constant dense<0.000000e+00> : vector<64xf32>
    %274 = vector.multi_reduction <add>, %273, %cst_136 [1] : vector<64x32xf32> to vector<64xf32>
    %275 = vector.shape_cast %274 : vector<64xf32> to vector<64x1xf32>
    %cst_137 = arith.constant 3.200000e+01 : f32
    %276 = vector.broadcast %cst_137 : f32 to vector<64x1xf32>
    %277 = arith.divf %275, %276 : vector<64x1xf32>
    %278 = vector.broadcast %270 : vector<64x1xf32> to vector<64x32xf32>
    %279 = arith.subf %262, %278 : vector<64x32xf32>
    %cst_138 = arith.constant 9.99999974E-6 : f32
    %280 = vector.broadcast %cst_138 : f32 to vector<64x1xf32>
    %281 = arith.addf %277, %280 : vector<64x1xf32>
    %282 = math.rsqrt %281 : vector<64x1xf32>
    %283 = vector.broadcast %282 : vector<64x1xf32> to vector<64x32xf32>
    %284 = arith.mulf %279, %283 : vector<64x32xf32>
    %285 = vector.shape_cast %264 : vector<32xf32> to vector<1x32xf32>
    %286 = vector.broadcast %285 : vector<1x32xf32> to vector<64x32xf32>
    %287 = arith.mulf %284, %286 : vector<64x32xf32>
    %288 = vector.shape_cast %266 : vector<32xf32> to vector<1x32xf32>
    %289 = vector.broadcast %288 : vector<1x32xf32> to vector<64x32xf32>
    %290 = arith.addf %287, %289 : vector<64x32xf32>
    %cst_139 = arith.constant 0.000000e+00 : f32
    %291 = vector.broadcast %cst_139 : f32 to vector<64x32xf32>
    %292 = arith.maximumf %290, %291 : vector<64x32xf32>
    %c2_140 = arith.constant 2 : index
    %c1_141 = arith.constant 1 : index
    %c0_142 = arith.constant 0 : index
    %c0_143 = arith.constant 0 : index
    %293 = vector.load %arg6[%c2_140, %c1_141, %c0_142, %c0_143] : memref<3x2x32x32xf32, #tpu.memory_space<vmem>>, vector<1x1x32x32xf32>
    %294 = vector.shape_cast %293 : vector<1x1x32x32xf32> to vector<32x32xf32>
    %cst_144 = arith.constant dense<0.000000e+00> : vector<64x32xf32>
    %295 = tpu.matmul %292, %294, %cst_144 {dimension_numbers = #tpu.dot_dimension_numbers<[1], [0], [0], [1], [0, 0, 1, 1], [], []>} : vector<64x32xf32>, vector<32x32xf32>, vector<64x32xf32> -> vector<64x32xf32>
    %c2_145 = arith.constant 2 : index
    %c1_146 = arith.constant 1 : index
    %c0_147 = arith.constant 0 : index
    %296 = vector.load %arg7[%c2_145, %c1_146, %c0_147] : memref<3x2x32xf32, #tpu.memory_space<vmem>>, vector<1x1x32xf32>
    %297 = vector.shape_cast %296 : vector<1x1x32xf32> to vector<32xf32>
    %298 = vector.shape_cast %297 : vector<32xf32> to vector<1x32xf32>
    %299 = vector.broadcast %298 : vector<1x32xf32> to vector<64x32xf32>
    %300 = arith.addf %295, %299 : vector<64x32xf32>
    %c2_148 = arith.constant 2 : index
    %c1_149 = arith.constant 1 : index
    %c0_150 = arith.constant 0 : index
    %301 = vector.load %arg8[%c2_148, %c1_149, %c0_150] : memref<3x2x32xf32, #tpu.memory_space<vmem>>, vector<1x1x32xf32>
    %302 = vector.shape_cast %301 : vector<1x1x32xf32> to vector<32xf32>
    %c2_151 = arith.constant 2 : index
    %c1_152 = arith.constant 1 : index
    %c0_153 = arith.constant 0 : index
    %303 = vector.load %arg9[%c2_151, %c1_152, %c0_153] : memref<3x2x32xf32, #tpu.memory_space<vmem>>, vector<1x1x32xf32>
    %304 = vector.shape_cast %303 : vector<1x1x32xf32> to vector<32xf32>
    %cst_154 = arith.constant dense<0.000000e+00> : vector<64xf32>
    %305 = vector.multi_reduction <add>, %300, %cst_154 [1] : vector<64x32xf32> to vector<64xf32>
    %306 = vector.shape_cast %305 : vector<64xf32> to vector<64x1xf32>
    %cst_155 = arith.constant 3.200000e+01 : f32
    %307 = vector.broadcast %cst_155 : f32 to vector<64x1xf32>
    %308 = arith.divf %306, %307 : vector<64x1xf32>
    %309 = vector.broadcast %308 : vector<64x1xf32> to vector<64x32xf32>
    %310 = arith.subf %300, %309 : vector<64x32xf32>
    %311 = arith.mulf %310, %310 : vector<64x32xf32>
    %cst_156 = arith.constant dense<0.000000e+00> : vector<64xf32>
    %312 = vector.multi_reduction <add>, %311, %cst_156 [1] : vector<64x32xf32> to vector<64xf32>
    %313 = vector.shape_cast %312 : vector<64xf32> to vector<64x1xf32>
    %cst_157 = arith.constant 3.200000e+01 : f32
    %314 = vector.broadcast %cst_157 : f32 to vector<64x1xf32>
    %315 = arith.divf %313, %314 : vector<64x1xf32>
    %316 = vector.broadcast %308 : vector<64x1xf32> to vector<64x32xf32>
    %317 = arith.subf %300, %316 : vector<64x32xf32>
    %cst_158 = arith.constant 9.99999974E-6 : f32
    %318 = vector.broadcast %cst_158 : f32 to vector<64x1xf32>
    %319 = arith.addf %315, %318 : vector<64x1xf32>
    %320 = math.rsqrt %319 : vector<64x1xf32>
    %321 = vector.broadcast %320 : vector<64x1xf32> to vector<64x32xf32>
    %322 = arith.mulf %317, %321 : vector<64x32xf32>
    %323 = vector.shape_cast %302 : vector<32xf32> to vector<1x32xf32>
    %324 = vector.broadcast %323 : vector<1x32xf32> to vector<64x32xf32>
    %325 = arith.mulf %322, %324 : vector<64x32xf32>
    %326 = vector.shape_cast %304 : vector<32xf32> to vector<1x32xf32>
    %327 = vector.broadcast %326 : vector<1x32xf32> to vector<64x32xf32>
    %328 = arith.addf %325, %327 : vector<64x32xf32>
    %cst_159 = arith.constant 0.000000e+00 : f32
    %329 = vector.broadcast %cst_159 : f32 to vector<64x32xf32>
    %330 = arith.maximumf %328, %329 : vector<64x32xf32>
    %331 = tpu.concatenate %110, %220, %330 in 1 : vector<64x32xf32>, vector<64x32xf32>, vector<64x32xf32> -> vector<64x96xf32>
    %c0_160 = arith.constant 0 : index
    %c0_161 = arith.constant 0 : index
    %332 = vector.load %arg12[%c0_160, %c0_161] : memref<64x96xf32, #tpu.memory_space<vmem>>, vector<64x96xf32>
    tpu.vector_store %arg12[%c0_160, %c0_161], %331 {strides = array<i32>} : memref<64x96xf32, #tpu.memory_space<vmem>>, vector<64x96xf32>,
    %c0_162 = arith.constant 0 : index
    %c0_163 = arith.constant 0 : index
    %333 = vector.load %arg10[%c0_162, %c0_163] : memref<96x96xf32, #tpu.memory_space<vmem>>, vector<96x96xf32>
    %cst_164 = arith.constant dense<0.000000e+00> : vector<64x96xf32>
    %334 = tpu.matmul %331, %333, %cst_164 {dimension_numbers = #tpu.dot_dimension_numbers<[1], [0], [0], [1], [0, 0, 1, 1], [], []>} : vector<64x96xf32>, vector<96x96xf32>, vector<64x96xf32> -> vector<64x96xf32>
    %c0_165 = arith.constant 0 : index
    %c0_166 = arith.constant 0 : index
    %335 = vector.load %arg11[%c0_165, %c0_166] : memref<1x96xf32, #tpu.memory_space<vmem>>, vector<1x96xf32>
    %336 = vector.broadcast %335 : vector<1x96xf32> to vector<64x96xf32>
    %337 = arith.addf %334, %336 : vector<64x96xf32>
    %c0_167 = arith.constant 0 : index
    %c0_168 = arith.constant 0 : index
    %338 = vector.load %arg13[%c0_167, %c0_168] : memref<64x96xf32, #tpu.memory_space<vmem>>, vector<64x96xf32>
    tpu.vector_store %arg13[%c0_167, %c0_168], %337 {strides = array<i32>} : memref<64x96xf32, #tpu.memory_space<vmem>>, vector<64x96xf32>,
    return
  }
  func.func @transform_0(%arg0: i32) -> (i32, i32) {
    %c0_i32 = arith.constant 0 : i32
    %c0_i32_0 = arith.constant 0 : i32
    return %arg0, %c0_i32 : i32, i32
  }
  func.func @transform_1(%arg0: i32) -> (i32, i32) {
    %c0_i32 = arith.constant 0 : i32
    %c0_i32_0 = arith.constant 0 : i32
    %c0_i32_1 = arith.constant 0 : i32
    return %c0_i32, %c0_i32_0 : i32, i32
  }
  func.func @transform_2(%arg0: i32) -> (i32, i32) {
    %c0_i32 = arith.constant 0 : i32
    %c0_i32_0 = arith.constant 0 : i32
    %c0_i32_1 = arith.constant 0 : i32
    return %c0_i32, %c0_i32_0 : i32, i32
  }
  func.func @transform_3(%arg0: i32) -> (i32, i32) {
    %c0_i32 = arith.constant 0 : i32
    %c0_i32_0 = arith.constant 0 : i32
    %c0_i32_1 = arith.constant 0 : i32
    return %c0_i32, %c0_i32_0 : i32, i32
  }
  func.func @transform_4(%arg0: i32) -> (i32, i32) {
    %c0_i32 = arith.constant 0 : i32
    %c0_i32_0 = arith.constant 0 : i32
    %c0_i32_1 = arith.constant 0 : i32
    return %c0_i32, %c0_i32_0 : i32, i32
  }
  func.func @transform_5(%arg0: i32) -> (i32, i32, i32, i32) {
    %c0_i32 = arith.constant 0 : i32
    %c0_i32_0 = arith.constant 0 : i32
    %c0_i32_1 = arith.constant 0 : i32
    %c0_i32_2 = arith.constant 0 : i32
    %c0_i32_3 = arith.constant 0 : i32
    return %c0_i32, %c0_i32_0, %c0_i32_1, %c0_i32_2 : i32, i32, i32, i32
  }
  func.func @transform_6(%arg0: i32) -> (i32, i32, i32) {
    %c0_i32 = arith.constant 0 : i32
    %c0_i32_0 = arith.constant 0 : i32
    %c0_i32_1 = arith.constant 0 : i32
    %c0_i32_2 = arith.constant 0 : i32
    return %c0_i32, %c0_i32_0, %c0_i32_1 : i32, i32, i32
  }
  func.func @transform_7(%arg0: i32) -> (i32, i32, i32) {
    %c0_i32 = arith.constant 0 : i32
    %c0_i32_0 = arith.constant 0 : i32
    %c0_i32_1 = arith.constant 0 : i32
    %c0_i32_2 = arith.constant 0 : i32
    return %c0_i32, %c0_i32_0, %c0_i32_1 : i32, i32, i32
  }
  func.func @transform_8(%arg0: i32) -> (i32, i32, i32) {
    %c0_i32 = arith.constant 0 : i32
    %c0_i32_0 = arith.constant 0 : i32
    %c0_i32_1 = arith.constant 0 : i32
    %c0_i32_2 = arith.constant 0 : i32
    return %c0_i32, %c0_i32_0, %c0_i32_1 : i32, i32, i32
  }
  func.func @transform_9(%arg0: i32) -> (i32, i32) {
    %c0_i32 = arith.constant 0 : i32
    %c0_i32_0 = arith.constant 0 : i32
    %c0_i32_1 = arith.constant 0 : i32
    return %c0_i32, %c0_i32_0 : i32, i32
  }
  func.func @transform_10(%arg0: i32) -> (i32, i32) {
    %c0_i32 = arith.constant 0 : i32
    %c0_i32_0 = arith.constant 0 : i32
    %c0_i32_1 = arith.constant 0 : i32
    return %c0_i32, %c0_i32_0 : i32, i32
  }
  func.func @transform_11(%arg0: i32) -> (i32, i32) {
    %c0_i32 = arith.constant 0 : i32
    %c0_i32_0 = arith.constant 0 : i32
    return %arg0, %c0_i32 : i32, i32
  }
  func.func @transform_12(%arg0: i32) -> (i32, i32) {
    %c0_i32 = arith.constant 0 : i32
    %c0_i32_0 = arith.constant 0 : i32
    return %arg0, %c0_i32 : i32, i32
  }
}

</mosaic_0001>

<bundles_post_ra>
// kernel: tpu_custom_call.1
= control target key start
LH: loop header
LB: loop body
LE: loop exit
PB: predicated region body
PF: predicated region fallthrough
CT: control target
= control target key end

     0   :  { %18 = vsyncpa [#allocation3], 0  ;;  %s4474_s0 = inlined_call_operand.vmem [shape: f32[64,3], index: 0, kind: input, shape index: {}]   ;;  %s4475_s1 = inlined_call_operand.vmem [shape: f32[3,32], index: 1, kind: input, shape index: {}]   ;;  %s4476_s2 = inlined_call_operand.vmem [shape: f32[3,32], index: 2, kind: input, shape index: {}]   ;;  %s4477_s3 = inlined_call_operand.vmem [shape: f32[3,32], index: 3, kind: input, shape index: {}]   ;;  %s4478_s4 = inlined_call_operand.vmem [shape: f32[3,32], index: 4, kind: input, shape index: {}]   ;;  %s4479_s5 = inlined_call_operand.hbm [shape: f32[3,2,32,32], index: 5, kind: input, shape index: {}]   ;;  %s4480_s6 = inlined_call_operand.vmem [shape: f32[3,2,32], index: 6, kind: input, shape index: {}]   ;;  %s4481_s7 = inlined_call_operand.vmem [shape: f32[3,2,32], index: 7, kind: input, shape index: {}]   ;;  %s4482_s8 = inlined_call_operand.vmem [shape: f32[3,2,32], index: 8, kind: input, shape index: {}]   ;;  %s4483_s9 = inlined_call_operand.hbm [shape: f32[96,96], index: 9, kind: input, shape index: {}]   ;;  %s4484_s10 = inlined_call_operand.vmem [shape: f32[1,96], index: 10, kind: input, shape index: {}]   ;;  %s4485_s11 = inlined_call_operand.hbm [shape: f32[64,96], index: 11, kind: output, shape index: {0}]   ;;  %s4486_s12 = inlined_call_operand.hbm [shape: f32[64,96], index: 12, kind: output, shape index: {1}]  }
   0x1   :  { %19 = vsyncpa [#allocation6], 0 }
   0x2   :  { %20 = vsyncpa [#allocation4], 0 }
   0x3   :  { %21 = vsyncpa [#allocation9], 0  ;;  %s3219_s21 = smov [#allocation2]  }
   0x4   :  { %s37_s22 = sshll.u32 %s3219_s21, 4  ;;  %s38_s22 = int_to_ptr.vmem [resolvable:$true] %s37_s22 }
   0x5   :  { %s3139_s23 = scalar_lea.vmem %s38_s22, 3072  ;;  %p3144_p1 = scmp.lt.s32.totalorder %s38_s22, %s38_s22 }
   0x6   :  { %p3140_p0 = scmp.ne.s32.totalorder %s38_s22, %s3139_s23  ;;  %p3145_p2 = scmp.lt.s32.totalorder %s3139_s23, %s3139_s23 }
   0x8   :  { %p3146_p3 = por %p3145_p2, %p3144_p1 }
   0xa   :  { %p3147_p4 = pnand %p3146_p3, %p3140_p0 }
   0xc   :  { %3150 = shalt.err (!%p3147_p4)
}
   0xd   :  { %s3220_s24 = smov 128   ;;  %s3221_s25 = smov 8  }
   0xe   :  { %43 = dma.hbm_to_vmem [thread:$0]  %s4479_s5, 3072, %s38_s22, [#allocation3], %s3220_s24, %s3220_s24, %s3221_s25  }
   0xf   :  { %s3222_s28 = smov [#allocation5]  }
  0x10   :  { %s55_s29 = sshll.u32 %s3222_s28, 4  ;;  %s56_s29 = int_to_ptr.vmem [resolvable:$true] %s55_s29 }
  0x11   :  { %s3159_s30 = scalar_lea.vmem %s56_s29, 1536  ;;  %p3164_p6 = scmp.lt.s32.totalorder %s56_s29, %s56_s29 }
  0x12   :  { %p3160_p5 = scmp.ne.s32.totalorder %s56_s29, %s3159_s30  ;;  %p3165_p7 = scmp.lt.s32.totalorder %s3159_s30, %s3159_s30 }
  0x14   :  { %p3166_p8 = por %p3165_p7, %p3164_p6 }
  0x16   :  { %p3167_p9 = pnand %p3166_p8, %p3160_p5 }
  0x18   :  { %3170 = shalt.err (!%p3167_p9)
}
  0x19   :  { %61 = dma.hbm_to_vmem [thread:$0]  %s4483_s9, 1536, %s56_s29, [#allocation6], %s3220_s24, %s3220_s24, %s3221_s25  }
  0x1a   :  { %3211 = dma.done.wait [#allocation3], 3072  }
  0x1b   :  { %3212 = vsyncadd [#allocation3], 4294964224 }
  0x1c   :  { %3213 = dma.done.wait [#allocation6], 1536  }
  0x1d   :  { %3214 = vsyncadd [#allocation6], 4294965760  ;;  %v3223_v0 = vmov 0   ;;  %v72_v1 = vld [vmem:[%s4474_s0 + $0x10] sm:$0xff]  ;;  %v70_v2 = vld [vmem:[%s4474_s0] sm:$0xff]  ;;  %v3224_v9 = vmov 1  }
  0x1e   :  { %2982 = vset.pattern.permute.xlu1 %v3223_v0  ;;  %2981 = vset.pattern.permute.xlu0 %v3223_v0  ;;  %v73_v3 = vld [vmem:[%s4474_s0 + $0x18] sm:$0xff]  ;;  %v71_v4 = vld [vmem:[%s4474_s0 + $0x8] sm:$0xff]  ;;  %v74_v6 = vld [vmem:[%s4474_s0 + $0x20] sm:$0xff]  ;;  %v3225_v10 = vmov 2   ;;  %vm146_vm0 = vcmask 261120   ;;  %s3226_s16 = smov 32  }
  0x1f   :  { %91 = vperm.xlu1 %2982, %v72_v1   ;;  %81 = vperm.xlu0 %2981, %v70_v2   ;;  %v75_v5 = vld [vmem:[%s4474_s0 + $0x28] sm:$0xff]  ;;  %v77_v7 = vld [vmem:[%s4474_s0 + $0x38] sm:$0xff]  ;;  %v76_v8 = vld [vmem:[%s4474_s0 + $0x30] sm:$0xff]  ;;  %s3227_s20 = smov 64   ;;  %vm2415_vm1 = vcmask 523264   ;;  %vm2424_vm2 = vcmask 785408  }
  0x20   :  { %v2623_v11 = vld [vmem:[%s4475_s1] ss:$0 sm:$0xff]  ;;  %v2649_v40 = vld [vmem:[%s4475_s1 + $0x1] ss:$0 sm:$0xff] }
  0x21   :  { %v2624_v14 = vld [vmem:[%s4476_s2] ss:$0 sm:$0xff]  ;;  %v2650_v47 = vld [vmem:[%s4476_s2 + $0x1] ss:$0 sm:$0xff] }
  0x23   :  { %96 = vperm.xlu1 %2982, %v73_v3   ;;  %86 = vperm.xlu0 %2981, %v71_v4  }
  0x27   :  { %106 = vperm.xlu1 %2982, %v75_v5   ;;  %101 = vperm.xlu0 %2981, %v74_v6  }
  0x2b   :  { %116 = vperm.xlu1 %2982, %v77_v7   ;;  %111 = vperm.xlu0 %2981, %v76_v8  }
  0x2f   :  { %2984 = vset.pattern.permute.xlu1 %v3224_v9  ;;  %2983 = vset.pattern.permute.xlu0 %v3224_v9 }
  0x30   :  { %843 = vperm.xlu1 %2984, %v71_v4   ;;  %839 = vperm.xlu0 %2983, %v70_v2  }
  0x34   :  { %847 = vperm.xlu1 %2984, %v72_v1   ;;  %851 = vperm.xlu0 %2983, %v73_v3  }
  0x38   :  { %855 = vperm.xlu1 %2984, %v74_v6   ;;  %859 = vperm.xlu0 %2983, %v75_v5  }
  0x3c   :  { %863 = vperm.xlu1 %2984, %v76_v8   ;;  %867 = vperm.xlu0 %2983, %v77_v7  }
  0x40   :  { %2985 = vset.pattern.permute.xlu1 %v3225_v10  ;;  %2986 = vset.pattern.permute.xlu0 %v3225_v10  ;;  %v2681_v10 = vld [vmem:[%s4475_s1 + $0x2] ss:$0 sm:$0xff] }
  0x41   :  { %1592 = vperm.xlu1 %2985, %v70_v2   ;;  %1596 = vperm.xlu0 %2986, %v71_v4  }
  0x45   :  { %1600 = vperm.xlu1 %2985, %v72_v1   ;;  %1608 = vperm.xlu0 %2986, %v74_v6  }
  0x49   :  { %1604 = vperm.xlu1 %2985, %v73_v3   ;;  %1616 = vperm.xlu0 %2986, %v76_v8  }
  0x4d   :  { %1612 = vperm.xlu1 %2985, %v75_v5  }
  0x51   :  { %1620 = vperm.xlu1 %2985, %v77_v7  }
  0x9a   :  { %v92_v12 = vpop.permute.xlu1 %91  ;;  %v82_v13 = vpop.permute.xlu0 %81 }
  0x9b   :  { %v125_v15 = vmul.f32 %v2623_v11, %v92_v12  ;;  %v123_v16 = vmul.f32 %v2623_v11, %v82_v13 }
  0x9d   :  { %v3337_v17 = vadd.f32 %v2624_v14, %v123_v16  ;;  %v3341_v23 = vadd.f32 %v2624_v14, %v125_v15 }
  0x9e   :  { %v97_v18 = vpop.permute.xlu1 %96  ;;  %v87_v19 = vpop.permute.xlu0 %86 }
  0x9f   :  { %v126_v20 = vmul.f32 %v2623_v11, %v97_v18  ;;  %v124_v21 = vmul.f32 %v2623_v11, %v87_v19  ;;  %v147_v22 = vsel %vm146_vm0, %v3337_v17, 0.0  ;;  %v153_v30 = vsel %vm146_vm0, %v3341_v23, 0.0  ;;  %v2682_v18 = vld [vmem:[%s4476_s2 + $0x2] ss:$0 sm:$0xff] }
  0xa0   :  { %148 = vadd.xlane.f32.xlu0 %v147_v22 }
  0xa1   :  { %v3343_v24 = vadd.f32 %v2624_v14, %v124_v21  ;;  %v3345_v27 = vadd.f32 %v2624_v14, %v126_v20 }
  0xa2   :  { %v107_v25 = vpop.permute.xlu1 %106  ;;  %v102_v26 = vpop.permute.xlu0 %101 }
  0xa3   :  { %v128_v28 = vmul.f32 %v2623_v11, %v107_v25  ;;  %v127_v29 = vmul.f32 %v2623_v11, %v102_v26  ;;  %v150_v31 = vsel %vm146_vm0, %v3343_v24, 0.0  ;;  %v156_v35 = vsel %vm146_vm0, %v3345_v27, 0.0 }
  0xa4   :  { %154 = vadd.xlane.f32.xlu0 %v153_v30  ;;  %151 = vadd.xlane.f32.xlu1 %v150_v31 }
  0xa5   :  { %v3351_v32 = vadd.f32 %v2624_v14, %v127_v29  ;;  %v3357_v39 = vadd.f32 %v2624_v14, %v128_v28 }
  0xa6   :  { %v117_v33 = vpop.permute.xlu1 %116  ;;  %v112_v34 = vpop.permute.xlu0 %111 }
  0xa7   :  { %v130_v36 = vmul.f32 %v2623_v11, %v117_v33  ;;  %v129_v37 = vmul.f32 %v2623_v11, %v112_v34  ;;  %v159_v38 = vsel %vm146_vm0, %v3351_v32, 0.0  ;;  %v162_v44 = vsel %vm146_vm0, %v3357_v39, 0.0 }
  0xa8   :  { %157 = vadd.xlane.f32.xlu0 %v156_v35  ;;  %160 = vadd.xlane.f32.xlu1 %v159_v38 }
  0xa9   :  { %v3362_v41 = vadd.f32 %v2624_v14, %v129_v37  ;;  %v3368_v46 = vadd.f32 %v2624_v14, %v130_v36 }
  0xab   :  { %v844_v42 = vpop.permute.xlu1 %843  ;;  %v840_v43 = vpop.permute.xlu0 %839  ;;  %v165_v45 = vsel %vm146_vm0, %v3362_v41, 0.0  ;;  %v168_v53 = vsel %vm146_vm0, %v3368_v46, 0.0 }
  0xac   :  { %v875_v48 = vmul.f32 %v2649_v40, %v844_v42  ;;  %v874_v49 = vmul.f32 %v2649_v40, %v840_v43  ;;  %163 = vadd.xlane.f32.xlu0 %v162_v44  ;;  %166 = vadd.xlane.f32.xlu1 %v165_v45 }
  0xae   :  { %v3373_v50 = vadd.f32 %v2650_v47, %v874_v49  ;;  %v3377_v54 = vadd.f32 %v2650_v47, %v875_v48 }
  0xaf   :  { %v848_v51 = vpop.permute.xlu1 %847  ;;  %v852_v52 = vpop.permute.xlu0 %851 }
  0xb0   :  { %v876_v55 = vmul.f32 %v2649_v40, %v848_v51  ;;  %v877_v56 = vmul.f32 %v2649_v40, %v852_v52  ;;  %169 = vadd.xlane.f32.xlu0 %v168_v53  ;;  %v897_v57 = vsel %vm146_vm0, %v3373_v50, 0.0  ;;  %v900_v61 = vsel %vm146_vm0, %v3377_v54, 0.0 }
  0xb1   :  { %898 = vadd.xlane.f32.xlu1 %v897_v57 }
  0xb2   :  { %v3381_v58 = vadd.f32 %v2650_v47, %v876_v55  ;;  %v3385_v62 = vadd.f32 %v2650_v47, %v877_v56 }
  0xb3   :  { %v856_v59 = vpop.permute.xlu1 %855  ;;  %v860_v60 = vpop.permute.xlu0 %859 }
  0xb4   :  { %v878_v63 = vmul.f32 %v2649_v40, %v856_v59  ;;  %v879_v0 = vmul.f32 %v2649_v40, %v860_v60  ;;  %901 = vadd.xlane.f32.xlu0 %v900_v61  ;;  %v903_v1 = vsel %vm146_vm0, %v3381_v58, 0.0  ;;  %v906_v5 = vsel %vm146_vm0, %v3385_v62, 0.0 }
  0xb5   :  { %904 = vadd.xlane.f32.xlu1 %v903_v1 }
  0xb6   :  { %v3389_v2 = vadd.f32 %v2650_v47, %v878_v63  ;;  %v3393_v6 = vadd.f32 %v2650_v47, %v879_v0 }
  0xb7   :  { %v864_v3 = vpop.permute.xlu1 %863  ;;  %v868_v4 = vpop.permute.xlu0 %867 }
  0xb8   :  { %v880_v7 = vmul.f32 %v2649_v40, %v864_v3  ;;  %v881_v8 = vmul.f32 %v2649_v40, %v868_v4  ;;  %907 = vadd.xlane.f32.xlu0 %v906_v5  ;;  %v909_v9 = vsel %vm146_vm0, %v3389_v2, 0.0  ;;  %v912_v12 = vsel %vm146_vm0, %v3393_v6, 0.0 }
  0xb9   :  { %910 = vadd.xlane.f32.xlu1 %v909_v9 }
  0xba   :  { %v3400_v11 = vadd.f32 %v2650_v47, %v880_v7  ;;  %v3404_v13 = vadd.f32 %v2650_v47, %v881_v8 }
  0xbc   :  { %v1593_v14 = vpop.permute.xlu1 %1592  ;;  %913 = vadd.xlane.f32.xlu0 %v912_v12  ;;  %v1597_v15 = vpop.permute.xlu0 %1596  ;;  %v915_v16 = vsel %vm146_vm0, %v3400_v11, 0.0  ;;  %v918_v21 = vsel %vm146_vm0, %v3404_v13, 0.0 }
  0xbd   :  { %v1627_v19 = vmul.f32 %v2681_v10, %v1593_v14  ;;  %v1628_v20 = vmul.f32 %v2681_v10, %v1597_v15  ;;  %916 = vadd.xlane.f32.xlu1 %v915_v16 }
  0xbf   :  { %v3413_v22 = vadd.f32 %v2682_v18, %v1627_v19  ;;  %v3415_v25 = vadd.f32 %v2682_v18, %v1628_v20 }
  0xc0   :  { %v1601_v26 = vpop.permute.xlu1 %1600  ;;  %919 = vadd.xlane.f32.xlu0 %v918_v21  ;;  %v1609_v28 = vpop.permute.xlu0 %1608 }
  0xc1   :  { %v1629_v29 = vmul.f32 %v2681_v10, %v1601_v26  ;;  %v1631_v30 = vmul.f32 %v2681_v10, %v1609_v28  ;;  %v1650_v31 = vsel %vm146_vm0, %v3413_v22, 0.0  ;;  %v1653_v33 = vsel %vm146_vm0, %v3415_v25, 0.0 }
  0xc2   :  { %1651 = vadd.xlane.f32.xlu1 %v1650_v31 }
  0xc3   :  { %v3421_v34 = vadd.f32 %v2682_v18, %v1629_v29  ;;  %v3425_v42 = vadd.f32 %v2682_v18, %v1631_v30 }
  0xc4   :  { %v1605_v35 = vpop.permute.xlu1 %1604  ;;  %1654 = vadd.xlane.f32.xlu0 %v1653_v33  ;;  %v1617_v36 = vpop.permute.xlu0 %1616 }
  0xc5   :  { %v1630_v37 = vmul.f32 %v2681_v10, %v1605_v35  ;;  %v1633_v38 = vmul.f32 %v2681_v10, %v1617_v36  ;;  %v1656_v40 = vsel %vm146_vm0, %v3421_v34, 0.0  ;;  %v1662_v48 = vsel %vm146_vm0, %v3425_v42, 0.0 }
  0xc6   :  { %1657 = vadd.xlane.f32.xlu1 %v1656_v40 }
  0xc7   :  { %v3427_v43 = vadd.f32 %v2682_v18, %v1630_v37  ;;  %v3433_v49 = vadd.f32 %v2682_v18, %v1633_v38 }
  0xc8   :  { %v1613_v44 = vpop.permute.xlu1 %1612 }
  0xc9   :  { %v1632_v45 = vmul.f32 %v2681_v10, %v1613_v44  ;;  %v1659_v47 = vsel %vm146_vm0, %v3427_v43, 0.0  ;;  %v1668_v56 = vsel %vm146_vm0, %v3433_v49, 0.0 }
  0xca   :  { %1660 = vadd.xlane.f32.xlu0 %v1659_v47  ;;  %1663 = vadd.xlane.f32.xlu1 %v1662_v48 }
  0xcb   :  { %v3435_v51 = vadd.f32 %v2682_v18, %v1632_v45 }
  0xcc   :  { %v1621_v52 = vpop.permute.xlu1 %1620 }
  0xcd   :  { %v1634_v53 = vmul.f32 %v2681_v10, %v1621_v52  ;;  %v1665_v55 = vsel %vm146_vm0, %v3435_v51, 0.0 }
  0xce   :  { %1666 = vadd.xlane.f32.xlu0 %v1665_v55  ;;  %1669 = vadd.xlane.f32.xlu1 %v1668_v56 }
  0xcf   :  { %v3441_v57 = vadd.f32 %v2682_v18, %v1634_v53 }
  0xd1   :  { %v1671_v59 = vsel %vm146_vm0, %v3441_v57, 0.0 }
  0xd2   :  { %1672 = vadd.xlane.f32.xlu0 %v1671_v59 }
 0x129   :  { %v149_v60 = vpop.xlane.xlu0 %148 }
 0x12a   :  { %v172_v61 = vmul.f32 0.03125, %v149_v60 }
 0x12c   :  { %v3446_v63 = vsub.f32 %v3337_v17, %v172_v61 }
 0x12d   :  { %v152_v0 = vpop.xlane.xlu1 %151  ;;  %v155_v1 = vpop.xlane.xlu0 %154 }
 0x12e   :  { %v173_v3 = vmul.f32 0.03125, %v152_v0  ;;  %v174_v4 = vmul.f32 0.03125, %v155_v1  ;;  %v188_v5 = vmul.f32 %v3446_v63, %v3446_v63 }
 0x130   :  { %v3451_v7 = vsub.f32 %v3343_v24, %v173_v3  ;;  %v3454_v8 = vsub.f32 %v3341_v23, %v174_v4  ;;  %v196_v9 = vsel %vm146_vm0, %v188_v5, 0.0 }
 0x131   :  { %v161_v10 = vpop.xlane.xlu1 %160  ;;  %197 = vadd.xlane.f32.xlu1 %v196_v9  ;;  %v158_v12 = vpop.xlane.xlu0 %157 }
 0x132   :  { %v176_v17 = vmul.f32 0.03125, %v161_v10  ;;  %v175_v14 = vmul.f32 0.03125, %v158_v12  ;;  %v189_v15 = vmul.f32 %v3451_v7, %v3451_v7  ;;  %v190_v16 = vmul.f32 %v3454_v8, %v3454_v8 }
 0x134   :  { %v3462_v18 = vsub.f32 %v3351_v32, %v176_v17  ;;  %v3465_v24 = vsub.f32 %v3345_v27, %v175_v14  ;;  %v199_v23 = vsel %vm146_vm0, %v189_v15, 0.0  ;;  %v202_v19 = vsel %vm146_vm0, %v190_v16, 0.0 }
 0x135   :  { %v167_v20 = vpop.xlane.xlu1 %166  ;;  %200 = vadd.xlane.f32.xlu0 %v199_v23  ;;  %203 = vadd.xlane.f32.xlu1 %v202_v19  ;;  %v164_v21 = vpop.xlane.xlu0 %163 }
 0x136   :  { %v178_v26 = vmul.f32 0.03125, %v167_v20  ;;  %v177_v28 = vmul.f32 0.03125, %v164_v21  ;;  %v192_v29 = vmul.f32 %v3462_v18, %v3462_v18  ;;  %v191_v32 = vmul.f32 %v3465_v24, %v3465_v24 }
 0x138   :  { %v3474_v30 = vsub.f32 %v3362_v41, %v178_v26  ;;  %v3477_v27 = vsub.f32 %v3357_v39, %v177_v28  ;;  %v208_v31 = vsel %vm146_vm0, %v192_v29, 0.0  ;;  %v205_v33 = vsel %vm146_vm0, %v191_v32, 0.0 }
 0x139   :  { %209 = vadd.xlane.f32.xlu1 %v208_v31  ;;  %206 = vadd.xlane.f32.xlu0 %v205_v33  ;;  %v170_v35 = vpop.xlane.xlu0 %169 }
 0x13a   :  { %v179_v36 = vmul.f32 0.03125, %v170_v35  ;;  %v899_v37 = vpop.xlane.xlu1 %898  ;;  %v194_v38 = vmul.f32 %v3474_v30, %v3474_v30  ;;  %v193_v40 = vmul.f32 %v3477_v27, %v3477_v27 }
 0x13b   :  { %v921_v41 = vmul.f32 0.03125, %v899_v37 }
 0x13c   :  { %v3486_v44 = vsub.f32 %v3368_v46, %v179_v36  ;;  %v214_v39 = vsel %vm146_vm0, %v194_v38, 0.0  ;;  %v211_v45 = vsel %vm146_vm0, %v193_v40, 0.0 }
 0x13d   :  { %v3491_v47 = vsub.f32 %v3373_v50, %v921_v41  ;;  %215 = vadd.xlane.f32.xlu1 %v214_v39  ;;  %212 = vadd.xlane.f32.xlu0 %v211_v45  ;;  %v902_v48 = vpop.xlane.xlu0 %901 }
 0x13e   :  { %v922_v52 = vmul.f32 0.03125, %v902_v48  ;;  %v905_v53 = vpop.xlane.xlu1 %904  ;;  %v195_v55 = vmul.f32 %v3486_v44, %v3486_v44 }
 0x13f   :  { %v923_v56 = vmul.f32 0.03125, %v905_v53  ;;  %v937_v46 = vmul.f32 %v3491_v47, %v3491_v47 }
 0x140   :  { %v3498_v59 = vsub.f32 %v3377_v54, %v922_v52  ;;  %v217_v60 = vsel %vm146_vm0, %v195_v55, 0.0  ;;  %v287_v52 = vld [vmem:[#allocation2 + $0x18] sm:$0xff] }
 0x141   :  { %v3502_v50 = vsub.f32 %v3381_v58, %v923_v56  ;;  %218 = vadd.xlane.f32.xlu0 %v217_v60  ;;  %v908_v61 = vpop.xlane.xlu0 %907  ;;  %v945_v0 = vsel %vm146_vm0, %v937_v46, 0.0  ;;  %2814 = vmatprep.subr.mxu1 %v287_v52  ;;  %v286_v46 = vld [vmem:[#allocation2 + $0x10] sm:$0xff] }
 0x142   :  { %v924_v1 = vmul.f32 0.03125, %v908_v61  ;;  %v911_v3 = vpop.xlane.xlu1 %910  ;;  %946 = vadd.xlane.f32.xlu1 %v945_v0  ;;  %v938_v4 = vmul.f32 %v3498_v59, %v3498_v59  ;;  %2815 = vmatpush3.msra.mxu1 %v287_v52 }
 0x143   :  { %v925_v5 = vmul.f32 0.03125, %v911_v3  ;;  %v939_v54 = vmul.f32 %v3502_v50, %v3502_v50  ;;  %2816 = vmatprep.subr.mxu1 %v286_v46 }
 0x144   :  { %v3510_v9 = vsub.f32 %v3385_v62, %v924_v1  ;;  %v948_v58 = vsel %vm146_vm0, %v938_v4, 0.0  ;;  %2817 = vmatpush3.msra.mxu1 %v286_v46 }
 0x145   :  { %v3514_v10 = vsub.f32 %v3389_v2, %v925_v5  ;;  %949 = vadd.xlane.f32.xlu0 %v948_v58  ;;  %v914_v12 = vpop.xlane.xlu0 %913  ;;  %v951_v17 = vsel %vm146_vm0, %v939_v54, 0.0 }
 0x146   :  { %v926_v14 = vmul.f32 0.03125, %v914_v12  ;;  %v917_v15 = vpop.xlane.xlu1 %916  ;;  %952 = vadd.xlane.f32.xlu1 %v951_v17  ;;  %v940_v16 = vmul.f32 %v3510_v9, %v3510_v9  ;;  %v284_v12 = vld [vmem:[#allocation2] sm:$0xff] }
 0x147   :  { %v927_v23 = vmul.f32 0.03125, %v917_v15  ;;  %v941_v62 = vmul.f32 %v3514_v10, %v3514_v10 }
 0x148   :  { %v3522_v19 = vsub.f32 %v3393_v6, %v926_v14  ;;  %v954_v2 = vsel %vm146_vm0, %v940_v16, 0.0 }
 0x149   :  { %v3526_v20 = vsub.f32 %v3400_v11, %v927_v23  ;;  %955 = vadd.xlane.f32.xlu0 %v954_v2  ;;  %v920_v21 = vpop.xlane.xlu0 %919  ;;  %v957_v26 = vsel %vm146_vm0, %v941_v62, 0.0 }
 0x14a   :  { %v928_v28 = vmul.f32 0.03125, %v920_v21  ;;  %958 = vadd.xlane.f32.xlu1 %v957_v26  ;;  %v942_v29 = vmul.f32 %v3522_v19, %v3522_v19 }
 0x14b   :  { %v1652_v32 = vpop.xlane.xlu1 %1651  ;;  %v943_v31 = vmul.f32 %v3526_v20, %v3526_v20 }
 0x14c   :  { %v3534_v6 = vsub.f32 %v3404_v13, %v928_v28  ;;  %v1674_v33 = vmul.f32 0.03125, %v1652_v32  ;;  %v960_v11 = vsel %vm146_vm0, %v942_v29, 0.0 }
 0x14d   :  { %961 = vadd.xlane.f32.xlu0 %v960_v11  ;;  %v1655_v35 = vpop.xlane.xlu0 %1654  ;;  %v963_v36 = vsel %vm146_vm0, %v943_v31, 0.0  ;;  %v1037_v31 = vld [vmem:[#allocation2 + $0x58] sm:$0xff]  ;;  %v1036_v11 = vld [vmem:[#allocation2 + $0x50] sm:$0xff] }
 0x14e   :  { %v3539_v37 = vsub.f32 %v3413_v22, %v1674_v33  ;;  %v1675_v38 = vmul.f32 0.03125, %v1655_v35  ;;  %964 = vadd.xlane.f32.xlu1 %v963_v36  ;;  %v944_v40 = vmul.f32 %v3534_v6, %v3534_v6  ;;  %2854 = vmatprep.subr.mxu0 %v1037_v31  ;;  %v1034_v35 = vld [vmem:[#allocation2 + $0x40] sm:$0xff]  ;;  %v3589_v36 = vld [vmem:[#allocation2 + $0x98] sm:$0xff] }
 0x14f   :  { %v1658_v41 = vpop.xlane.xlu1 %1657  ;;  %2855 = vmatpush3.msra.mxu0 %v1037_v31 }
 0x150   :  { %v3544_v39 = vsub.f32 %v3415_v25, %v1675_v38  ;;  %v1676_v13 = vmul.f32 0.03125, %v1658_v41  ;;  %v966_v45 = vsel %vm146_vm0, %v944_v40, 0.0  ;;  %v1690_v48 = vmul.f32 %v3539_v37, %v3539_v37  ;;  %2856 = vmatprep.subr.mxu0 %v1036_v11 }
 0x151   :  { %967 = vadd.xlane.f32.xlu0 %v966_v45  ;;  %2857 = vmatpush3.msra.mxu0 %v1036_v11 }
 0x152   :  { %v3550_v22 = vsub.f32 %v3421_v34, %v1676_v13  ;;  %v1698_v53 = vsel %vm146_vm0, %v1690_v48, 0.0  ;;  %v1691_v55 = vmul.f32 %v3544_v39, %v3544_v39  ;;  %v285_v34 = vld [vmem:[#allocation2 + $0x8] sm:$0xff] }
 0x153   :  { %v1664_v56 = vpop.xlane.xlu1 %1663  ;;  %1699 = vadd.xlane.f32.xlu1 %v1698_v53  ;;  %v1661_v25 = vpop.xlane.xlu0 %1660  ;;  %2818 = vmatprep.subr.mxu1 %v285_v34 }
 0x154   :  { %v1678_v60 = vmul.f32 0.03125, %v1664_v56  ;;  %v1677_v61 = vmul.f32 0.03125, %v1661_v25  ;;  %v1701_v0 = vsel %vm146_vm0, %v1691_v55, 0.0  ;;  %v1692_v1 = vmul.f32 %v3550_v22, %v3550_v22  ;;  %2819 = vmatpush3.msra.mxu1 %v285_v34 }
 0x155   :  { %1702 = vadd.xlane.f32.xlu0 %v1701_v0  ;;  %2820 = vmatprep.subr.mxu1 %v284_v12 }
 0x156   :  { %v3559_v3 = vsub.f32 %v3425_v42, %v1678_v60  ;;  %v3562_v4 = vsub.f32 %v3427_v43, %v1677_v61  ;;  %v1704_v5 = vsel %vm146_vm0, %v1692_v1, 0.0  ;;  %2821 = vmatpush3.msra.mxu1 %v284_v12 }
 0x157   :  { %v1670_v54 = vpop.xlane.xlu1 %1669  ;;  %1705 = vadd.xlane.f32.xlu1 %v1704_v5  ;;  %v1667_v58 = vpop.xlane.xlu0 %1666 }
 0x158   :  { %v1680_v17 = vmul.f32 0.03125, %v1670_v54  ;;  %v1679_v14 = vmul.f32 0.03125, %v1667_v58  ;;  %v1694_v15 = vmul.f32 %v3559_v3, %v3559_v3  ;;  %v1693_v42 = vmul.f32 %v3562_v4, %v3562_v4 }
 0x15a   :  { %v3570_v43 = vsub.f32 %v3433_v49, %v1680_v17  ;;  %v3573_v16 = vsub.f32 %v3435_v51, %v1679_v14  ;;  %v1710_v23 = vsel %vm146_vm0, %v1694_v15, 0.0  ;;  %v1707_v62 = vsel %vm146_vm0, %v1693_v42, 0.0 }
 0x15b   :  { %1711 = vadd.xlane.f32.xlu1 %v1710_v23  ;;  %1708 = vadd.xlane.f32.xlu0 %v1707_v62  ;;  %v1673_v2 = vpop.xlane.xlu0 %1672  ;;  %v3595_v62 = vld [vmem:[%s4477_s3] ss:$0 sm:$0xff] }
 0x15c   :  { %v1681_v21 = vmul.f32 0.03125, %v1673_v2  ;;  %v1696_v26 = vmul.f32 %v3570_v43, %v3570_v43  ;;  %v1695_v28 = vmul.f32 %v3573_v16, %v3573_v16 }
 0x15e   :  { %v3582_v49 = vsub.f32 %v3441_v57, %v1681_v21  ;;  %v1716_v51 = vsel %vm146_vm0, %v1696_v26, 0.0  ;;  %v1713_v29 = vsel %vm146_vm0, %v1695_v28, 0.0  ;;  %v1035_v57 = vld [vmem:[#allocation2 + $0x48] sm:$0xff] }
 0x15f   :  { %1717 = vadd.xlane.f32.xlu1 %v1716_v51  ;;  %1714 = vadd.xlane.f32.xlu0 %v1713_v29  ;;  %v3601_v51 = vld [vmem:[%s4478_s4] ss:$0 sm:$0xff] }
 0x160   :  { %v1697_v32 = vmul.f32 %v3582_v49, %v3582_v49  ;;  %2858 = vmatprep.subr.mxu0 %v1035_v57 }
 0x161   :  { %2859 = vmatpush3.msra.mxu0 %v1035_v57 }
 0x162   :  { %v1719_v33 = vsel %vm146_vm0, %v1697_v32, 0.0  ;;  %2860 = vmatprep.subr.mxu0 %v1034_v35 }
 0x163   :  { %1720 = vadd.xlane.f32.xlu0 %v1719_v33  ;;  %2861 = vmatpush3.msra.mxu0 %v1034_v35 }
 0x164   :  { %2894 = vmatprep.subr.mxu0 %v3589_v36 }
 0x1ba   :  { %v198_v38 = vpop.xlane.xlu1 %197 }
 0x1bb   :  { %v220_v40 = vmul.f32 0.03125, %v198_v38 }
 0x1bd   :  { %v228_v41 = vadd.f32 1e-05, %v220_v40 }
 0x1be   :  { %v204_v13 = vpop.xlane.xlu1 %203  ;;  %v201_v45 = vpop.xlane.xlu0 %200 }
 0x1bf   :  { %2987 = vrsqrt.f32 %v228_v41  ;;  %v222_v48 = vmul.f32 0.03125, %v204_v13  ;;  %v221_v52 = vmul.f32 0.03125, %v201_v45 }
 0x1c1   :  { %v230_v53 = vadd.f32 1e-05, %v222_v48  ;;  %v229_v55 = vadd.f32 1e-05, %v221_v52 }
 0x1c2   :  { %v210_v56 = vpop.xlane.xlu1 %209  ;;  %v207_v25 = vpop.xlane.xlu0 %206 }
 0x1c3   :  { %2989 = vrsqrt.f32 %v230_v53  ;;  %v224_v46 = vmul.f32 0.03125, %v210_v56  ;;  %v223_v60 = vmul.f32 0.03125, %v207_v25 }
 0x1c4   :  { %2991 = vrsqrt.f32 %v229_v55 }
 0x1c5   :  { %v232_v61 = vadd.f32 1e-05, %v224_v46  ;;  %v231_v0 = vadd.f32 1e-05, %v223_v60 }
 0x1c6   :  { %v216_v1 = vpop.xlane.xlu1 %215  ;;  %v213_v34 = vpop.xlane.xlu0 %212 }
 0x1c7   :  { %2993 = vrsqrt.f32 %v232_v61  ;;  %v226_v5 = vmul.f32 0.03125, %v216_v1  ;;  %v225_v54 = vmul.f32 0.03125, %v213_v34 }
 0x1c8   :  { %2995 = vrsqrt.f32 %v231_v0 }
 0x1c9   :  { %v234_v58 = vadd.f32 1e-05, %v226_v5  ;;  %v233_v12 = vadd.f32 1e-05, %v225_v54 }
 0x1ca   :  { %v219_v17 = vpop.xlane.xlu0 %218 }
 0x1cb   :  { %2997 = vrsqrt.f32 %v234_v58  ;;  %v227_v14 = vmul.f32 0.03125, %v219_v17  ;;  %v947_v15 = vpop.xlane.xlu1 %946 }
 0x1cc   :  { %v2988_v42 = vpop.eup %2987  ;;  %2999 = vrsqrt.f32 %v233_v12  ;;  %v969_v23 = vmul.f32 0.03125, %v947_v15 }
 0x1cd   :  { %v235_v2 = vadd.f32 1e-05, %v227_v14  ;;  %v244_v21 = vmul.f32 %v2988_v42, %v3446_v63 }
 0x1ce   :  { %v977_v26 = vadd.f32 1e-05, %v969_v23  ;;  %v950_v28 = vpop.xlane.xlu0 %949 }
 0x1cf   :  { %3001 = vrsqrt.f32 %v235_v2  ;;  %v970_v29 = vmul.f32 0.03125, %v950_v28  ;;  %v953_v32 = vpop.xlane.xlu1 %952  ;;  %v256_v31 = vmul.f32 %v3595_v62, %v244_v21 }
 0x1d0   :  { %v2990_v33 = vpop.eup %2989  ;;  %3003 = vrsqrt.f32 %v977_v26  ;;  %v971_v11 = vmul.f32 0.03125, %v953_v32 }
 0x1d1   :  { %v2992_v57 = vpop.eup %2991  ;;  %v978_v35 = vadd.f32 1e-05, %v970_v29  ;;  %v268_v38 = vadd.f32 %v3601_v51, %v256_v31  ;;  %v246_v63 = vmul.f32 %v2990_v33, %v3454_v8 }
 0x1d2   :  { %v979_v40 = vadd.f32 1e-05, %v971_v11  ;;  %v956_v41 = vpop.xlane.xlu0 %955  ;;  %v245_v13 = vmul.f32 %v2992_v57, %v3451_v7 }
 0x1d3   :  { %3005 = vrsqrt.f32 %v978_v35  ;;  %v972_v45 = vmul.f32 0.03125, %v956_v41  ;;  %v959_v48 = vpop.xlane.xlu1 %958  ;;  %v276_v52 = vmax.f32 %v268_v38, 0.0  ;;  %v258_v53 = vmul.f32 %v3595_v62, %v246_v63 }
 0x1d4   :  { %v2994_v55 = vpop.eup %2993  ;;  %3007 = vrsqrt.f32 %v979_v40  ;;  %v973_v56 = vmul.f32 0.03125, %v959_v48  ;;  %v257_v25 = vmul.f32 %v3595_v62, %v245_v13  ;;  %v3629_v13 = vld [vmem:[%s4477_s3 + $0x1] ss:$0 sm:$0xff] }
 0x1d5   :  { %v2996_v46 = vpop.eup %2995  ;;  %v980_v60 = vadd.f32 1e-05, %v972_v45  ;;  %2822 = vmatprep.mubr.msk.f32.mxu1 %vm146_vm0, %v276_v52  ;;  %v270_v8 = vadd.f32 %v3601_v51, %v258_v53  ;;  %v248_v61 = vmul.f32 %v2994_v55, %v3462_v18 }
 0x1d6   :  { %v981_v7 = vadd.f32 1e-05, %v973_v56  ;;  %v962_v0 = vpop.xlane.xlu0 %961  ;;  %v269_v1 = vadd.f32 %v3601_v51, %v257_v25  ;;  %v247_v34 = vmul.f32 %v2996_v46, %v3465_v24 }
 0x1d7   :  { %3009 = vrsqrt.f32 %v980_v60  ;;  %v974_v5 = vmul.f32 0.03125, %v962_v0  ;;  %v965_v54 = vpop.xlane.xlu1 %964  ;;  %v278_v58 = vmax.f32 %v270_v8, 0.0  ;;  %v260_v12 = vmul.f32 %v3595_v62, %v248_v61 }
 0x1d8   :  { %v2998_v17 = vpop.eup %2997  ;;  %3011 = vrsqrt.f32 %v981_v7  ;;  %v975_v14 = vmul.f32 0.03125, %v965_v54  ;;  %v277_v15 = vmax.f32 %v269_v1, 0.0  ;;  %v259_v42 = vmul.f32 %v3595_v62, %v247_v34 }
 0x1d9   :  { %v3000_v23 = vpop.eup %2999  ;;  %v982_v18 = vadd.f32 1e-05, %v974_v5  ;;  %v272_v2 = vadd.f32 %v3601_v51, %v260_v12  ;;  %v250_v21 = vmul.f32 %v2998_v17, %v3474_v30 }
 0x1da   :  { %v983_v26 = vadd.f32 1e-05, %v975_v14  ;;  %2823 = vmatmul.mubr.msk.f32.vlgmr.msra.gmra.mxu1 %vm146_vm0, %v277_v15  ;;  %v968_v24 = vpop.xlane.xlu0 %967  ;;  %v271_v28 = vadd.f32 %v3601_v51, %v259_v42  ;;  %v249_v29 = vmul.f32 %v3000_v23, %v3477_v27 }
 0x1db   :  { %3013 = vrsqrt.f32 %v982_v18  ;;  %2825 = vmatprep.mubr.msk.f32.mxu1 %vm146_vm0, %v278_v58  ;;  %v976_v32 = vmul.f32 0.03125, %v968_v24  ;;  %v280_v31 = vmax.f32 %v272_v2, 0.0  ;;  %v262_v33 = vmul.f32 %v3595_v62, %v250_v21 }
 0x1dc   :  { %v3002_v11 = vpop.eup %3001  ;;  %3015 = vrsqrt.f32 %v983_v26  ;;  %v1700_v57 = vpop.xlane.xlu1 %1699  ;;  %v279_v35 = vmax.f32 %v271_v28, 0.0  ;;  %v261_v30 = vmul.f32 %v3595_v62, %v249_v29 }
 0x1dd   :  { %v3004_v38 = vpop.eup %3003  ;;  %v984_v63 = vadd.f32 1e-05, %v976_v32  ;;  %v1722_v40 = vmul.f32 0.03125, %v1700_v57  ;;  %v274_v41 = vadd.f32 %v3601_v51, %v262_v33  ;;  %v251_v27 = vmul.f32 %v3002_v11, %v3486_v44  ;;  %v3638_v44 = vld [vmem:[%s4478_s4 + $0x1] ss:$0 sm:$0xff]  ;;  %v1789_v57 = vld [vmem:[#allocation2 + $0x90] sm:$0xff] }
 0x1de   :  { %2826 = vmatmul.mubr.msk.f32.gmra.mxu1 %vm146_vm0, %v279_v35  ;;  %v1703_v45 = vpop.xlane.xlu0 %1702  ;;  %v273_v48 = vadd.f32 %v3601_v51, %v261_v30  ;;  %v993_v52 = vmul.f32 %v3004_v38, %v3491_v47 }
 0x1df   :  { %3017 = vrsqrt.f32 %v984_v63  ;;  %v1730_v53 = vadd.f32 1e-05, %v1722_v40  ;;  %2828 = vmatprep.mubr.msk.f32.mxu1 %vm146_vm0, %v280_v31  ;;  %v1723_v55 = vmul.f32 0.03125, %v1703_v45  ;;  %v282_v56 = vmax.f32 %v274_v41, 0.0 }
 0x1e0   :  { %v3006_v25 = vpop.eup %3005  ;;  %v1706_v46 = vpop.xlane.xlu1 %1705  ;;  %v281_v60 = vmax.f32 %v273_v48, 0.0  ;;  %v263_v8 = vmul.f32 %v3595_v62, %v251_v27  ;;  %v1005_v61 = vmul.f32 %v3629_v13, %v993_v52  ;;  %v1788_v27 = vld [vmem:[#allocation2 + $0x88] sm:$0xff] }
 0x1e1   :  { %v3008_v7 = vpop.eup %3007  ;;  %3019 = vrsqrt.f32 %v1730_v53  ;;  %v1731_v47 = vadd.f32 1e-05, %v1723_v55  ;;  %v1724_v0 = vmul.f32 0.03125, %v1706_v46  ;;  %v994_v1 = vmul.f32 %v3006_v25, %v3498_v59 }
 0x1e2   :  { %2829 = vmatmul.mubr.msk.f32.gmra.mxu1 %vm146_vm0, %v281_v60  ;;  %v275_v34 = vadd.f32 %v3601_v51, %v263_v8  ;;  %v1017_v5 = vadd.f32 %v3638_v44, %v1005_v61  ;;  %v995_v54 = vmul.f32 %v3008_v7, %v3502_v50  ;;  %v1787_v8 = vld [vmem:[#allocation2 + $0x80] sm:$0xff] }
 0x1e3   :  { %3021 = vrsqrt.f32 %v1731_v47  ;;  %v1732_v58 = vadd.f32 1e-05, %v1724_v0  ;;  %2831 = vmatprep.mubr.msk.f32.mxu1 %vm146_vm0, %v282_v56  ;;  %v1006_v62 = vmul.f32 %v3629_v13, %v994_v1  ;;  %v2683_v7 = vld [vmem:[%s4477_s3 + $0x2] ss:$0 sm:$0xff] }
 0x1e4   :  { %v3010_v12 = vpop.eup %3009  ;;  %v1712_v17 = vpop.xlane.xlu1 %1711  ;;  %v283_v15 = vmax.f32 %v275_v34, 0.0  ;;  %v1025_v42 = vmax.f32 %v1017_v5, 0.0  ;;  %v1007_v59 = vmul.f32 %v3629_v13, %v995_v54 }
 0x1e5   :  { %v1709_v14 = vpop.xlane.xlu0 %1708  ;;  %v3012_v23 = vpop.eup %3011  ;;  %3023 = vrsqrt.f32 %v1732_v58  ;;  %v1726_v51 = vmul.f32 0.03125, %v1712_v17  ;;  %v1018_v2 = vadd.f32 %v3638_v44, %v1006_v62  ;;  %v996_v21 = vmul.f32 %v3010_v12, %v3510_v9  ;;  %v2684_v58 = vld [vmem:[%s4478_s4 + $0x2] ss:$0 sm:$0xff] }
 0x1e6   :  { %v1725_v18 = vmul.f32 0.03125, %v1709_v14  ;;  %2832 = vmatmul.mubr.msk.f32.gmra.mxu1 %vm146_vm0, %v283_v15  ;;  %2862 = vmatprep.mubr.msk.f32.mxu0 %vm146_vm0, %v1025_v42  ;;  %v1019_v50 = vadd.f32 %v3638_v44, %v1007_v59  ;;  %v997_v26 = vmul.f32 %v3012_v23, %v3514_v10 }
 0x1e7   :  { %v1734_v24 = vadd.f32 1e-05, %v1726_v51  ;;  %v1026_v29 = vmax.f32 %v1018_v2, 0.0  ;;  %v1008_v35 = vmul.f32 %v3629_v13, %v996_v21 }
 0x1e8   :  { %v1733_v28 = vadd.f32 1e-05, %v1725_v18  ;;  %v3014_v32 = vpop.eup %3013  ;;  %v1718_v31 = vpop.xlane.xlu1 %1717  ;;  %v1027_v11 = vmax.f32 %v1019_v50, 0.0  ;;  %v1009_v30 = vmul.f32 %v3629_v13, %v997_v26 }
 0x1e9   :  { %v1715_v33 = vpop.xlane.xlu0 %1714  ;;  %v3016_v38 = vpop.eup %3015  ;;  %3025 = vrsqrt.f32 %v1734_v24  ;;  %v1728_v63 = vmul.f32 0.03125, %v1718_v31  ;;  %2863 = vmatmul.mubr.msk.f32.vlgmr.msra.gmra.mxu0 %vm146_vm0, %v1026_v29  ;;  %v998_v9 = vmul.f32 %v3014_v32, %v3522_v19  ;;  %v1020_v10 = vadd.f32 %v3638_v44, %v1008_v35 }
 0x1ea   :  { %v1727_v40 = vmul.f32 0.03125, %v1715_v33  ;;  %3027 = vrsqrt.f32 %v1733_v28  ;;  %2895 = vmatpush3.msra.mxu0 %v3589_v36  ;;  %2865 = vmatprep.mubr.msk.f32.mxu0 %vm146_vm0, %v1027_v11  ;;  %v1021_v41 = vadd.f32 %v3638_v44, %v1009_v30  ;;  %v999_v45 = vmul.f32 %v3016_v38, %v3526_v20 }
 0x1eb   :  { %v1736_v48 = vadd.f32 1e-05, %v1728_v63  ;;  %2896 = vmatprep.subr.mxu0 %v1789_v57  ;;  %v1010_v53 = vmul.f32 %v3629_v13, %v998_v9  ;;  %v1028_v19 = vmax.f32 %v1020_v10, 0.0 }
 0x1ec   :  { %v1735_v52 = vadd.f32 1e-05, %v1727_v40  ;;  %v3018_v55 = vpop.eup %3017  ;;  %2897 = vmatpush3.msra.mxu0 %v1789_v57  ;;  %v1029_v25 = vmax.f32 %v1021_v41, 0.0  ;;  %v1011_v36 = vmul.f32 %v3629_v13, %v999_v45 }
 0x1ed   :  { %v1721_v56 = vpop.xlane.xlu0 %1720  ;;  %3029 = vrsqrt.f32 %v1736_v48  ;;  %2898 = vmatprep.subr.mxu0 %v1788_v27  ;;  %v1022_v60 = vadd.f32 %v3638_v44, %v1010_v53  ;;  %v1000_v20 = vmul.f32 %v3018_v55, %v3534_v6  ;;  %2866 = vmatmul.mubr.msk.f32.gmra.mxu0 %vm146_vm0, %v1028_v19 }
 0x1ee   :  { %v1729_v46 = vmul.f32 0.03125, %v1721_v56  ;;  %v3020_v61 = vpop.eup %3019  ;;  %3031 = vrsqrt.f32 %v1735_v52  ;;  %v1023_v47 = vadd.f32 %v3638_v44, %v1011_v36  ;;  %2868 = vmatprep.mubr.msk.f32.mxu0 %vm146_vm0, %v1029_v25  ;;  %2899 = vmatpush3.msra.mxu0 %v1788_v27 }
 0x1ef   :  { %v1030_v1 = vmax.f32 %v1022_v60, 0.0  ;;  %v1012_v34 = vmul.f32 %v3629_v13, %v1000_v20  ;;  %v1746_v5 = vmul.f32 %v3020_v61, %v3539_v37  ;;  %2900 = vmatprep.subr.mxu0 %v1787_v8 }
 0x1f0   :  { %v1737_v0 = vadd.f32 1e-05, %v1729_v46  ;;  %v3022_v6 = vpop.eup %3021  ;;  %v1031_v54 = vmax.f32 %v1023_v47, 0.0  ;;  %2901 = vmatpush3.msra.mxu0 %v1787_v8 }
 0x1f1   :  { %v1747_v62 = vmul.f32 %v3022_v6, %v3544_v39  ;;  %v1024_v12 = vadd.f32 %v3638_v44, %v1012_v34  ;;  %v1758_v17 = vmul.f32 %v2683_v7, %v1746_v5  ;;  %2869 = vmatmul.mubr.msk.f32.gmra.mxu0 %vm146_vm0, %v1030_v1  ;;  %v2654_v5 = vld [vmem:[%s4480_s6 + $0x2] ss:$0 sm:$0xff] }
 0x1f2   :  { %3033 = vrsqrt.f32 %v1737_v0  ;;  %v3024_v14 = vpop.eup %3023  ;;  %2871 = vmatprep.mubr.msk.f32.mxu0 %vm146_vm0, %v1031_v54 }
 0x1f3   :  { %v1759_v13 = vmul.f32 %v2683_v7, %v1747_v62  ;;  %v1032_v37 = vmax.f32 %v1024_v12, 0.0  ;;  %v1770_v15 = vadd.f32 %v2684_v58, %v1758_v17  ;;  %v1748_v42 = vmul.f32 %v3024_v14, %v3550_v22 }
 0x1f5   :  { %v1778_v59 = vmax.f32 %v1770_v15, 0.0  ;;  %v1771_v23 = vadd.f32 %v2684_v58, %v1759_v13  ;;  %v1760_v51 = vmul.f32 %v2683_v7, %v1748_v42  ;;  %2872 = vmatmul.mubr.msk.f32.gmra.mxu0 %vm146_vm0, %v1032_v37 }
 0x1f6   :  { %v3026_v18 = vpop.eup %3025 }
 0x1f7   :  { %v3028_v39 = vpop.eup %3027  ;;  %2902 = vmatprep.mubr.msk.f32.mxu0 %vm146_vm0, %v1778_v59  ;;  %v1779_v44 = vmax.f32 %v1771_v23, 0.0  ;;  %v1772_v2 = vadd.f32 %v2684_v58, %v1760_v51  ;;  %v1750_v50 = vmul.f32 %v3026_v18, %v3559_v3 }
 0x1f8   :  { %v1749_v21 = vmul.f32 %v3028_v39, %v3562_v4 }
 0x1f9   :  { %v1780_v26 = vmax.f32 %v1772_v2, 0.0  ;;  %v1762_v24 = vmul.f32 %v2683_v7, %v1750_v50  ;;  %2903 = vmatmul.mubr.msk.f32.vlgmr.msra.gmra.mxu0 %vm146_vm0, %v1779_v44 }
 0x1fa   :  { %v3030_v28 = vpop.eup %3029  ;;  %v1761_v22 = vmul.f32 %v2683_v7, %v1749_v21 }
 0x1fb   :  { %v3032_v29 = vpop.eup %3031  ;;  %2905 = vmatprep.mubr.msk.f32.mxu0 %vm146_vm0, %v1780_v26  ;;  %v1774_v32 = vadd.f32 %v2684_v58, %v1762_v24  ;;  %v1752_v31 = vmul.f32 %v3030_v28, %v3570_v43 }
 0x1fc   :  { %v1773_v33 = vadd.f32 %v2684_v58, %v1761_v22  ;;  %v1751_v11 = vmul.f32 %v3032_v29, %v3573_v16 }
 0x1fd   :  { %v1782_v57 = vmax.f32 %v1774_v32, 0.0  ;;  %v1764_v35 = vmul.f32 %v2683_v7, %v1752_v31  ;;  %v2686_v32 = vld [vmem:[%s4480_s6 + $0x4] ss:$0 sm:$0xff] }
 0x1fe   :  { %v1781_v30 = vmax.f32 %v1773_v33, 0.0  ;;  %v1763_v4 = vmul.f32 %v2683_v7, %v1751_v11 }
 0x1ff   :  { %v3034_v3 = vpop.eup %3033  ;;  %v1776_v38 = vadd.f32 %v2684_v58, %v1764_v35 }
 0x200   :  { %v1753_v63 = vmul.f32 %v3034_v3, %v3582_v49  ;;  %2906 = vmatmul.mubr.msk.f32.gmra.mxu0 %vm146_vm0, %v1781_v30  ;;  %v1775_v40 = vadd.f32 %v2684_v58, %v1763_v4  ;;  %v2627_v49 = vld [vmem:[%s4480_s6] ss:$0 sm:$0xff] }
 0x201   :  { %2908 = vmatprep.mubr.msk.f32.mxu0 %vm146_vm0, %v1782_v57  ;;  %v1784_v9 = vmax.f32 %v1776_v38, 0.0 }
 0x202   :  { %v1765_v10 = vmul.f32 %v2683_v7, %v1753_v63  ;;  %v1783_v41 = vmax.f32 %v1775_v40, 0.0 }
 0x204   :  { %v1777_v43 = vadd.f32 %v2684_v58, %v1765_v10  ;;  %2909 = vmatmul.mubr.msk.f32.gmra.mxu0 %vm146_vm0, %v1783_v41 }
 0x205   :  { %2911 = vmatprep.mubr.msk.f32.mxu0 %vm146_vm0, %v1784_v9 }
 0x206   :  { %v1785_v16 = vmax.f32 %v1777_v43, 0.0 }
 0x208   :  { %2912 = vmatmul.mubr.msk.f32.gmra.mxu0 %vm146_vm0, %v1785_v16 }
 0x29a   :  { %v2824_v27 = vpop.f32.mrf.mxu1 }
 0x29b   :  { %v3702_v45 = vadd.f32 %v2824_v27, %v2627_v49 }
 0x29c   :  { %v383_v48 = vpop.f32.mrf.mxu1 }
 0x29d   :  { %v3704_v52 = vadd.f32 %v2627_v49, %v383_v48  ;;  %v427_v53 = vsel %vm146_vm0, %v3702_v45, 0.0 }
 0x29e   :  { %428 = vadd.xlane.f32.xlu0 %v427_v53  ;;  %v2827_v55 = vpop.f32.mrf.mxu1 }
 0x29f   :  { %v3708_v56 = vadd.f32 %v2827_v55, %v2627_v49  ;;  %v424_v19 = vsel %vm146_vm0, %v3704_v52, 0.0 }
 0x2a0   :  { %425 = vadd.xlane.f32.xlu1 %v424_v19  ;;  %v393_v25 = vpop.f32.mrf.mxu1 }
 0x2a1   :  { %v3712_v36 = vadd.f32 %v2627_v49, %v393_v25  ;;  %v433_v46 = vsel %vm146_vm0, %v3708_v56, 0.0 }
 0x2a2   :  { %434 = vadd.xlane.f32.xlu0 %v433_v46  ;;  %v2830_v60 = vpop.f32.mrf.mxu1 }
 0x2a3   :  { %v3716_v8 = vadd.f32 %v2830_v60, %v2627_v49  ;;  %v430_v20 = vsel %vm146_vm0, %v3712_v36, 0.0 }
 0x2a4   :  { %431 = vadd.xlane.f32.xlu1 %v430_v20  ;;  %v403_v61 = vpop.f32.mrf.mxu1 }
 0x2a5   :  { %v3720_v7 = vadd.f32 %v2627_v49, %v403_v61  ;;  %v439_v47 = vsel %vm146_vm0, %v3716_v8, 0.0 }
 0x2a6   :  { %440 = vadd.xlane.f32.xlu0 %v439_v47  ;;  %v2833_v0 = vpop.f32.mrf.mxu1 }
 0x2a7   :  { %v3724_v1 = vadd.f32 %v2833_v0, %v2627_v49  ;;  %v436_v34 = vsel %vm146_vm0, %v3720_v7, 0.0 }
 0x2a8   :  { %437 = vadd.xlane.f32.xlu1 %v436_v34  ;;  %v413_v6 = vpop.f32.mrf.mxu1 }
 0x2a9   :  { %v3731_v54 = vadd.f32 %v2627_v49, %v413_v6  ;;  %v445_v58 = vsel %vm146_vm0, %v3724_v1, 0.0  ;;  %v2864_v62 = vpop.f32.mrf.mxu0 }
 0x2aa   :  { %446 = vadd.xlane.f32.xlu0 %v445_v58  ;;  %v3735_v12 = vadd.f32 %v2864_v62, %v2654_v5 }
 0x2ab   :  { %v442_v17 = vsel %vm146_vm0, %v3731_v54, 0.0  ;;  %v1134_v14 = vpop.f32.mrf.mxu0 }
 0x2ac   :  { %443 = vadd.xlane.f32.xlu1 %v442_v17  ;;  %v3739_v13 = vadd.f32 %v2654_v5, %v1134_v14  ;;  %v1180_v37 = vsel %vm146_vm0, %v3735_v12, 0.0 }
 0x2ad   :  { %v2867_v15 = vpop.f32.mrf.mxu0 }
 0x2ae   :  { %1181 = vadd.xlane.f32.xlu0 %v1180_v37  ;;  %v1177_v42 = vsel %vm146_vm0, %v3739_v13, 0.0  ;;  %v3745_v59 = vadd.f32 %v2867_v15, %v2654_v5 }
 0x2af   :  { %v1144_v23 = vpop.f32.mrf.mxu0 }
 0x2b0   :  { %1178 = vadd.xlane.f32.xlu1 %v1177_v42  ;;  %v3747_v51 = vadd.f32 %v2654_v5, %v1144_v23  ;;  %v1186_v18 = vsel %vm146_vm0, %v3745_v59, 0.0 }
 0x2b1   :  { %v2870_v39 = vpop.f32.mrf.mxu0 }
 0x2b2   :  { %1187 = vadd.xlane.f32.xlu0 %v1186_v18  ;;  %v3751_v44 = vadd.f32 %v2870_v39, %v2654_v5  ;;  %v1183_v2 = vsel %vm146_vm0, %v3747_v51, 0.0 }
 0x2b3   :  { %v1154_v50 = vpop.f32.mrf.mxu0 }
 0x2b4   :  { %1184 = vadd.xlane.f32.xlu1 %v1183_v2  ;;  %v3755_v21 = vadd.f32 %v2654_v5, %v1154_v50  ;;  %v1192_v26 = vsel %vm146_vm0, %v3751_v44, 0.0 }
 0x2b5   :  { %v2873_v24 = vpop.f32.mrf.mxu0 }
 0x2b6   :  { %1193 = vadd.xlane.f32.xlu0 %v1192_v26  ;;  %v3759_v28 = vadd.f32 %v2873_v24, %v2654_v5  ;;  %v1189_v22 = vsel %vm146_vm0, %v3755_v21, 0.0 }
 0x2b7   :  { %v1164_v29 = vpop.f32.mrf.mxu0 }
 0x2b8   :  { %1190 = vadd.xlane.f32.xlu1 %v1189_v22  ;;  %v3766_v31 = vadd.f32 %v2654_v5, %v1164_v29  ;;  %v1198_v33 = vsel %vm146_vm0, %v3759_v28, 0.0 }
 0x2b9   :  { %v2904_v11 = vpop.f32.mrf.mxu0 }
 0x2ba   :  { %1199 = vadd.xlane.f32.xlu0 %v1198_v33  ;;  %v3770_v57 = vadd.f32 %v2904_v11, %v2686_v32  ;;  %v1195_v35 = vsel %vm146_vm0, %v3766_v31, 0.0 }
 0x2bb   :  { %v1887_v3 = vpop.f32.mrf.mxu0 }
 0x2bc   :  { %1196 = vadd.xlane.f32.xlu1 %v1195_v35  ;;  %v3774_v30 = vadd.f32 %v2686_v32, %v1887_v3  ;;  %v1933_v4 = vsel %vm146_vm0, %v3770_v57, 0.0 }
 0x2be   :  { %1934 = vadd.xlane.f32.xlu0 %v1933_v4  ;;  %v1930_v38 = vsel %vm146_vm0, %v3774_v30, 0.0 }
 0x2c0   :  { %1931 = vadd.xlane.f32.xlu1 %v1930_v38  ;;  %v2907_v63 = vpop.f32.mrf.mxu0 }
 0x2c1   :  { %v3780_v40 = vadd.f32 %v2907_v63, %v2686_v32 }
 0x2c2   :  { %v1897_v9 = vpop.f32.mrf.mxu0 }
 0x2c3   :  { %v3782_v10 = vadd.f32 %v2686_v32, %v1897_v9  ;;  %v1939_v41 = vsel %vm146_vm0, %v3780_v40, 0.0 }
 0x2c4   :  { %1940 = vadd.xlane.f32.xlu0 %v1939_v41  ;;  %v2910_v43 = vpop.f32.mrf.mxu0 }
 0x2c5   :  { %v3786_v16 = vadd.f32 %v2910_v43, %v2686_v32  ;;  %v1936_v49 = vsel %vm146_vm0, %v3782_v10, 0.0 }
 0x2c6   :  { %1937 = vadd.xlane.f32.xlu1 %v1936_v49  ;;  %v1907_v27 = vpop.f32.mrf.mxu0 }
 0x2c7   :  { %v3790_v48 = vadd.f32 %v2686_v32, %v1907_v27  ;;  %v1945_v53 = vsel %vm146_vm0, %v3786_v16, 0.0 }
 0x2c8   :  { %1946 = vadd.xlane.f32.xlu0 %v1945_v53  ;;  %v2913_v55 = vpop.f32.mrf.mxu0 }
 0x2c9   :  { %v3794_v19 = vadd.f32 %v2913_v55, %v2686_v32  ;;  %v1942_v25 = vsel %vm146_vm0, %v3790_v48, 0.0 }
 0x2ca   :  { %1943 = vadd.xlane.f32.xlu1 %v1942_v25  ;;  %v1917_v46 = vpop.f32.mrf.mxu0 }
 0x2cb   :  { %v3798_v60 = vadd.f32 %v2686_v32, %v1917_v46  ;;  %v1951_v20 = vsel %vm146_vm0, %v3794_v19, 0.0 }
 0x2cc   :  { %1952 = vadd.xlane.f32.xlu0 %v1951_v20 }
 0x2cd   :  { %v1948_v61 = vsel %vm146_vm0, %v3798_v60, 0.0 }
 0x2ce   :  { %1949 = vadd.xlane.f32.xlu1 %v1948_v61 }
 0x327   :  { %v429_v47 = vpop.xlane.xlu0 %428 }
 0x328   :  { %v449_v0 = vmul.f32 0.03125, %v429_v47 }
 0x329   :  { %v426_v34 = vpop.xlane.xlu1 %425 }
 0x32a   :  { %v3805_v5 = vsub.f32 %v3702_v45, %v449_v0  ;;  %v448_v6 = vmul.f32 0.03125, %v426_v34 }
 0x32b   :  { %v435_v58 = vpop.xlane.xlu0 %434 }
 0x32c   :  { %v3808_v62 = vsub.f32 %v3704_v52, %v448_v6  ;;  %v451_v17 = vmul.f32 0.03125, %v435_v58  ;;  %v465_v14 = vmul.f32 %v3805_v5, %v3805_v5 }
 0x32d   :  { %v432_v37 = vpop.xlane.xlu1 %431 }
 0x32e   :  { %v3813_v15 = vsub.f32 %v3708_v56, %v451_v17  ;;  %v450_v42 = vmul.f32 0.03125, %v432_v37  ;;  %v475_v23 = vsel %vm146_vm0, %v465_v14, 0.0  ;;  %v464_v45 = vmul.f32 %v3808_v62, %v3808_v62 }
 0x32f   :  { %476 = vadd.xlane.f32.xlu0 %v475_v23  ;;  %v441_v18 = vpop.xlane.xlu0 %440 }
 0x330   :  { %v3819_v39 = vsub.f32 %v3712_v36, %v450_v42  ;;  %v453_v52 = vmul.f32 0.03125, %v441_v18  ;;  %v472_v2 = vsel %vm146_vm0, %v464_v45, 0.0  ;;  %v467_v50 = vmul.f32 %v3813_v15, %v3813_v15 }
 0x331   :  { %v438_v26 = vpop.xlane.xlu1 %437  ;;  %473 = vadd.xlane.f32.xlu1 %v472_v2 }
 0x332   :  { %v3825_v56 = vsub.f32 %v3716_v8, %v453_v52  ;;  %v452_v24 = vmul.f32 0.03125, %v438_v26  ;;  %v481_v22 = vsel %vm146_vm0, %v467_v50, 0.0  ;;  %v466_v29 = vmul.f32 %v3819_v39, %v3819_v39 }
 0x333   :  { %482 = vadd.xlane.f32.xlu0 %v481_v22  ;;  %v447_v36 = vpop.xlane.xlu0 %446 }
 0x334   :  { %v3831_v32 = vsub.f32 %v3720_v7, %v452_v24  ;;  %v455_v33 = vmul.f32 0.03125, %v447_v36  ;;  %v478_v11 = vsel %vm146_vm0, %v466_v29, 0.0  ;;  %v469_v35 = vmul.f32 %v3825_v56, %v3825_v56 }
 0x335   :  { %v444_v3 = vpop.xlane.xlu1 %443  ;;  %479 = vadd.xlane.f32.xlu1 %v478_v11 }
 0x336   :  { %v3837_v8 = vsub.f32 %v3724_v1, %v455_v33  ;;  %v454_v4 = vmul.f32 0.03125, %v444_v3  ;;  %v487_v38 = vsel %vm146_vm0, %v469_v35, 0.0  ;;  %v468_v63 = vmul.f32 %v3831_v32, %v3831_v32 }
 0x337   :  { %488 = vadd.xlane.f32.xlu0 %v487_v38  ;;  %v1182_v7 = vpop.xlane.xlu0 %1181 }
 0x338   :  { %v3843_v9 = vsub.f32 %v3731_v54, %v454_v4  ;;  %v1202_v41 = vmul.f32 0.03125, %v1182_v7  ;;  %v484_v43 = vsel %vm146_vm0, %v468_v63, 0.0  ;;  %v471_v49 = vmul.f32 %v3837_v8, %v3837_v8 }
 0x339   :  { %v1179_v27 = vpop.xlane.xlu1 %1178  ;;  %485 = vadd.xlane.f32.xlu1 %v484_v43 }
 0x33a   :  { %v3849_v1 = vsub.f32 %v3735_v12, %v1202_v41  ;;  %v1201_v53 = vmul.f32 0.03125, %v1179_v27  ;;  %v493_v55 = vsel %vm146_vm0, %v471_v49, 0.0  ;;  %v470_v25 = vmul.f32 %v3843_v9, %v3843_v9 }
 0x33b   :  { %494 = vadd.xlane.f32.xlu0 %v493_v55  ;;  %v1188_v54 = vpop.xlane.xlu0 %1187 }
 0x33c   :  { %v3855_v46 = vsub.f32 %v3739_v13, %v1201_v53  ;;  %v1204_v20 = vmul.f32 0.03125, %v1188_v54  ;;  %v490_v61 = vsel %vm146_vm0, %v470_v25, 0.0  ;;  %v1218_v47 = vmul.f32 %v3849_v1, %v3849_v1  ;;  %v564_v53 = vld [vmem:[#allocation2 + $0x38] sm:$0xff] }
 0x33d   :  { %v1185_v0 = vpop.xlane.xlu1 %1184  ;;  %491 = vadd.xlane.f32.xlu1 %v490_v61  ;;  %2834 = vmatprep.subr.mxu1 %v564_v53 }
 0x33e   :  { %v3861_v12 = vsub.f32 %v3745_v59, %v1204_v20  ;;  %v1203_v34 = vmul.f32 0.03125, %v1185_v0  ;;  %v1228_v6 = vsel %vm146_vm0, %v1218_v47, 0.0  ;;  %v1217_v58 = vmul.f32 %v3855_v46, %v3855_v46  ;;  %2835 = vmatpush3.msra.mxu1 %v564_v53 }
 0x33f   :  { %1229 = vadd.xlane.f32.xlu0 %v1228_v6  ;;  %v1194_v13 = vpop.xlane.xlu0 %1193 }
 0x340   :  { %v3867_v17 = vsub.f32 %v3747_v51, %v1203_v34  ;;  %v1206_v14 = vmul.f32 0.03125, %v1194_v13  ;;  %v1225_v37 = vsel %vm146_vm0, %v1217_v58, 0.0  ;;  %v1220_v42 = vmul.f32 %v3861_v12, %v3861_v12  ;;  %v562_v34 = vld [vmem:[#allocation2 + $0x28] sm:$0xff] }
 0x341   :  { %v1191_v23 = vpop.xlane.xlu1 %1190  ;;  %1226 = vadd.xlane.f32.xlu1 %v1225_v37 }
 0x342   :  { %v3873_v59 = vsub.f32 %v3751_v44, %v1206_v14  ;;  %v1205_v45 = vmul.f32 0.03125, %v1191_v23  ;;  %v1234_v18 = vsel %vm146_vm0, %v1220_v42, 0.0  ;;  %v1219_v52 = vmul.f32 %v3867_v17, %v3867_v17 }
 0x343   :  { %1235 = vadd.xlane.f32.xlu0 %v1234_v18  ;;  %v1200_v51 = vpop.xlane.xlu0 %1199 }
 0x344   :  { %v3879_v2 = vsub.f32 %v3755_v21, %v1205_v45  ;;  %v1208_v50 = vmul.f32 0.03125, %v1200_v51  ;;  %v1231_v26 = vsel %vm146_vm0, %v1219_v52, 0.0  ;;  %v1222_v24 = vmul.f32 %v3873_v59, %v3873_v59 }
 0x345   :  { %v1197_v22 = vpop.xlane.xlu1 %1196  ;;  %1232 = vadd.xlane.f32.xlu1 %v1231_v26 }
 0x346   :  { %v3885_v44 = vsub.f32 %v3759_v28, %v1208_v50  ;;  %v1207_v29 = vmul.f32 0.03125, %v1197_v22  ;;  %v1240_v36 = vsel %vm146_vm0, %v1222_v24, 0.0  ;;  %v1221_v33 = vmul.f32 %v3879_v2, %v3879_v2 }
 0x347   :  { %1241 = vadd.xlane.f32.xlu0 %v1240_v36  ;;  %v1935_v21 = vpop.xlane.xlu0 %1934 }
 0x348   :  { %v3891_v11 = vsub.f32 %v3766_v31, %v1207_v29  ;;  %v1955_v35 = vmul.f32 0.03125, %v1935_v21  ;;  %v1237_v3 = vsel %vm146_vm0, %v1221_v33, 0.0  ;;  %v1224_v4 = vmul.f32 %v3885_v44, %v3885_v44 }
 0x349   :  { %v1932_v38 = vpop.xlane.xlu1 %1931  ;;  %1238 = vadd.xlane.f32.xlu1 %v1237_v3 }
 0x34a   :  { %v3897_v28 = vsub.f32 %v3770_v57, %v1955_v35  ;;  %v1954_v63 = vmul.f32 0.03125, %v1932_v38  ;;  %v1246_v7 = vsel %vm146_vm0, %v1224_v4, 0.0  ;;  %v1223_v41 = vmul.f32 %v3891_v11, %v3891_v11  ;;  %v3947_v35 = vld [vmem:[#allocation2 + $0x78] sm:$0xff] }
 0x34b   :  { %1247 = vadd.xlane.f32.xlu0 %v1246_v7 }
 0x34c   :  { %v3903_v31 = vsub.f32 %v3774_v30, %v1954_v63  ;;  %v1243_v43 = vsel %vm146_vm0, %v1223_v41, 0.0  ;;  %v1971_v49 = vmul.f32 %v3897_v28, %v3897_v28  ;;  %v563_v30 = vld [vmem:[#allocation2 + $0x30] sm:$0xff] }
 0x34d   :  { %1244 = vadd.xlane.f32.xlu1 %v1243_v43  ;;  %v1941_v27 = vpop.xlane.xlu0 %1940  ;;  %2836 = vmatprep.subr.mxu1 %v563_v30 }
 0x34e   :  { %v1957_v57 = vmul.f32 0.03125, %v1941_v27  ;;  %v1981_v55 = vsel %vm146_vm0, %v1971_v49, 0.0  ;;  %v1970_v25 = vmul.f32 %v3903_v31, %v3903_v31  ;;  %2837 = vmatpush3.msra.mxu1 %v563_v30 }
 0x34f   :  { %v1938_v54 = vpop.xlane.xlu1 %1937  ;;  %1982 = vadd.xlane.f32.xlu0 %v1981_v55  ;;  %2838 = vmatprep.subr.mxu1 %v562_v34 }
 0x350   :  { %v3912_v20 = vsub.f32 %v3780_v40, %v1957_v57  ;;  %v1956_v61 = vmul.f32 0.03125, %v1938_v54  ;;  %v1978_v47 = vsel %vm146_vm0, %v1970_v25, 0.0  ;;  %2839 = vmatpush3.msra.mxu1 %v562_v34  ;;  %v561_v40 = vld [vmem:[#allocation2 + $0x20] sm:$0xff] }
 0x351   :  { %1979 = vadd.xlane.f32.xlu1 %v1978_v47  ;;  %v1947_v0 = vpop.xlane.xlu0 %1946  ;;  %2840 = vmatprep.subr.mxu1 %v561_v40 }
 0x352   :  { %v3916_v6 = vsub.f32 %v3782_v10, %v1956_v61  ;;  %v1959_v58 = vmul.f32 0.03125, %v1947_v0  ;;  %v1973_v13 = vmul.f32 %v3912_v20, %v3912_v20  ;;  %2841 = vmatpush3.msra.mxu1 %v561_v40 }
 0x353   :  { %v1944_v14 = vpop.xlane.xlu1 %1943  ;;  %2874 = vmatprep.subr.mxu1 %v3947_v35 }
 0x354   :  { %v3921_v37 = vsub.f32 %v3786_v16, %v1959_v58  ;;  %v1958_v42 = vmul.f32 0.03125, %v1944_v14  ;;  %v1987_v23 = vsel %vm146_vm0, %v1973_v13, 0.0  ;;  %v1972_v45 = vmul.f32 %v3916_v6, %v3916_v6 }
 0x355   :  { %1988 = vadd.xlane.f32.xlu0 %v1987_v23  ;;  %v1953_v10 = vpop.xlane.xlu0 %1952 }
 0x356   :  { %v3927_v18 = vsub.f32 %v3790_v48, %v1958_v42  ;;  %v1961_v52 = vmul.f32 0.03125, %v1953_v10  ;;  %v1984_v51 = vsel %vm146_vm0, %v1972_v45, 0.0  ;;  %v1975_v16 = vmul.f32 %v3921_v37, %v3921_v37 }
 0x357   :  { %1985 = vadd.xlane.f32.xlu1 %v1984_v51  ;;  %v1950_v50 = vpop.xlane.xlu1 %1949 }
 0x358   :  { %v3933_v26 = vsub.f32 %v3794_v19, %v1961_v52  ;;  %v1960_v24 = vmul.f32 0.03125, %v1950_v50  ;;  %v1993_v22 = vsel %vm146_vm0, %v1975_v16, 0.0  ;;  %v1974_v29 = vmul.f32 %v3927_v18, %v3927_v18  ;;  %v3954_v52 = vld [vmem:[%s4481_s7] ss:$0 sm:$0xff] }
 0x359   :  { %1994 = vadd.xlane.f32.xlu0 %v1993_v22 }
 0x35a   :  { %v3939_v48 = vsub.f32 %v3798_v60, %v1960_v24  ;;  %v1990_v36 = vsel %vm146_vm0, %v1974_v29, 0.0  ;;  %v1977_v33 = vmul.f32 %v3933_v26, %v3933_v26 }
 0x35b   :  { %1991 = vadd.xlane.f32.xlu1 %v1990_v36 }
 0x35c   :  { %v1999_v21 = vsel %vm146_vm0, %v1977_v33, 0.0  ;;  %v1976_v19 = vmul.f32 %v3939_v48, %v3939_v48 }
 0x35d   :  { %2000 = vadd.xlane.f32.xlu0 %v1999_v21 }
 0x35e   :  { %v1996_v3 = vsel %vm146_vm0, %v1976_v19, 0.0  ;;  %v3961_v19 = vld [vmem:[%s4482_s8] ss:$0 sm:$0xff] }
 0x35f   :  { %1997 = vadd.xlane.f32.xlu1 %v1996_v3 }
 0x3b8   :  { %v477_v60 = vpop.xlane.xlu0 %476 }
 0x3b9   :  { %v497_v4 = vmul.f32 0.03125, %v477_v60 }
 0x3ba   :  { %v474_v38 = vpop.xlane.xlu1 %473 }
 0x3bb   :  { %v505_v63 = vadd.f32 1e-05, %v497_v4  ;;  %v496_v7 = vmul.f32 0.03125, %v474_v38 }
 0x3bc   :  { %v483_v41 = vpop.xlane.xlu0 %482 }
 0x3bd   :  { %3035 = vrsqrt.f32 %v505_v63  ;;  %v504_v43 = vadd.f32 1e-05, %v496_v7  ;;  %v499_v49 = vmul.f32 0.03125, %v483_v41 }
 0x3be   :  { %v480_v27 = vpop.xlane.xlu1 %479 }
 0x3bf   :  { %3037 = vrsqrt.f32 %v504_v43  ;;  %v507_v53 = vadd.f32 1e-05, %v499_v49  ;;  %v498_v57 = vmul.f32 0.03125, %v480_v27 }
 0x3c0   :  { %v489_v55 = vpop.xlane.xlu0 %488 }
 0x3c1   :  { %3039 = vrsqrt.f32 %v507_v53  ;;  %v506_v25 = vadd.f32 1e-05, %v498_v57  ;;  %v501_v54 = vmul.f32 0.03125, %v489_v55 }
 0x3c2   :  { %v486_v30 = vpop.xlane.xlu1 %485 }
 0x3c3   :  { %3041 = vrsqrt.f32 %v506_v25  ;;  %v509_v61 = vadd.f32 1e-05, %v501_v54  ;;  %v500_v47 = vmul.f32 0.03125, %v486_v30 }
 0x3c4   :  { %v495_v0 = vpop.xlane.xlu0 %494 }
 0x3c5   :  { %3043 = vrsqrt.f32 %v509_v61  ;;  %v508_v34 = vadd.f32 1e-05, %v500_v47  ;;  %v503_v58 = vmul.f32 0.03125, %v495_v0 }
 0x3c6   :  { %v492_v13 = vpop.xlane.xlu1 %491 }
 0x3c7   :  { %3045 = vrsqrt.f32 %v508_v34  ;;  %v511_v14 = vadd.f32 1e-05, %v503_v58  ;;  %v502_v40 = vmul.f32 0.03125, %v492_v13 }
 0x3c8   :  { %v1230_v42 = vpop.xlane.xlu0 %1229 }
 0x3c9   :  { %3047 = vrsqrt.f32 %v511_v14  ;;  %v510_v23 = vadd.f32 1e-05, %v502_v40  ;;  %v1250_v45 = vmul.f32 0.03125, %v1230_v42 }
 0x3ca   :  { %v3036_v10 = vpop.eup %3035  ;;  %v1227_v51 = vpop.xlane.xlu1 %1226 }
 0x3cb   :  { %v521_v16 = vmul.f32 %v3036_v10, %v3805_v5  ;;  %3049 = vrsqrt.f32 %v510_v23  ;;  %v1258_v50 = vadd.f32 1e-05, %v1250_v45  ;;  %v1249_v24 = vmul.f32 0.03125, %v1227_v51 }
 0x3cc   :  { %v3038_v22 = vpop.eup %3037  ;;  %v1236_v29 = vpop.xlane.xlu0 %1235 }
 0x3cd   :  { %v533_v36 = vmul.f32 %v3954_v52, %v521_v16  ;;  %3051 = vrsqrt.f32 %v1258_v50  ;;  %v1257_v33 = vadd.f32 1e-05, %v1249_v24  ;;  %v1252_v21 = vmul.f32 0.03125, %v1236_v29 }
 0x3ce   :  { %v3040_v3 = vpop.eup %3039  ;;  %v1233_v60 = vpop.xlane.xlu1 %1232  ;;  %v520_v4 = vmul.f32 %v3038_v22, %v3808_v62 }
 0x3cf   :  { %3053 = vrsqrt.f32 %v1257_v33  ;;  %v1260_v5 = vadd.f32 1e-05, %v1252_v21  ;;  %v1251_v38 = vmul.f32 0.03125, %v1233_v60  ;;  %v545_v43 = vadd.f32 %v3961_v19, %v533_v36  ;;  %v1315_v33 = vld [vmem:[#allocation2 + $0x68] sm:$0xff] }
 0x3d0   :  { %v3042_v63 = vpop.eup %3041  ;;  %v1242_v7 = vpop.xlane.xlu0 %1241  ;;  %v532_v41 = vmul.f32 %v3954_v52, %v520_v4  ;;  %v523_v49 = vmul.f32 %v3040_v3, %v3813_v15 }
 0x3d1   :  { %3055 = vrsqrt.f32 %v1260_v5  ;;  %v1259_v27 = vadd.f32 1e-05, %v1251_v38  ;;  %v1254_v53 = vmul.f32 0.03125, %v1242_v7  ;;  %v522_v62 = vmul.f32 %v3042_v63, %v3819_v39  ;;  %v3986_v63 = vld [vmem:[%s4481_s7 + $0x2] ss:$0 sm:$0xff] }
 0x3d2   :  { %v3044_v57 = vpop.eup %3043  ;;  %v1239_v55 = vpop.xlane.xlu1 %1238  ;;  %v544_v25 = vadd.f32 %v3961_v19, %v532_v41  ;;  %v535_v54 = vmul.f32 %v3954_v52, %v523_v49  ;;  %v553_v15 = vmax.f32 %v545_v43, 0.0  ;;  %v1314_v41 = vld [vmem:[#allocation2 + $0x60] sm:$0xff] }
 0x3d3   :  { %3057 = vrsqrt.f32 %v1259_v27  ;;  %v1262_v30 = vadd.f32 1e-05, %v1254_v53  ;;  %v1253_v61 = vmul.f32 0.03125, %v1239_v55  ;;  %v525_v47 = vmul.f32 %v3044_v57, %v3825_v56  ;;  %v1316_v56 = vld [vmem:[#allocation2 + $0x70] sm:$0xff] }
 0x3d4   :  { %v3046_v0 = vpop.eup %3045  ;;  %v1248_v34 = vpop.xlane.xlu0 %1247  ;;  %v552_v58 = vmax.f32 %v544_v25, 0.0  ;;  %v534_v13 = vmul.f32 %v3954_v52, %v522_v62  ;;  %v547_v14 = vadd.f32 %v3961_v19, %v535_v54 }
 0x3d5   :  { %3059 = vrsqrt.f32 %v1262_v30  ;;  %v1261_v40 = vadd.f32 1e-05, %v1253_v61  ;;  %v1256_v42 = vmul.f32 0.03125, %v1248_v34  ;;  %v524_v39 = vmul.f32 %v3046_v0, %v3831_v32 }
 0x3d6   :  { %v3048_v23 = vpop.eup %3047  ;;  %2842 = vmatprep.mubr.msk.f32.mxu1 %vm146_vm0, %v552_v58  ;;  %v1245_v45 = vpop.xlane.xlu1 %1244  ;;  %v546_v10 = vadd.f32 %v3961_v19, %v534_v13  ;;  %v537_v51 = vmul.f32 %v3954_v52, %v525_v47  ;;  %v555_v36 = vmax.f32 %v547_v14, 0.0 }
 0x3d7   :  { %3061 = vrsqrt.f32 %v1261_v40  ;;  %v1264_v16 = vadd.f32 1e-05, %v1256_v42  ;;  %v1255_v50 = vmul.f32 0.03125, %v1245_v45  ;;  %2843 = vmatmul.mubr.msk.f32.vlgmr.msra.gmra.mxu1 %vm146_vm0, %v553_v15  ;;  %v536_v24 = vmul.f32 %v3954_v52, %v524_v39 }
 0x3d8   :  { %v3050_v22 = vpop.eup %3049  ;;  %2875 = vmatpush3.msra.mxu1 %v3947_v35  ;;  %v1983_v32 = vpop.xlane.xlu0 %1982  ;;  %v554_v29 = vmax.f32 %v546_v10, 0.0  ;;  %v549_v21 = vadd.f32 %v3961_v19, %v537_v51  ;;  %v527_v3 = vmul.f32 %v3048_v23, %v3837_v8 }
 0x3d9   :  { %3063 = vrsqrt.f32 %v1264_v16  ;;  %v1263_v60 = vadd.f32 1e-05, %v1255_v50  ;;  %v2003_v4 = vmul.f32 0.03125, %v1983_v32  ;;  %2876 = vmatprep.subr.mxu1 %v1316_v56  ;;  %v548_v5 = vadd.f32 %v3961_v19, %v536_v24 }
 0x3da   :  { %v3052_v38 = vpop.eup %3051  ;;  %2845 = vmatprep.mubr.msk.f32.mxu1 %vm146_vm0, %v554_v29  ;;  %v1980_v35 = vpop.xlane.xlu1 %1979  ;;  %2877 = vmatpush3.msra.mxu1 %v1316_v56  ;;  %v526_v7 = vmul.f32 %v3050_v22, %v3843_v9  ;;  %v539_v8 = vmul.f32 %v3954_v52, %v527_v3  ;;  %v557_v55 = vmax.f32 %v549_v21, 0.0  ;;  %v2070_v9 = vld [vmem:[#allocation2 + $0xb8] sm:$0xff] }
 0x3db   :  { %v1274_v43 = vmul.f32 %v3052_v38, %v3849_v1  ;;  %3065 = vrsqrt.f32 %v1263_v60  ;;  %v2011_v49 = vadd.f32 1e-05, %v2003_v4  ;;  %v2002_v27 = vmul.f32 0.03125, %v1980_v35  ;;  %2846 = vmatmul.mubr.msk.f32.gmra.mxu1 %vm146_vm0, %v555_v36  ;;  %2878 = vmatprep.subr.mxu1 %v1315_v33  ;;  %v3999_v1 = vld [vmem:[%s4482_s8 + $0x2] ss:$0 sm:$0xff]  ;;  %v2069_v38 = vld [vmem:[#allocation2 + $0xb0] sm:$0xff] }
 0x3dc   :  { %v3054_v53 = vpop.eup %3053  ;;  %v556_v57 = vmax.f32 %v548_v5, 0.0  ;;  %2879 = vmatpush3.msra.mxu1 %v1315_v33  ;;  %v538_v25 = vmul.f32 %v3954_v52, %v526_v7  ;;  %v551_v62 = vadd.f32 %v3961_v19, %v539_v8 }
 0x3dd   :  { %v1286_v54 = vmul.f32 %v3986_v63, %v1274_v43  ;;  %3067 = vrsqrt.f32 %v2011_v49  ;;  %v2010_v30 = vadd.f32 1e-05, %v2002_v27  ;;  %2880 = vmatprep.subr.mxu1 %v1314_v41  ;;  %v1273_v61 = vmul.f32 %v3054_v53, %v3855_v46 }
 0x3de   :  { %v3056_v47 = vpop.eup %3055  ;;  %2848 = vmatprep.mubr.msk.f32.mxu1 %vm146_vm0, %v556_v57  ;;  %v1989_v0 = vpop.xlane.xlu0 %1988  ;;  %v550_v52 = vadd.f32 %v3961_v19, %v538_v25  ;;  %2881 = vmatpush3.msra.mxu1 %v1314_v41  ;;  %v559_v23 = vmax.f32 %v551_v62, 0.0 }
 0x3df   :  { %3069 = vrsqrt.f32 %v2010_v30  ;;  %2849 = vmatmul.mubr.msk.f32.gmra.mxu1 %vm146_vm0, %v557_v55  ;;  %v2005_v34 = vmul.f32 0.03125, %v1989_v0  ;;  %v1285_v58 = vmul.f32 %v3986_v63, %v1273_v61  ;;  %2914 = vmatprep.subr.mxu1 %v2070_v9  ;;  %v1298_v40 = vadd.f32 %v3999_v1, %v1286_v54  ;;  %v4028_v30 = vld [vmem:[%s4481_s7 + $0x4] ss:$0 sm:$0xff] }
 0x3e0   :  { %v3058_v15 = vpop.eup %3057  ;;  %v1986_v13 = vpop.xlane.xlu1 %1985  ;;  %v558_v14 = vmax.f32 %v550_v52, 0.0  ;;  %v1276_v46 = vmul.f32 %v3056_v47, %v3861_v12  ;;  %v2067_v61 = vld [vmem:[#allocation2 + $0xa0] sm:$0xff] }
 0x3e1   :  { %v2013_v42 = vadd.f32 1e-05, %v2005_v34  ;;  %v2004_v39 = vmul.f32 0.03125, %v1986_v13  ;;  %v1297_v19 = vadd.f32 %v3999_v1, %v1285_v58  ;;  %v1275_v56 = vmul.f32 %v3058_v15, %v3867_v17 }
 0x3e2   :  { %v3060_v45 = vpop.eup %3059  ;;  %2851 = vmatprep.mubr.msk.f32.mxu1 %vm146_vm0, %v558_v14  ;;  %v1995_v10 = vpop.xlane.xlu0 %1994  ;;  %v1288_v51 = vmul.f32 %v3986_v63, %v1276_v46  ;;  %v1306_v32 = vmax.f32 %v1298_v40, 0.0  ;;  %v2698_v40 = vld [vmem:[%s4482_s8 + $0x4] ss:$0 sm:$0xff] }
 0x3e3   :  { %3071 = vrsqrt.f32 %v2013_v42  ;;  %v2012_v16 = vadd.f32 1e-05, %v2004_v39  ;;  %2852 = vmatmul.mubr.msk.f32.gmra.mxu1 %vm146_vm0, %v559_v23  ;;  %v2007_v50 = vmul.f32 0.03125, %v1995_v10  ;;  %v1305_v24 = vmax.f32 %v1297_v19, 0.0 }
 0x3e4   :  { %v3062_v12 = vpop.eup %3061  ;;  %v1992_v22 = vpop.xlane.xlu1 %1991  ;;  %v1287_v29 = vmul.f32 %v3986_v63, %v1275_v56  ;;  %v1300_v36 = vadd.f32 %v3999_v1, %v1288_v51  ;;  %v1278_v33 = vmul.f32 %v3060_v45, %v3873_v59 }
 0x3e5   :  { %3073 = vrsqrt.f32 %v2012_v16  ;;  %v2015_v21 = vadd.f32 1e-05, %v2007_v50  ;;  %v2006_v17 = vmul.f32 0.03125, %v1992_v22  ;;  %2882 = vmatprep.mubr.msk.f32.mxu1 %vm146_vm0, %v1305_v24  ;;  %v1277_v3 = vmul.f32 %v3062_v12, %v3879_v2  ;;  %v2068_v2 = vld [vmem:[#allocation2 + $0xa8] sm:$0xff] }
 0x3e6   :  { %v3064_v60 = vpop.eup %3063  ;;  %v2001_v4 = vpop.xlane.xlu0 %2000  ;;  %v1299_v5 = vadd.f32 %v3999_v1, %v1287_v29  ;;  %v1290_v35 = vmul.f32 %v3986_v63, %v1278_v33  ;;  %v1308_v27 = vmax.f32 %v1300_v36, 0.0 }
 0x3e7   :  { %3075 = vrsqrt.f32 %v2015_v21  ;;  %v2014_v7 = vadd.f32 1e-05, %v2006_v17  ;;  %2883 = vmatmul.mubr.msk.f32.vlgmr.msra.gmra.mxu1 %vm146_vm0, %v1306_v32  ;;  %v2009_v41 = vmul.f32 0.03125, %v2001_v4  ;;  %v1289_v59 = vmul.f32 %v3986_v63, %v1277_v3 }
 0x3e8   :  { %v3066_v8 = vpop.eup %3065  ;;  %2915 = vmatpush3.msra.mxu1 %v2070_v9  ;;  %v1998_v43 = vpop.xlane.xlu1 %1997  ;;  %v1307_v49 = vmax.f32 %v1299_v5, 0.0  ;;  %v1302_v53 = vadd.f32 %v3999_v1, %v1290_v35  ;;  %v1280_v57 = vmul.f32 %v3064_v60, %v3885_v44 }
 0x3e9   :  { %3077 = vrsqrt.f32 %v2014_v7  ;;  %v2017_v55 = vadd.f32 1e-05, %v2009_v41  ;;  %v2008_v25 = vmul.f32 0.03125, %v1998_v43  ;;  %2916 = vmatprep.subr.mxu1 %v2069_v38  ;;  %v1301_v62 = vadd.f32 %v3999_v1, %v1289_v59 }
 0x3ea   :  { %v3068_v54 = vpop.eup %3067  ;;  %2885 = vmatprep.mubr.msk.f32.mxu1 %vm146_vm0, %v1307_v49  ;;  %2917 = vmatpush3.msra.mxu1 %v2069_v38  ;;  %v1279_v9 = vmul.f32 %v3066_v8, %v3891_v11  ;;  %v1292_v44 = vmul.f32 %v3986_v63, %v1280_v57  ;;  %v1310_v58 = vmax.f32 %v1302_v53, 0.0 }
 0x3eb   :  { %v2027_v47 = vmul.f32 %v3068_v54, %v3897_v28  ;;  %3079 = vrsqrt.f32 %v2017_v55  ;;  %v2016_v0 = vadd.f32 1e-05, %v2008_v25  ;;  %2886 = vmatmul.mubr.msk.f32.gmra.mxu1 %vm146_vm0, %v1308_v27  ;;  %v1309_v52 = vmax.f32 %v1301_v62, 0.0  ;;  %2918 = vmatprep.subr.mxu1 %v2068_v2  ;;  %v2668_v55 = vld [vmem:[%s4480_s6 + $0x3] ss:$0 sm:$0xff] }
 0x3ec   :  { %v3070_v34 = vpop.eup %3069  ;;  %2919 = vmatpush3.msra.mxu1 %v2068_v2  ;;  %v1291_v15 = vmul.f32 %v3986_v63, %v1279_v9  ;;  %v1304_v11 = vadd.f32 %v3999_v1, %v1292_v44 }
 0x3ed   :  { %v2039_v13 = vmul.f32 %v4028_v30, %v2027_v47  ;;  %3081 = vrsqrt.f32 %v2016_v0  ;;  %2888 = vmatprep.mubr.msk.f32.mxu1 %vm146_vm0, %v1309_v52  ;;  %2920 = vmatprep.subr.mxu1 %v2067_v61  ;;  %v2026_v28 = vmul.f32 %v3070_v34, %v3903_v31 }
 0x3ee   :  { %v1303_v14 = vadd.f32 %v3999_v1, %v1291_v15  ;;  %2921 = vmatpush3.msra.mxu1 %v2067_v61  ;;  %v1312_v39 = vmax.f32 %v1304_v11, 0.0 }
 0x3ef   :  { %2889 = vmatmul.mubr.msk.f32.gmra.mxu1 %vm146_vm0, %v1310_v58  ;;  %v2038_v63 = vmul.f32 %v4028_v30, %v2026_v28  ;;  %v2051_v19 = vadd.f32 %v2698_v40, %v2039_v13 }
 0x3f0   :  { %v3072_v46 = vpop.eup %3071  ;;  %v1311_v42 = vmax.f32 %v1303_v14, 0.0 }
 0x3f1   :  { %v2050_v23 = vadd.f32 %v2698_v40, %v2038_v63  ;;  %v2029_v45 = vmul.f32 %v3072_v46, %v3912_v20  ;;  %v2059_v16 = vmax.f32 %v2051_v19, 0.0 }
 0x3f2   :  { %v3074_v10 = vpop.eup %3073  ;;  %2891 = vmatprep.mubr.msk.f32.mxu1 %vm146_vm0, %v1311_v42 }
 0x3f3   :  { %2892 = vmatmul.mubr.msk.f32.gmra.mxu1 %vm146_vm0, %v1312_v39  ;;  %v2058_v31 = vmax.f32 %v2050_v23, 0.0  ;;  %v2028_v1 = vmul.f32 %v3074_v10, %v3916_v6  ;;  %v2041_v56 = vmul.f32 %v4028_v30, %v2029_v45  ;;  %v2700_v39 = vld [vmem:[%s4480_s6 + $0x5] ss:$0 sm:$0xff] }
 0x3f4   :  { %v3076_v51 = vpop.eup %3075 }
 0x3f5   :  { %2922 = vmatprep.mubr.msk.f32.mxu1 %vm146_vm0, %v2058_v31  ;;  %v2040_v50 = vmul.f32 %v4028_v30, %v2028_v1  ;;  %v2031_v24 = vmul.f32 %v3076_v51, %v3921_v37  ;;  %v2053_v20 = vadd.f32 %v2698_v40, %v2041_v56 }
 0x3f6   :  { %v3078_v12 = vpop.eup %3077 }
 0x3f7   :  { %2923 = vmatmul.mubr.msk.f32.vlgmr.msra.gmra.mxu1 %vm146_vm0, %v2059_v16  ;;  %v2052_v22 = vadd.f32 %v2698_v40, %v2040_v50  ;;  %v2030_v32 = vmul.f32 %v3078_v12, %v3927_v18  ;;  %v2043_v29 = vmul.f32 %v4028_v30, %v2031_v24  ;;  %v2061_v3 = vmax.f32 %v2053_v20, 0.0 }
 0x3f8   :  { %v3080_v6 = vpop.eup %3079 }
 0x3f9   :  { %v2060_v36 = vmax.f32 %v2052_v22, 0.0  ;;  %v2042_v33 = vmul.f32 %v4028_v30, %v2030_v32  ;;  %v2033_v21 = vmul.f32 %v3080_v6, %v3933_v26  ;;  %v2055_v60 = vadd.f32 %v2698_v40, %v2043_v29 }
 0x3fa   :  { %v3082_v17 = vpop.eup %3081 }
 0x3fb   :  { %2925 = vmatprep.mubr.msk.f32.mxu1 %vm146_vm0, %v2060_v36  ;;  %v2054_v37 = vadd.f32 %v2698_v40, %v2042_v33  ;;  %v2032_v4 = vmul.f32 %v3082_v17, %v3939_v48  ;;  %v2045_v5 = vmul.f32 %v4028_v30, %v2033_v21  ;;  %v2063_v35 = vmax.f32 %v2055_v60, 0.0  ;;  %v2638_v17 = vld [vmem:[%s4480_s6 + $0x1] ss:$0 sm:$0xff] }
 0x3fc   :  { %2926 = vmatmul.mubr.msk.f32.gmra.mxu1 %vm146_vm0, %v2061_v3 }
 0x3fd   :  { %v2062_v18 = vmax.f32 %v2054_v37, 0.0  ;;  %v2044_v38 = vmul.f32 %v4028_v30, %v2032_v4  ;;  %v2057_v7 = vadd.f32 %v2698_v40, %v2045_v5 }
 0x3ff   :  { %2928 = vmatprep.mubr.msk.f32.mxu1 %vm146_vm0, %v2062_v18  ;;  %v2056_v26 = vadd.f32 %v2698_v40, %v2044_v38  ;;  %v2065_v59 = vmax.f32 %v2057_v7, 0.0 }
 0x400   :  { %2929 = vmatmul.mubr.msk.f32.gmra.mxu1 %vm146_vm0, %v2063_v35 }
 0x401   :  { %v2064_v41 = vmax.f32 %v2056_v26, 0.0 }
 0x403   :  { %2931 = vmatprep.mubr.msk.f32.mxu1 %vm146_vm0, %v2064_v41 }
 0x404   :  { %2932 = vmatmul.mubr.msk.f32.gmra.mxu1 %vm146_vm0, %v2065_v59 }
 0x497   :  { %v4068_v48 = vpop.f32.mrf.mxu1 }
 0x498   :  { %v4152_v5 = vadd.f32 %v4068_v48, %v2638_v17 }
 0x499   :  { %v4070_v8 = vpop.f32.mrf.mxu1 }
 0x49a   :  { %v4159_v35 = vadd.f32 %v2638_v17, %v4070_v8  ;;  %v704_v41 = vsel %vm146_vm0, %v4152_v5, 0.0 }
 0x49b   :  { %v4072_v43 = vpop.f32.mrf.mxu1 }
 0x49c   :  { %v4164_v26 = vadd.f32 %v4072_v43, %v2638_v17  ;;  %v701_v48 = vsel %vm146_vm0, %v4159_v35, 0.0 }
 0x49d   :  { %v4074_v49 = vpop.f32.mrf.mxu1 }
 0x49e   :  { %v4169_v59 = vadd.f32 %v2638_v17, %v4074_v49 }
 0x49f   :  { %v4076_v27 = vpop.f32.mrf.mxu1 }
 0x4a0   :  { %v4174_v8 = vadd.f32 %v4076_v27, %v2638_v17 }
 0x4a1   :  { %v4078_v2 = vpop.f32.mrf.mxu1 }
 0x4a2   :  { %v4179_v43 = vadd.f32 %v2638_v17, %v4078_v2 }
 0x4a3   :  { %v4080_v53 = vpop.f32.mrf.mxu1 }
 0x4a4   :  { %v4184_v49 = vadd.f32 %v4080_v53, %v2638_v17 }
 0x4a5   :  { %v4082_v57 = vpop.f32.mrf.mxu1 }
 0x4a6   :  { %v4189_v27 = vadd.f32 %v2638_v17, %v4082_v57  ;;  %v722_v2 = vsel %vm146_vm0, %v4184_v49, 0.0 }
 0x4a7   :  { %v2884_v25 = vpop.f32.mrf.mxu1 }
 0x4a8   :  { %v4087_v62 = vadd.f32 %v2884_v25, %v2668_v55  ;;  %v707_v25 = vsel %vm146_vm0, %v4169_v59, 0.0 }
 0x4a9   :  { %v1413_v54 = vpop.f32.mrf.mxu1 }
 0x4aa   :  { %v4089_v30 = vadd.f32 %v2668_v55, %v1413_v54  ;;  %v1457_v9 = vsel %vm146_vm0, %v4087_v62, 0.0  ;;  %v716_v54 = vsel %vm146_vm0, %v4174_v8, 0.0 }
 0x4ab   :  { %1458 = vadd.xlane.f32.xlu0 %v1457_v9  ;;  %v2887_v61 = vpop.f32.mrf.mxu1  ;;  %v713_v9 = vsel %vm146_vm0, %v4179_v43, 0.0 }
 0x4ac   :  { %v4093_v44 = vadd.f32 %v2887_v61, %v2668_v55  ;;  %v1454_v47 = vsel %vm146_vm0, %v4089_v30, 0.0  ;;  %v719_v61 = vsel %vm146_vm0, %v4189_v27, 0.0 }
 0x4ad   :  { %1455 = vadd.xlane.f32.xlu1 %v1454_v47  ;;  %v1423_v0 = vpop.f32.mrf.mxu1 }
 0x4ae   :  { %v4097_v52 = vadd.f32 %v2668_v55, %v1423_v0  ;;  %v1463_v34 = vsel %vm146_vm0, %v4093_v44, 0.0 }
 0x4af   :  { %1464 = vadd.xlane.f32.xlu0 %v1463_v34  ;;  %v2890_v58 = vpop.f32.mrf.mxu1 }
 0x4b0   :  { %v4101_v15 = vadd.f32 %v2890_v58, %v2668_v55  ;;  %v1460_v13 = vsel %vm146_vm0, %v4097_v52, 0.0 }
 0x4b1   :  { %1461 = vadd.xlane.f32.xlu1 %v1460_v13  ;;  %v1433_v11 = vpop.f32.mrf.mxu1 }
 0x4b2   :  { %v4105_v28 = vadd.f32 %v2668_v55, %v1433_v11  ;;  %v1469_v14 = vsel %vm146_vm0, %v4101_v15, 0.0 }
 0x4b3   :  { %1470 = vadd.xlane.f32.xlu0 %v1469_v14  ;;  %v2893_v40 = vpop.f32.mrf.mxu1 }
 0x4b4   :  { %v4109_v63 = vadd.f32 %v2893_v40, %v2668_v55  ;;  %v1466_v46 = vsel %vm146_vm0, %v4105_v28, 0.0 }
 0x4b5   :  { %1467 = vadd.xlane.f32.xlu1 %v1466_v46  ;;  %v1443_v42 = vpop.f32.mrf.mxu1 }
 0x4b6   :  { %v4116_v23 = vadd.f32 %v2668_v55, %v1443_v42  ;;  %v1475_v19 = vsel %vm146_vm0, %v4109_v63, 0.0  ;;  %v710_v55 = vsel %vm146_vm0, %v4164_v26, 0.0 }
 0x4b7   :  { %1476 = vadd.xlane.f32.xlu0 %v1475_v19  ;;  %v2924_v45 = vpop.f32.mrf.mxu1 }
 0x4b8   :  { %v4120_v10 = vadd.f32 %v2924_v45, %v2700_v39  ;;  %v1472_v31 = vsel %vm146_vm0, %v4116_v23, 0.0 }
 0x4b9   :  { %1473 = vadd.xlane.f32.xlu1 %v1472_v31  ;;  %v2166_v1 = vpop.f32.mrf.mxu1 }
 0x4ba   :  { %v4124_v56 = vadd.f32 %v2700_v39, %v2166_v1  ;;  %v2210_v51 = vsel %vm146_vm0, %v4120_v10, 0.0 }
 0x4bb   :  { %2211 = vadd.xlane.f32.xlu0 %v2210_v51 }
 0x4bc   :  { %v2207_v16 = vsel %vm146_vm0, %v4124_v56, 0.0  ;;  %v2927_v50 = vpop.f32.mrf.mxu1 }
 0x4bd   :  { %2208 = vadd.xlane.f32.xlu1 %v2207_v16  ;;  %v4130_v24 = vadd.f32 %v2927_v50, %v2700_v39 }
 0x4be   :  { %v2176_v12 = vpop.f32.mrf.mxu1 }
 0x4bf   :  { %v4132_v20 = vadd.f32 %v2700_v39, %v2176_v12  ;;  %v2216_v22 = vsel %vm146_vm0, %v4130_v24, 0.0 }
 0x4c0   :  { %2217 = vadd.xlane.f32.xlu0 %v2216_v22  ;;  %v2930_v32 = vpop.f32.mrf.mxu1 }
 0x4c1   :  { %v4136_v29 = vadd.f32 %v2930_v32, %v2700_v39  ;;  %v2213_v6 = vsel %vm146_vm0, %v4132_v20, 0.0 }
 0x4c2   :  { %2214 = vadd.xlane.f32.xlu1 %v2213_v6  ;;  %v2186_v36 = vpop.f32.mrf.mxu1 }
 0x4c3   :  { %v4140_v33 = vadd.f32 %v2700_v39, %v2186_v36  ;;  %v2222_v21 = vsel %vm146_vm0, %v4136_v29, 0.0 }
 0x4c4   :  { %2223 = vadd.xlane.f32.xlu0 %v2222_v21  ;;  %v2933_v3 = vpop.f32.mrf.mxu1 }
 0x4c5   :  { %v4147_v60 = vadd.f32 %v2933_v3, %v2700_v39  ;;  %v2219_v37 = vsel %vm146_vm0, %v4140_v33, 0.0 }
 0x4c6   :  { %2220 = vadd.xlane.f32.xlu1 %v2219_v37  ;;  %v2196_v4 = vpop.f32.mrf.mxu1 }
 0x4c7   :  { %v4154_v18 = vadd.f32 %v2700_v39, %v2196_v4  ;;  %v2228_v38 = vsel %vm146_vm0, %v4147_v60, 0.0 }
 0x4c8   :  { %2229 = vadd.xlane.f32.xlu0 %v2228_v38 }
 0x4c9   :  { %v2225_v7 = vsel %vm146_vm0, %v4154_v18, 0.0 }
 0x4ca   :  { %2226 = vadd.xlane.f32.xlu1 %v2225_v7 }
 0x4cc   :  { %705 = vadd.xlane.f32.xlu0 %v704_v41 }
 0x4ce   :  { %702 = vadd.xlane.f32.xlu1 %v701_v48 }
 0x4d0   :  { %711 = vadd.xlane.f32.xlu0 %v710_v55 }
 0x4d2   :  { %708 = vadd.xlane.f32.xlu1 %v707_v25 }
 0x4d4   :  { %717 = vadd.xlane.f32.xlu0 %v716_v54 }
 0x4d6   :  { %714 = vadd.xlane.f32.xlu1 %v713_v9 }
 0x4d8   :  { %723 = vadd.xlane.f32.xlu0 %v722_v2 }
 0x4da   :  { %720 = vadd.xlane.f32.xlu1 %v719_v61 }
 0x534   :  { %v1459_v53 = vpop.xlane.xlu0 %1458 }
 0x535   :  { %v1479_v47 = vmul.f32 0.03125, %v1459_v53 }
 0x536   :  { %v1456_v0 = vpop.xlane.xlu1 %1455 }
 0x537   :  { %v4198_v34 = vsub.f32 %v4087_v62, %v1479_v47  ;;  %v1478_v57 = vmul.f32 0.03125, %v1456_v0 }
 0x538   :  { %v1465_v58 = vpop.xlane.xlu0 %1464 }
 0x539   :  { %v4201_v13 = vsub.f32 %v4089_v30, %v1478_v57  ;;  %v1481_v11 = vmul.f32 0.03125, %v1465_v58  ;;  %v1495_v14 = vmul.f32 %v4198_v34, %v4198_v34 }
 0x53a   :  { %v1462_v40 = vpop.xlane.xlu1 %1461 }
 0x53b   :  { %v4206_v46 = vsub.f32 %v4093_v44, %v1481_v11  ;;  %v1480_v42 = vmul.f32 0.03125, %v1462_v40  ;;  %v1505_v39 = vsel %vm146_vm0, %v1495_v14, 0.0  ;;  %v1494_v62 = vmul.f32 %v4201_v13, %v4201_v13 }
 0x53c   :  { %1506 = vadd.xlane.f32.xlu0 %v1505_v39  ;;  %v1471_v19 = vpop.xlane.xlu0 %1470 }
 0x53d   :  { %v4212_v45 = vsub.f32 %v4097_v52, %v1480_v42  ;;  %v1483_v30 = vmul.f32 0.03125, %v1471_v19  ;;  %v1502_v31 = vsel %vm146_vm0, %v1494_v62, 0.0  ;;  %v1497_v1 = vmul.f32 %v4206_v46, %v4206_v46 }
 0x53e   :  { %v1468_v51 = vpop.xlane.xlu1 %1467  ;;  %1503 = vadd.xlane.f32.xlu1 %v1502_v31 }
 0x53f   :  { %v4218_v44 = vsub.f32 %v4101_v15, %v1483_v30  ;;  %v1482_v16 = vmul.f32 0.03125, %v1468_v51  ;;  %v1511_v50 = vsel %vm146_vm0, %v1497_v1, 0.0  ;;  %v1496_v12 = vmul.f32 %v4212_v45, %v4212_v45 }
 0x540   :  { %1512 = vadd.xlane.f32.xlu0 %v1511_v50  ;;  %v1477_v52 = vpop.xlane.xlu0 %1476 }
 0x541   :  { %v4224_v22 = vsub.f32 %v4105_v28, %v1482_v16  ;;  %v1485_v32 = vmul.f32 0.03125, %v1477_v52  ;;  %v1508_v6 = vsel %vm146_vm0, %v1496_v12, 0.0  ;;  %v1499_v36 = vmul.f32 %v4218_v44, %v4218_v44 }
 0x542   :  { %v1474_v21 = vpop.xlane.xlu1 %1473  ;;  %1509 = vadd.xlane.f32.xlu1 %v1508_v6 }
 0x543   :  { %v4230_v15 = vsub.f32 %v4109_v63, %v1485_v32  ;;  %v1484_v17 = vmul.f32 0.03125, %v1474_v21  ;;  %v1517_v3 = vsel %vm146_vm0, %v1499_v36, 0.0  ;;  %v1498_v37 = vmul.f32 %v4224_v22, %v4224_v22 }
 0x544   :  { %1518 = vadd.xlane.f32.xlu0 %v1517_v3  ;;  %v2212_v28 = vpop.xlane.xlu0 %2211 }
 0x545   :  { %v4236_v4 = vsub.f32 %v4116_v23, %v1484_v17  ;;  %v2232_v38 = vmul.f32 0.03125, %v2212_v28  ;;  %v1514_v7 = vsel %vm146_vm0, %v1498_v37, 0.0  ;;  %v1501_v41 = vmul.f32 %v4230_v15, %v4230_v15 }
 0x546   :  { %v2209_v48 = vpop.xlane.xlu1 %2208  ;;  %1515 = vadd.xlane.f32.xlu1 %v1514_v7 }
 0x547   :  { %v4242_v63 = vsub.f32 %v4120_v10, %v2232_v38  ;;  %v2231_v55 = vmul.f32 0.03125, %v2209_v48  ;;  %v1523_v25 = vsel %vm146_vm0, %v1501_v41, 0.0  ;;  %v1500_v54 = vmul.f32 %v4236_v4, %v4236_v4 }
 0x548   :  { %1524 = vadd.xlane.f32.xlu0 %v1523_v25 }
 0x549   :  { %v4248_v23 = vsub.f32 %v4124_v56, %v2231_v55  ;;  %v1520_v9 = vsel %vm146_vm0, %v1500_v54, 0.0  ;;  %v2218_v2 = vpop.xlane.xlu0 %2217  ;;  %v2248_v61 = vmul.f32 %v4242_v63, %v4242_v63 }
 0x54a   :  { %1521 = vadd.xlane.f32.xlu1 %v1520_v9  ;;  %v2234_v53 = vmul.f32 0.03125, %v2218_v2 }
 0x54b   :  { %v2215_v10 = vpop.xlane.xlu1 %2214  ;;  %v2258_v47 = vsel %vm146_vm0, %v2248_v61, 0.0  ;;  %v2247_v0 = vmul.f32 %v4248_v23, %v4248_v23 }
 0x54c   :  { %v4257_v57 = vsub.f32 %v4130_v24, %v2234_v53  ;;  %v2233_v58 = vmul.f32 0.03125, %v2215_v10  ;;  %2259 = vadd.xlane.f32.xlu0 %v2258_v47 }
 0x54d   :  { %v2255_v56 = vsel %vm146_vm0, %v2247_v0, 0.0  ;;  %v2224_v11 = vpop.xlane.xlu0 %2223 }
 0x54e   :  { %v4261_v14 = vsub.f32 %v4132_v20, %v2233_v58  ;;  %2256 = vadd.xlane.f32.xlu1 %v2255_v56  ;;  %v2236_v40 = vmul.f32 0.03125, %v2224_v11  ;;  %v2250_v42 = vmul.f32 %v4257_v57, %v4257_v57 }
 0x54f   :  { %v2221_v39 = vpop.xlane.xlu1 %2220 }
 0x550   :  { %v4266_v62 = vsub.f32 %v4136_v29, %v2236_v40  ;;  %v2235_v19 = vmul.f32 0.03125, %v2221_v39  ;;  %v2264_v24 = vsel %vm146_vm0, %v2250_v42, 0.0  ;;  %v2249_v30 = vmul.f32 %v4261_v14, %v4261_v14 }
 0x551   :  { %2265 = vadd.xlane.f32.xlu0 %v2264_v24  ;;  %v2230_v31 = vpop.xlane.xlu0 %2229 }
 0x552   :  { %v4272_v20 = vsub.f32 %v4140_v33, %v2235_v19  ;;  %v2238_v1 = vmul.f32 0.03125, %v2230_v31  ;;  %v2261_v51 = vsel %vm146_vm0, %v2249_v30, 0.0  ;;  %v2252_v16 = vmul.f32 %v4266_v62, %v4266_v62 }
 0x553   :  { %2262 = vadd.xlane.f32.xlu1 %v2261_v51  ;;  %v2227_v29 = vpop.xlane.xlu1 %2226 }
 0x554   :  { %v4278_v50 = vsub.f32 %v4147_v60, %v2238_v1  ;;  %v2237_v12 = vmul.f32 0.03125, %v2227_v29  ;;  %v2270_v52 = vsel %vm146_vm0, %v2252_v16, 0.0  ;;  %v2251_v32 = vmul.f32 %v4272_v20, %v4272_v20 }
 0x555   :  { %2271 = vadd.xlane.f32.xlu0 %v2270_v52  ;;  %v706_v33 = vpop.xlane.xlu0 %705  ;;  %v2444_v52 = vld [vmem:[#allocation5 + $0x58] sm:$0xff] }
 0x556   :  { %v4284_v6 = vsub.f32 %v4154_v18, %v2237_v12  ;;  %v726_v36 = vmul.f32 0.03125, %v706_v33  ;;  %v2267_v21 = vsel %vm146_vm0, %v2251_v32, 0.0  ;;  %v2254_v17 = vmul.f32 %v4278_v50, %v4278_v50  ;;  %2934 = vmatprep.subr.mxu0 %v2444_v52 }
 0x557   :  { %2268 = vadd.xlane.f32.xlu1 %v2267_v21  ;;  %v703_v60 = vpop.xlane.xlu1 %702  ;;  %2935 = vmatpush3.msra.mxu0 %v2444_v52 }
 0x558   :  { %v4290_v3 = vsub.f32 %v4152_v5, %v726_v36  ;;  %v725_v37 = vmul.f32 0.03125, %v703_v60  ;;  %v2276_v28 = vsel %vm146_vm0, %v2254_v17, 0.0  ;;  %v2253_v38 = vmul.f32 %v4284_v6, %v4284_v6 }
 0x559   :  { %2277 = vadd.xlane.f32.xlu0 %v2276_v28  ;;  %v712_v18 = vpop.xlane.xlu0 %711 }
 0x55a   :  { %v4296_v7 = vsub.f32 %v4159_v35, %v725_v37  ;;  %v728_v41 = vmul.f32 0.03125, %v712_v18  ;;  %v2273_v48 = vsel %vm146_vm0, %v2253_v38, 0.0  ;;  %v742_v55 = vmul.f32 %v4290_v3, %v4290_v3 }
 0x55b   :  { %2274 = vadd.xlane.f32.xlu1 %v2273_v48  ;;  %v709_v5 = vpop.xlane.xlu1 %708 }
 0x55c   :  { %v4302_v25 = vsub.f32 %v4164_v26, %v728_v41  ;;  %v727_v54 = vmul.f32 0.03125, %v709_v5  ;;  %v752_v9 = vsel %vm146_vm0, %v742_v55, 0.0  ;;  %v741_v2 = vmul.f32 %v4296_v7, %v4296_v7 }
 0x55d   :  { %753 = vadd.xlane.f32.xlu0 %v752_v9  ;;  %v718_v35 = vpop.xlane.xlu0 %717 }
 0x55e   :  { %v4308_v61 = vsub.f32 %v4169_v59, %v727_v54  ;;  %v730_v53 = vmul.f32 0.03125, %v718_v35  ;;  %v749_v10 = vsel %vm146_vm0, %v741_v2, 0.0  ;;  %v744_v47 = vmul.f32 %v4302_v25, %v4302_v25 }
 0x55f   :  { %750 = vadd.xlane.f32.xlu1 %v749_v10  ;;  %v715_v26 = vpop.xlane.xlu1 %714  ;;  %v2443_v10 = vld [vmem:[#allocation5 + $0x50] sm:$0xff] }
 0x560   :  { %v4314_v0 = vsub.f32 %v4174_v8, %v730_v53  ;;  %v729_v58 = vmul.f32 0.03125, %v715_v26  ;;  %v758_v56 = vsel %vm146_vm0, %v744_v47, 0.0  ;;  %v743_v11 = vmul.f32 %v4308_v61, %v4308_v61  ;;  %2936 = vmatprep.subr.mxu0 %v2443_v10 }
 0x561   :  { %759 = vadd.xlane.f32.xlu0 %v758_v56  ;;  %v724_v59 = vpop.xlane.xlu0 %723  ;;  %2937 = vmatpush3.msra.mxu0 %v2443_v10 }
 0x562   :  { %v4320_v40 = vsub.f32 %v4179_v43, %v729_v58  ;;  %v732_v42 = vmul.f32 0.03125, %v724_v59  ;;  %v755_v39 = vsel %vm146_vm0, %v743_v11, 0.0  ;;  %v746_v19 = vmul.f32 %v4314_v0, %v4314_v0  ;;  %v2442_v58 = vld [vmem:[#allocation5 + $0x48] sm:$0xff]  ;;  %v2441_v59 = vld [vmem:[#allocation5 + $0x40] sm:$0xff] }
 0x563   :  { %756 = vadd.xlane.f32.xlu1 %v755_v39  ;;  %v721_v8 = vpop.xlane.xlu1 %720  ;;  %2938 = vmatprep.subr.mxu0 %v2442_v58 }
 0x564   :  { %v4326_v24 = vsub.f32 %v4184_v49, %v732_v42  ;;  %v731_v30 = vmul.f32 0.03125, %v721_v8  ;;  %v764_v31 = vsel %vm146_vm0, %v746_v19, 0.0  ;;  %v745_v1 = vmul.f32 %v4320_v40, %v4320_v40  ;;  %2939 = vmatpush3.msra.mxu0 %v2442_v58 }
 0x565   :  { %765 = vadd.xlane.f32.xlu0 %v764_v31  ;;  %2940 = vmatprep.subr.mxu0 %v2441_v59 }
 0x566   :  { %v4332_v43 = vsub.f32 %v4189_v27, %v731_v30  ;;  %v761_v51 = vsel %vm146_vm0, %v745_v1, 0.0  ;;  %v748_v16 = vmul.f32 %v4326_v24, %v4326_v24  ;;  %v4344_v30 = vld [vmem:[%s4481_s7 + $0x3] ss:$0 sm:$0xff]  ;;  %2941 = vmatpush3.msra.mxu0 %v2441_v59 }
 0x567   :  { %762 = vadd.xlane.f32.xlu1 %v761_v51 }
 0x568   :  { %v770_v29 = vsel %vm146_vm0, %v748_v16, 0.0  ;;  %v747_v49 = vmul.f32 %v4332_v43, %v4332_v43  ;;  %v2440_v16 = vld [vmem:[#allocation5 + $0x38] sm:$0xff] }
 0x569   :  { %771 = vadd.xlane.f32.xlu0 %v770_v29  ;;  %2942 = vmatprep.subr.mxu0 %v2440_v16 }
 0x56a   :  { %v767_v12 = vsel %vm146_vm0, %v747_v49, 0.0  ;;  %v4350_v49 = vld [vmem:[%s4482_s8 + $0x3] ss:$0 sm:$0xff]  ;;  %2943 = vmatpush3.msra.mxu0 %v2440_v16 }
 0x56b   :  { %768 = vadd.xlane.f32.xlu1 %v767_v12  ;;  %v2439_v12 = vld [vmem:[#allocation5 + $0x30] sm:$0xff] }
 0x56c   :  { %2944 = vmatprep.subr.mxu0 %v2439_v12 }
 0x56d   :  { %2945 = vmatpush3.msra.mxu0 %v2439_v12 }
 0x5c5   :  { %v1507_v27 = vpop.xlane.xlu0 %1506 }
 0x5c6   :  { %v1527_v32 = vmul.f32 0.03125, %v1507_v27 }
 0x5c7   :  { %v1504_v33 = vpop.xlane.xlu1 %1503 }
 0x5c8   :  { %v1535_v36 = vadd.f32 1e-05, %v1527_v32  ;;  %v1526_v21 = vmul.f32 0.03125, %v1504_v33 }
 0x5c9   :  { %v1513_v17 = vpop.xlane.xlu0 %1512 }
 0x5ca   :  { %3083 = vrsqrt.f32 %v1535_v36  ;;  %v1534_v60 = vadd.f32 1e-05, %v1526_v21  ;;  %v1529_v37 = vmul.f32 0.03125, %v1513_v17 }
 0x5cb   :  { %v1510_v28 = vpop.xlane.xlu1 %1509 }
 0x5cc   :  { %3085 = vrsqrt.f32 %v1534_v60  ;;  %v1537_v38 = vadd.f32 1e-05, %v1529_v37  ;;  %v1528_v18 = vmul.f32 0.03125, %v1510_v28  ;;  %v2438_v28 = vld [vmem:[#allocation5 + $0x28] sm:$0xff] }
 0x5cd   :  { %v1519_v41 = vpop.xlane.xlu0 %1518  ;;  %2946 = vmatprep.subr.mxu0 %v2438_v28 }
 0x5ce   :  { %3087 = vrsqrt.f32 %v1537_v38  ;;  %v1536_v48 = vadd.f32 1e-05, %v1528_v18  ;;  %v1531_v55 = vmul.f32 0.03125, %v1519_v41  ;;  %2947 = vmatpush3.msra.mxu0 %v2438_v28  ;;  %v2711_v28 = vld [vmem:[%s4481_s7 + $0x5] ss:$0 sm:$0xff] }
 0x5cf   :  { %v1516_v5 = vpop.xlane.xlu1 %1515 }
 0x5d0   :  { %3089 = vrsqrt.f32 %v1536_v48  ;;  %v1539_v54 = vadd.f32 1e-05, %v1531_v55  ;;  %v1530_v9 = vmul.f32 0.03125, %v1516_v5  ;;  %v2437_v48 = vld [vmem:[#allocation5 + $0x20] sm:$0xff] }
 0x5d1   :  { %v1525_v2 = vpop.xlane.xlu0 %1524  ;;  %2948 = vmatprep.subr.mxu0 %v2437_v48 }
 0x5d2   :  { %3091 = vrsqrt.f32 %v1539_v54  ;;  %v1538_v35 = vadd.f32 1e-05, %v1530_v9  ;;  %v1533_v53 = vmul.f32 0.03125, %v1525_v2  ;;  %2949 = vmatpush3.msra.mxu0 %v2437_v48 }
 0x5d3   :  { %v1522_v47 = vpop.xlane.xlu1 %1521 }
 0x5d4   :  { %3093 = vrsqrt.f32 %v1538_v35  ;;  %v1532_v26 = vmul.f32 0.03125, %v1522_v47  ;;  %v1541_v56 = vadd.f32 1e-05, %v1533_v53 }
 0x5d5   :  { %v2260_v11 = vpop.xlane.xlu0 %2259 }
 0x5d6   :  { %v1540_v42 = vadd.f32 1e-05, %v1532_v26  ;;  %v2280_v39 = vmul.f32 0.03125, %v2260_v11 }
 0x5d7   :  { %v3084_v19 = vpop.eup %3083  ;;  %v2257_v8 = vpop.xlane.xlu1 %2256 }
 0x5d8   :  { %3095 = vrsqrt.f32 %v1540_v42  ;;  %v2288_v31 = vadd.f32 1e-05, %v2280_v39  ;;  %v2279_v1 = vmul.f32 0.03125, %v2257_v8  ;;  %v1551_v51 = vmul.f32 %v3084_v19, %v4198_v34 }
 0x5d9   :  { %v3086_v29 = vpop.eup %3085  ;;  %3097 = vrsqrt.f32 %v1541_v56 }
 0x5da   :  { %3099 = vrsqrt.f32 %v2288_v31  ;;  %v2287_v52 = vadd.f32 1e-05, %v2279_v1  ;;  %v2266_v27 = vpop.xlane.xlu0 %2265  ;;  %v1563_v32 = vmul.f32 %v4344_v30, %v1551_v51  ;;  %v1550_v33 = vmul.f32 %v3086_v29, %v4201_v13  ;;  %v2435_v31 = vld [vmem:[#allocation5 + $0x10] sm:$0xff] }
 0x5db   :  { %v3088_v34 = vpop.eup %3087  ;;  %v2282_v36 = vmul.f32 0.03125, %v2266_v27  ;;  %v2434_v27 = vld [vmem:[#allocation5 + $0x8] sm:$0xff] }
 0x5dc   :  { %3101 = vrsqrt.f32 %v2287_v52  ;;  %v2263_v21 = vpop.xlane.xlu1 %2262  ;;  %v1575_v17 = vadd.f32 %v4350_v49, %v1563_v32  ;;  %v1562_v60 = vmul.f32 %v4344_v30, %v1550_v33  ;;  %v1553_v37 = vmul.f32 %v3088_v34, %v4206_v46 }
 0x5dd   :  { %v3090_v38 = vpop.eup %3089  ;;  %v2290_v18 = vadd.f32 1e-05, %v2282_v36  ;;  %v2281_v41 = vmul.f32 0.03125, %v2263_v21 }
 0x5de   :  { %v2272_v13 = vpop.xlane.xlu0 %2271  ;;  %v1583_v55 = vmax.f32 %v1575_v17, 0.0  ;;  %v1574_v5 = vadd.f32 %v4350_v49, %v1562_v60  ;;  %v1552_v54 = vmul.f32 %v3090_v38, %v4212_v45  ;;  %v1565_v9 = vmul.f32 %v4344_v30, %v1553_v37  ;;  %v2436_v45 = vld [vmem:[#allocation5 + $0x18] sm:$0xff]  ;;  %v2433_v17 = vld [vmem:[#allocation5] sm:$0xff] }
 0x5df   :  { %v3092_v2 = vpop.eup %3091  ;;  %3103 = vrsqrt.f32 %v2290_v18  ;;  %v2289_v35 = vadd.f32 1e-05, %v2281_v41  ;;  %v2284_v46 = vmul.f32 0.03125, %v2272_v13  ;;  %2950 = vmatprep.subr.mxu0 %v2436_v45 }
 0x5e0   :  { %2353 = vrot.lane.b32.xlu0 %v1583_v55, %s3226_s16  ;;  %v2269_v53 = vpop.xlane.xlu1 %2268  ;;  %v1582_v10 = vmax.f32 %v1574_v5, 0.0  ;;  %v1564_v47 = vmul.f32 %v4344_v30, %v1552_v54  ;;  %v1577_v26 = vadd.f32 %v4350_v49, %v1565_v9  ;;  %v1555_v58 = vmul.f32 %v3092_v2, %v4218_v44  ;;  %2951 = vmatpush3.msra.mxu0 %v2436_v45 }
 0x5e1   :  { %v3094_v56 = vpop.eup %3093  ;;  %3105 = vrsqrt.f32 %v2289_v35  ;;  %v2292_v11 = vadd.f32 1e-05, %v2284_v46  ;;  %v2283_v59 = vmul.f32 0.03125, %v2269_v53  ;;  %2952 = vmatprep.subr.mxu0 %v2435_v31 }
 0x5e2   :  { %2351 = vrot.lane.b32.xlu1 %v1582_v10, %s3226_s16  ;;  %v2278_v42 = vpop.xlane.xlu0 %2277  ;;  %v1576_v39 = vadd.f32 %v4350_v49, %v1564_v47  ;;  %v1554_v19 = vmul.f32 %v3094_v56, %v4224_v22  ;;  %v1567_v8 = vmul.f32 %v4344_v30, %v1555_v58  ;;  %v1585_v29 = vmax.f32 %v1577_v26, 0.0  ;;  %2953 = vmatpush3.msra.mxu0 %v2435_v31 }
 0x5e3   :  { %3107 = vrsqrt.f32 %v2292_v11  ;;  %v2291_v44 = vadd.f32 1e-05, %v2283_v59  ;;  %v2286_v1 = vmul.f32 0.03125, %v2278_v42  ;;  %2954 = vmatprep.subr.mxu0 %v2434_v27 }
 0x5e4   :  { %v2275_v51 = vpop.xlane.xlu1 %2274  ;;  %v1584_v16 = vmax.f32 %v1576_v39, 0.0  ;;  %v1566_v12 = vmul.f32 %v4344_v30, %v1554_v19  ;;  %v1579_v52 = vadd.f32 %v4350_v49, %v1567_v8  ;;  %2955 = vmatpush3.msra.mxu0 %v2434_v27 }
 0x5e5   :  { %v3096_v32 = vpop.eup %3095  ;;  %3109 = vrsqrt.f32 %v2291_v44  ;;  %v2294_v22 = vadd.f32 1e-05, %v2286_v1  ;;  %v2285_v33 = vmul.f32 0.03125, %v2275_v51  ;;  %2956 = vmatprep.subr.mxu0 %v2433_v17 }
 0x5e6   :  { %v3098_v34 = vpop.eup %3097  ;;  %2355 = vrot.lane.b32.xlu0 %v1584_v16, %s3226_s16  ;;  %2357 = vrot.lane.b32.xlu1 %v1585_v29, %s3226_s16  ;;  %v1578_v36 = vadd.f32 %v4350_v49, %v1566_v12  ;;  %v1556_v21 = vmul.f32 %v3096_v32, %v4236_v4  ;;  %v1587_v18 = vmax.f32 %v1579_v52, 0.0  ;;  %v2712_v4 = vld [vmem:[%s4482_s8 + $0x5] ss:$0 sm:$0xff] }
 0x5e7   :  { %v3100_v60 = vpop.eup %3099  ;;  %3111 = vrsqrt.f32 %v2294_v22  ;;  %v2293_v37 = vadd.f32 1e-05, %v2285_v33  ;;  %v1557_v55 = vmul.f32 %v3098_v34, %v4230_v15  ;;  %2957 = vmatpush3.msra.mxu0 %v2433_v17 }
 0x5e8   :  { %v1586_v38 = vmax.f32 %v1578_v36, 0.0  ;;  %v1568_v41 = vmul.f32 %v4344_v30, %v1556_v21  ;;  %v2304_v48 = vmul.f32 %v3100_v60, %v4242_v63  ;;  %v751_v34 = vpop.xlane.xlu1 %750  ;;  %v754_v36 = vpop.xlane.xlu0 %753 }
 0x5e9   :  { %v3102_v13 = vpop.eup %3101  ;;  %3113 = vrsqrt.f32 %v2293_v37  ;;  %v1569_v53 = vmul.f32 %v4344_v30, %v1557_v55  ;;  %v774_v21 = vmul.f32 0.03125, %v754_v36  ;;  %v773_v37 = vmul.f32 0.03125, %v751_v34 }
 0x5ea   :  { %2359 = vrot.lane.b32.xlu0 %v1586_v38, %s3226_s16  ;;  %2361 = vrot.lane.b32.xlu1 %v1587_v18, %s3226_s16  ;;  %v1580_v5 = vadd.f32 %v4350_v49, %v1568_v41  ;;  %v2316_v54 = vmul.f32 %v2711_v28, %v2304_v48  ;;  %v2303_v9 = vmul.f32 %v3102_v13, %v4248_v23 }
 0x5eb   :  { %v1581_v56 = vadd.f32 %v4350_v49, %v1569_v53  ;;  %v782_v60 = vadd.f32 1e-05, %v774_v21  ;;  %v781_v41 = vadd.f32 1e-05, %v773_v37 }
 0x5ec   :  { %v3104_v63 = vpop.eup %3103  ;;  %v1588_v2 = vmax.f32 %v1580_v5, 0.0  ;;  %v2328_v35 = vadd.f32 %v2712_v4, %v2316_v54  ;;  %v2315_v46 = vmul.f32 %v2711_v28, %v2303_v9  ;;  %v757_v17 = vpop.xlane.xlu1 %756 }
 0x5ed   :  { %v2306_v26 = vmul.f32 %v3104_v63, %v4257_v57  ;;  %v775_v38 = vmul.f32 0.03125, %v757_v17  ;;  %3115 = vrsqrt.f32 %v782_v60 }
 0x5ee   :  { %v3106_v10 = vpop.eup %3105  ;;  %2363 = vrot.lane.b32.xlu0 %v1588_v2, %s3226_s16  ;;  %v2336_v15 = vmax.f32 %v2328_v35, 0.0  ;;  %v2327_v47 = vadd.f32 %v2712_v4, %v2315_v46  ;;  %3117 = vrsqrt.f32 %v781_v41 }
 0x5ef   :  { %v2305_v58 = vmul.f32 %v3106_v10, %v4261_v14  ;;  %v2318_v42 = vmul.f32 %v2711_v28, %v2306_v26  ;;  %v1589_v14 = vmax.f32 %v1581_v56, 0.0  ;;  %v783_v13 = vadd.f32 1e-05, %v775_v38 }
 0x5f0   :  { %v3108_v45 = vpop.eup %3107  ;;  %2385 = vrot.lane.b32.xlu1 %v2336_v15, %s3227_s20  ;;  %v2335_v59 = vmax.f32 %v2327_v47, 0.0  ;;  %v763_v18 = vpop.xlane.xlu1 %762 }
 0x5f1   :  { %v2317_v23 = vmul.f32 %v2711_v28, %v2305_v58  ;;  %v2308_v30 = vmul.f32 %v3108_v45, %v4266_v62  ;;  %v2330_v1 = vadd.f32 %v2712_v4, %v2318_v42  ;;  %v777_v55 = vmul.f32 0.03125, %v763_v18 }
 0x5f2   :  { %v3110_v11 = vpop.eup %3109  ;;  %3119 = vrsqrt.f32 %v783_v13 }
 0x5f3   :  { %v2329_v39 = vadd.f32 %v2712_v4, %v2317_v23  ;;  %v2307_v57 = vmul.f32 %v3110_v11, %v4272_v20  ;;  %v2320_v51 = vmul.f32 %v2711_v28, %v2308_v30  ;;  %v2338_v52 = vmax.f32 %v2330_v1, 0.0  ;;  %v2647_v23 = vld [vmem:[%s4481_s7 + $0x1] ss:$0 sm:$0xff]  ;;  %s3228_s7 = smov [#allocation7]  }
 0x5f4   :  { %v3112_v19 = vpop.eup %3111  ;;  %2383 = vrot.lane.b32.xlu1 %v2335_v59, %s3227_s20  ;;  %v769_v5 = vpop.xlane.xlu1 %768  ;;  %v785_v63 = vadd.f32 1e-05, %v777_v55 }
 0x5f5   :  { %v2337_v8 = vmax.f32 %v2329_v39, 0.0  ;;  %v2319_v44 = vmul.f32 %v2711_v28, %v2307_v57  ;;  %v2310_v16 = vmul.f32 %v3112_v19, %v4278_v50  ;;  %v2332_v27 = vadd.f32 %v2712_v4, %v2320_v51  ;;  %v2648_v39 = vld [vmem:[%s4482_s8 + $0x1] ss:$0 sm:$0xff]  ;;  %s2594_s8 = sshll.u32 %s3228_s7, 4  ;;  %s2595_s8 = int_to_ptr.vmem [resolvable:$true] %s2594_s8 }
 0x5f6   :  { %v3114_v31 = vpop.eup %3113  ;;  %v779_v2 = vmul.f32 0.03125, %v769_v5  ;;  %s3171_s23 = scalar_lea.vmem %s2595_s8, 1024  ;;  %p3176_p11 = scmp.lt.s32.totalorder %s2595_s8, %s2595_s8 }
 0x5f7   :  { %2387 = vrot.lane.b32.xlu0 %v2337_v8, %s3227_s20  ;;  %v2309_v49 = vmul.f32 %v3114_v31, %v4284_v6  ;;  %v2331_v62 = vadd.f32 %v2712_v4, %v2319_v44  ;;  %v2322_v20 = vmul.f32 %v2711_v28, %v2310_v16  ;;  %v2340_v33 = vmax.f32 %v2332_v27, 0.0  ;;  %p3172_p10 = scmp.ne.s32.totalorder %s2595_s8, %s3171_s23  ;;  %p3177_p12 = scmp.lt.s32.totalorder %s3171_s23, %s3171_s23 }
 0x5f8   :  { %2365 = vrot.lane.b32.xlu1 %v1589_v14, %s3226_s16  ;;  %v787_v10 = vadd.f32 1e-05, %v779_v2 }
 0x5f9   :  { %v2321_v29 = vmul.f32 %v2711_v28, %v2309_v49  ;;  %v2339_v12 = vmax.f32 %v2331_v62, 0.0  ;;  %v2334_v50 = vadd.f32 %v2712_v4, %v2322_v20  ;;  %v760_v28 = vpop.xlane.xlu0 %759  ;;  %p3178_p13 = por %p3177_p12, %p3176_p11 }
 0x5fa   :  { %v776_v48 = vmul.f32 0.03125, %v760_v28  ;;  %v3116_v15 = vpop.eup %3115 }
 0x5fb   :  { %v2333_v32 = vadd.f32 %v2712_v4, %v2321_v29  ;;  %2391 = vrot.lane.b32.xlu0 %v2339_v12, %s3227_s20  ;;  %v2342_v6 = vmax.f32 %v2334_v50, 0.0  ;;  %v798_v26 = vmul.f32 %v3116_v15, %v4290_v3  ;;  %v3118_v45 = vpop.eup %3117  ;;  %p3179_p0 = pnand %p3178_p13, %p3172_p10 }
 0x5fc   :  { %2389 = vrot.lane.b32.xlu1 %v2338_v52, %s3227_s20  ;;  %v784_v54 = vadd.f32 1e-05, %v776_v48  ;;  %v797_v42 = vmul.f32 %v3118_v45, %v4296_v7 }
 0x5fd   :  { %v2341_v22 = vmax.f32 %v2333_v32, 0.0  ;;  %v766_v4 = vpop.xlane.xlu0 %765  ;;  %v810_v59 = vmul.f32 %v2647_v23, %v798_v26 }
 0x5fe   :  { %v778_v9 = vmul.f32 0.03125, %v766_v4  ;;  %3121 = vrsqrt.f32 %v784_v54  ;;  %v809_v14 = vmul.f32 %v2647_v23, %v797_v42 }
 0x5ff   :  { %2395 = vrot.lane.b32.xlu0 %v2341_v22, %s3227_s20  ;;  %3123 = vrsqrt.f32 %v785_v63  ;;  %v3120_v11 = vpop.eup %3119  ;;  %v822_v8 = vadd.f32 %v2648_v39, %v810_v59 }
 0x600   :  { %2393 = vrot.lane.b32.xlu1 %v2340_v33, %s3227_s20  ;;  %v786_v46 = vadd.f32 1e-05, %v778_v9  ;;  %v799_v3 = vmul.f32 %v3120_v11, %v4308_v61  ;;  %v821_v7 = vadd.f32 %v2648_v39, %v809_v14 }
 0x601   :  { %v772_v35 = vpop.xlane.xlu0 %771  ;;  %v830_v62 = vmax.f32 %v822_v8, 0.0 }
 0x602   :  { %v780_v53 = vmul.f32 0.03125, %v772_v35  ;;  %3125 = vrsqrt.f32 %v786_v46  ;;  %v811_v51 = vmul.f32 %v2647_v23, %v799_v3  ;;  %v829_v22 = vmax.f32 %v821_v7, 0.0 }
 0x603   :  { %3127 = vrsqrt.f32 %v787_v10 }
 0x604   :  { %2397 = vrot.lane.b32.xlu1 %v2342_v6, %s3227_s20  ;;  %v788_v47 = vadd.f32 1e-05, %v780_v53  ;;  %v823_v20 = vadd.f32 %v2648_v39, %v811_v51 }
 0x606   :  { %3129 = vrsqrt.f32 %v788_v47  ;;  %v831_v17 = vmax.f32 %v823_v20, 0.0 }
 0x60b   :  { %v3122_v57 = vpop.eup %3121 }
 0x60c   :  { %v3124_v31 = vpop.eup %3123  ;;  %v800_v1 = vmul.f32 %v3122_v57, %v4302_v25 }
 0x60d   :  { %v801_v29 = vmul.f32 %v3124_v31, %v4320_v40 }
 0x60e   :  { %v812_v27 = vmul.f32 %v2647_v23, %v800_v1 }
 0x60f   :  { %v3126_v49 = vpop.eup %3125  ;;  %v813_v33 = vmul.f32 %v2647_v23, %v801_v29 }
 0x610   :  { %v3128_v12 = vpop.eup %3127  ;;  %v802_v25 = vmul.f32 %v3126_v49, %v4314_v0  ;;  %v824_v21 = vadd.f32 %v2648_v39, %v812_v27 }
 0x611   :  { %v803_v50 = vmul.f32 %v3128_v12, %v4332_v43  ;;  %v825_v28 = vadd.f32 %v2648_v39, %v813_v33 }
 0x612   :  { %v814_v37 = vmul.f32 %v2647_v23, %v802_v25  ;;  %v832_v13 = vmax.f32 %v824_v21, 0.0 }
 0x613   :  { %v3130_v6 = vpop.eup %3129  ;;  %v815_v38 = vmul.f32 %v2647_v23, %v803_v50  ;;  %v833_v55 = vmax.f32 %v825_v28, 0.0 }
 0x614   :  { %v804_v0 = vmul.f32 %v3130_v6, %v4326_v24  ;;  %v826_v4 = vadd.f32 %v2648_v39, %v814_v37 }
 0x615   :  { %v827_v5 = vadd.f32 %v2648_v39, %v815_v38 }
 0x616   :  { %v816_v54 = vmul.f32 %v2647_v23, %v804_v0  ;;  %v834_v53 = vmax.f32 %v826_v4, 0.0 }
 0x617   :  { %v835_v10 = vmax.f32 %v827_v5, 0.0 }
 0x618   :  { %v828_v15 = vadd.f32 %v2648_v39, %v816_v54 }
 0x61a   :  { %v836_v11 = vmax.f32 %v828_v15, 0.0 }
 0x652   :  { %v2354_v56 = vpop.permute.xlu0 %2353 }
 0x653   :  { %v2408_v52 = vsel %vm146_vm0, %v830_v62, %v2354_v56 }
 0x654   :  { %v2352_v58 = vpop.permute.xlu1 %2351 }
 0x655   :  { %v2407_v34 = vsel %vm146_vm0, %v829_v22, %v2352_v58 }
 0x658   :  { %v2358_v30 = vpop.permute.xlu1 %2357  ;;  %v2356_v19 = vpop.permute.xlu0 %2355 }
 0x659   :  { %v2409_v43 = vsel %vm146_vm0, %v831_v17, %v2356_v19  ;;  %v2410_v9 = vsel %vm146_vm0, %v832_v13, %v2358_v30 }
 0x65c   :  { %v2362_v44 = vpop.permute.xlu1 %2361  ;;  %v2360_v16 = vpop.permute.xlu0 %2359 }
 0x65d   :  { %v2411_v24 = vsel %vm146_vm0, %v833_v55, %v2360_v16  ;;  %v2412_v47 = vsel %vm146_vm0, %v834_v53, %v2362_v44 }
 0x660   :  { %v2364_v40 = vpop.permute.xlu0 %2363 }
 0x661   :  { %v2413_v26 = vsel %vm146_vm0, %v835_v10, %v2364_v40 }
 0x662   :  { %v2386_v61 = vpop.permute.xlu1 %2385 }
 0x663   :  { %v2417_v32 = vsel %vm2415_vm1, %v2408_v52, %v2386_v61 }
 0x664   :  { %2426 = vst.msk [vmem:[#allocation7 + $0x8] sm:$0xff] %vm2424_vm2, %v2417_v32 }
 0x666   :  { %v2384_v36 = vpop.permute.xlu1 %2383 }
 0x667   :  { %v2416_v60 = vsel %vm2415_vm1, %v2407_v34, %v2384_v36 }
 0x668   :  { %2425 = vst.msk [vmem:[#allocation7] sm:$0xff] %vm2424_vm2, %v2416_v60  ;;  %2958 = vmatprep.mubr.msk.f32.mxu0 %vm2424_vm2, %v2416_v60 }
 0x669   :  { %2959 = vmatmul.mubr.msk.f32.vlgmr.msra.gmra.mxu0 %vm2424_vm2, %v2417_v32  ;;  %v2388_v18 = vpop.permute.xlu0 %2387 }
 0x66a   :  { %v2366_v41 = vpop.permute.xlu1 %2365  ;;  %v2418_v48 = vsel %vm2415_vm1, %v2409_v43, %v2388_v18 }
 0x66b   :  { %2427 = vst.msk [vmem:[#allocation7 + $0x10] sm:$0xff] %vm2424_vm2, %v2418_v48  ;;  %2961 = vmatprep.mubr.msk.f32.mxu0 %vm2424_vm2, %v2418_v48  ;;  %v2414_v59 = vsel %vm146_vm0, %v836_v11, %v2366_v41 }
 0x66d   :  { %v2392_v2 = vpop.permute.xlu0 %2391 }
 0x66e   :  { %v2390_v63 = vpop.permute.xlu1 %2389  ;;  %v2420_v46 = vsel %vm2415_vm1, %v2411_v24, %v2392_v2 }
 0x66f   :  { %v2419_v35 = vsel %vm2415_vm1, %v2410_v9, %v2390_v63  ;;  %2429 = vst.msk [vmem:[#allocation7 + $0x20] sm:$0xff] %vm2424_vm2, %v2420_v46 }
 0x670   :  { %2428 = vst.msk [vmem:[#allocation7 + $0x18] sm:$0xff] %vm2424_vm2, %v2419_v35  ;;  %2962 = vmatmul.mubr.msk.f32.gmra.mxu0 %vm2424_vm2, %v2419_v35 }
 0x671   :  { %2964 = vmatprep.mubr.msk.f32.mxu0 %vm2424_vm2, %v2420_v46  ;;  %v2396_v45 = vpop.permute.xlu0 %2395 }
 0x672   :  { %v2394_v58 = vpop.permute.xlu1 %2393  ;;  %v2422_v56 = vsel %vm2415_vm1, %v2413_v26, %v2396_v45 }
 0x673   :  { %v2421_v23 = vsel %vm2415_vm1, %v2412_v47, %v2394_v58  ;;  %2431 = vst.msk [vmem:[#allocation7 + $0x30] sm:$0xff] %vm2424_vm2, %v2422_v56 }
 0x674   :  { %2430 = vst.msk [vmem:[#allocation7 + $0x28] sm:$0xff] %vm2424_vm2, %v2421_v23  ;;  %2965 = vmatmul.mubr.msk.f32.gmra.mxu0 %vm2424_vm2, %v2421_v23 }
 0x675   :  { %2967 = vmatprep.mubr.msk.f32.mxu0 %vm2424_vm2, %v2422_v56 }
 0x676   :  { %v2398_v42 = vpop.permute.xlu1 %2397 }
 0x677   :  { %v2423_v30 = vsel %vm2415_vm1, %v2414_v59, %v2398_v42 }
 0x678   :  { %2432 = vst.msk [vmem:[#allocation7 + $0x38] sm:$0xff] %vm2424_vm2, %v2423_v30  ;;  %2968 = vmatmul.mubr.msk.f32.gmra.mxu0 %vm2424_vm2, %v2423_v30 }
 0x679   :  { %3182 = shalt.err (!%p3179_p0)
}
 0x67a   :  { %2600 = dma.vmem_to_hbm [thread:$0]  %s2595_s8, 1024, %s4485_s11, [#allocation4], %s3220_s24, %s3220_s24, %s3221_s25  }
 0x67b   :  { %v2713_v39 = vld [vmem:[%s4484_s10] ss:$0 sm:$0xff]  ;;  %s3229_s10 = smov [#allocation8]  }
 0x67c   :  { %s2606_s11 = sshll.u32 %s3229_s10, 4  ;;  %s2607_s11 = int_to_ptr.vmem [resolvable:$true] %s2606_s11 }
 0x67d   :  { %s3191_s30 = scalar_lea.vmem %s2607_s11, 1024  ;;  %p3196_p2 = scmp.lt.s32.totalorder %s2607_s11, %s2607_s11 }
 0x67e   :  { %p3192_p1 = scmp.ne.s32.totalorder %s2607_s11, %s3191_s30  ;;  %p3197_p3 = scmp.lt.s32.totalorder %s3191_s30, %s3191_s30 }
 0x680   :  { %p3198_p4 = por %p3197_p3, %p3196_p2 }
 0x682   :  { %p3199_p5 = pnand %p3198_p4, %p3192_p1 }
 0x729   :  { %v2960_v19 = vpop.f32.mrf.mxu0 }
 0x72a   :  { %v2548_v3 = vadd.f32 %v2960_v19, %v2713_v39 }
 0x72b   :  { %v2542_v57 = vpop.f32.mrf.mxu0 }
 0x72c   :  { %2582 = vst.msk [vmem:[#allocation8 + $0x8] sm:$0xff] %vm2424_vm2, %v2548_v3  ;;  %v2543_v8 = vadd.f32 %v2713_v39, %v2542_v57 }
 0x72e   :  { %2581 = vst.msk [vmem:[#allocation8] sm:$0xff] %vm2424_vm2, %v2543_v8 }
 0x730   :  { %v2963_v14 = vpop.f32.mrf.mxu0 }
 0x731   :  { %v2558_v31 = vadd.f32 %v2963_v14, %v2713_v39 }
 0x732   :  { %v2552_v44 = vpop.f32.mrf.mxu0 }
 0x733   :  { %2584 = vst.msk [vmem:[#allocation8 + $0x18] sm:$0xff] %vm2424_vm2, %v2558_v31  ;;  %v2553_v1 = vadd.f32 %v2713_v39, %v2552_v44 }
 0x734   :  { %v2966_v51 = vpop.f32.mrf.mxu0 }
 0x735   :  { %2583 = vst.msk [vmem:[#allocation8 + $0x10] sm:$0xff] %vm2424_vm2, %v2553_v1  ;;  %v2568_v16 = vadd.f32 %v2966_v51, %v2713_v39 }
 0x736   :  { %v2562_v49 = vpop.f32.mrf.mxu0 }
 0x737   :  { %2586 = vst.msk [vmem:[#allocation8 + $0x28] sm:$0xff] %vm2424_vm2, %v2568_v16  ;;  %v2563_v62 = vadd.f32 %v2713_v39, %v2562_v49 }
 0x738   :  { %v2969_v7 = vpop.f32.mrf.mxu0 }
 0x739   :  { %2585 = vst.msk [vmem:[#allocation8 + $0x20] sm:$0xff] %vm2424_vm2, %v2563_v62  ;;  %v2578_v29 = vadd.f32 %v2969_v7, %v2713_v39 }
 0x73a   :  { %v2572_v12 = vpop.f32.mrf.mxu0 }
 0x73b   :  { %2588 = vst.msk [vmem:[#allocation8 + $0x38] sm:$0xff] %vm2424_vm2, %v2578_v29  ;;  %v2573_v52 = vadd.f32 %v2713_v39, %v2572_v12 }
 0x73d   :  { %2587 = vst.msk [vmem:[#allocation8 + $0x30] sm:$0xff] %vm2424_vm2, %v2573_v52 }
 0x73e   :  { %3202 = shalt.err (!%p3199_p5)
}
 0x73f   :  { %2612 = dma.vmem_to_hbm [thread:$0]  %s2607_s11, 1024, %s4486_s12, [#allocation9], %s3220_s24, %s3220_s24, %s3221_s25  }
 0x740   :  { %3215 = dma.done.wait [#allocation4], 1024  }
 0x741   :  { %3216 = vsyncadd [#allocation4], 4294966272 }
 0x742   :  { %3217 = dma.done.wait [#allocation9], 1024  }
 0x743   :  { %3218 = vsyncadd [#allocation9], 4294966272 }
 0x744   :  { %2619 = vsyncpa [#allocation3], 1 }
 0x745   :  { %2620 = vsyncpa [#allocation6], 1 }
 0x746   :  { %2621 = vsyncpa [#allocation4], 1 }
 0x747   :  { %2622 = vsyncpa [#allocation9], 1 }

</bundles_post_ra>
